<compile_context>
chip_gen: v5e
topology: v5e:2x2
jax: 0.10.0
libtpu: 0.0.40
codegen_flags: <defaults>
</compile_context>

<pallas_src>
import functools
import math

import jax
import jax.numpy as jnp
from jax import lax
from jax.experimental import pallas as pl
from jax.experimental.pallas import tpu as pltpu

LN_EPS = 1e-5
MXU_DTYPE = jnp.bfloat16   # MXU operand dtype; accumulation is always f32.


# ----------------------------- in-kernel helpers ---------------------------- #

def _layernorm(x, gamma, beta):
    """x: (rows, d) f32; gamma/beta: (1, d). LayerNorm over last dim."""
    mean = jnp.mean(x, axis=-1, keepdims=True)
    cen = x - mean
    var = jnp.mean(cen * cen, axis=-1, keepdims=True)
    return cen * lax.rsqrt(var + LN_EPS) * gamma + beta


def _gelu_tanh(x):
    # TODO(synk): nn.GELU default is the exact erf form; tanh approximation
    # (max abs err ~1e-3) used here to stay on guaranteed TPU lowerings.
    c = 0.7978845608028654  # sqrt(2/pi)
    return 0.5 * x * (1.0 + jnp.tanh(c * (x + 0.044715 * x * x * x)))


# ----------------------------- fused transformer kernel --------------------- #

def _make_transformer_kernel(*, b, n, kv_n, heads, dim_head, depth,
                             has_context):
    inner = heads * dim_head

    def kernel(x_ref, *rest):
        if has_context:
            ctx_ref, rest = rest[0], rest[1:]
        (ln1g_ref, ln1b_ref, wqkv_ref, wo_ref, bo_ref,
         ln2g_ref, ln2b_ref, w1_ref, b1_ref, w2_ref, b2_ref,
         lnfg_ref, lnfb_ref, o_ref, res_ref, attn_ref) = rest

        layer = pl.program_id(0)

        @pl.when(layer == 0)
        def _():
            res_ref[...] = x_ref[...]          # residual stream lives in VMEM

        res = res_ref[...]                     # (b*n, dim) f32

        # ------------------ PreNorm + Attention ------------------ #
        xn = _layernorm(res, ln1g_ref[0], ln1b_ref[0])
        xn_m = xn.astype(MXU_DTYPE)
        wqkv = wqkv_ref[0]                     # (dim, 3*inner) bf16, scale in Wq

        if has_context:
            # Q from normed x; K/V from raw context (matches PreNorm+default()).
            ctx_m = ctx_ref[...].astype(MXU_DTYPE)
            q = jnp.dot(xn_m, wqkv[:, :inner],
                        preferred_element_type=jnp.float32)
            kv = jnp.dot(ctx_m, wqkv[:, inner:],
                         preferred_element_type=jnp.float32)
            q_m = q.astype(MXU_DTYPE)
            kv_m = kv.astype(MXU_DTYPE)
            k_m = kv_m[:, :inner]
            v_m = kv_m[:, inner:]
        else:
            qkv = jnp.dot(xn_m, wqkv, preferred_element_type=jnp.float32)
            qkv_m = qkv.astype(MXU_DTYPE)      # one cast, lane-aligned slices
            q_m = qkv_m[:, :inner]
            k_m = qkv_m[:, inner:2 * inner]
            v_m = qkv_m[:, 2 * inner:]

        # Per (batch, head) attention tiles -> (b*n, inner) concat buffer.
        for b0 in range(b):
            r0, rk = b0 * n, b0 * kv_n
            qb = q_m[r0:r0 + n]
            kb = k_m[rk:rk + kv_n]
            vb = v_m[rk:rk + kv_n]
            for h in range(heads):
                c0 = h * dim_head
                qh = qb[:, c0:c0 + dim_head]
                kh = kb[:, c0:c0 + dim_head]
                vh = vb[:, c0:c0 + dim_head]
                # Contract last dims of both operands (no materialized k.T);
                # 1/sqrt(dim_head) already folded into Wq.
                dots = lax.dot_general(
                    qh, kh, (((1,), (1,)), ((), ())),
                    preferred_element_type=jnp.float32)     # (n, kv_n)
                dots = dots - jnp.max(dots, axis=-1, keepdims=True)
                p = jnp.exp(dots)
                p = p * pl.reciprocal(
                    jnp.sum(p, axis=-1, keepdims=True), approx=True)
                attn_ref[r0:r0 + n, c0:c0 + dim_head] = jnp.dot(
                    p.astype(MXU_DTYPE), vh,
                    preferred_element_type=jnp.float32)

        # Single K=inner output projection + bias + residual.
        attn_out = jnp.dot(attn_ref[...].astype(MXU_DTYPE), wo_ref[0],
                           preferred_element_type=jnp.float32) + bo_ref[0]
        res = res + attn_out

        # ------------------ PreNorm + FeedForward ------------------ #
        xn2 = _layernorm(res, ln2g_ref[0], ln2b_ref[0])
        hdn = jnp.dot(xn2.astype(MXU_DTYPE), w1_ref[0],
                      preferred_element_type=jnp.float32) + b1_ref[0]
        hdn = _gelu_tanh(hdn)
        ff = jnp.dot(hdn.astype(MXU_DTYPE), w2_ref[0],
                     preferred_element_type=jnp.float32) + b2_ref[0]
        res = res + ff

        res_ref[...] = res

        @pl.when(layer == depth - 1)
        def _():
            # Final LayerNorm folded into the last layer's step.
            o_ref[...] = _layernorm(res, lnfg_ref[...], lnfb_ref[...])

    return kernel


# ----------------------------- model forward -------------------------------- #

def transformer_forward(params, x, context=None, *, heads, dim_head):
    """x: (b, n, dim) f32 -> (b, n, dim) f32 (matches Transformer.forward)."""
    b, n, dim = x.shape
    inner = heads * dim_head
    depth = params["wqkv"].shape[0]
    mlp = params["w1"].shape[-1]
    bn = b * n
    has_context = context is not None
    kv_n = context.shape[1] if has_context else n

    kernel = _make_transformer_kernel(
        b=b, n=n, kv_n=kv_n, heads=heads, dim_head=dim_head, depth=depth,
        has_context=has_context)

    const2 = lambda l: (0, 0)           # activations / final LN: constant block
    per_layer = lambda l: (l, 0, 0)     # stacked per-layer params: layer index

    in_specs = [pl.BlockSpec((bn, dim), const2)]
    inputs = [x.reshape(bn, dim)]
    if has_context:
        in_specs.append(pl.BlockSpec((b * kv_n, dim), const2))
        inputs.append(context.reshape(b * kv_n, dim))

    in_specs += [
        pl.BlockSpec((1, 1, dim), per_layer),          # LN1 gamma
        pl.BlockSpec((1, 1, dim), per_layer),          # LN1 beta
        pl.BlockSpec((1, dim, 3 * inner), per_layer),  # Wq|Wk|Wv (scale folded)
        pl.BlockSpec((1, inner, dim), per_layer),      # Wo
        pl.BlockSpec((1, 1, dim), per_layer),          # bo
        pl.BlockSpec((1, 1, dim), per_layer),          # LN2 gamma
        pl.BlockSpec((1, 1, dim), per_layer),          # LN2 beta
        pl.BlockSpec((1, dim, mlp), per_layer),        # W1
        pl.BlockSpec((1, 1, mlp), per_layer),          # b1
        pl.BlockSpec((1, mlp, dim), per_layer),        # W2
        pl.BlockSpec((1, 1, dim), per_layer),          # b2
        pl.BlockSpec((1, dim), const2),                # final LN gamma
        pl.BlockSpec((1, dim), const2),                # final LN beta
    ]
    inputs += [
        params["ln1_g"], params["ln1_b"], params["wqkv"], params["wo"],
        params["bo"], params["ln2_g"], params["ln2_b"], params["w1"],
        params["b1"], params["w2"], params["b2"],
        params["lnf_g"], params["lnf_b"],
    ]

    out = pl.pallas_call(
        kernel,
        out_shape=jax.ShapeDtypeStruct((bn, dim), jnp.float32),
        grid=(depth,),
        in_specs=in_specs,
        out_specs=pl.BlockSpec((bn, dim), const2),
        scratch_shapes=[
            pltpu.VMEM((bn, dim), jnp.float32),    # residual carry
            pltpu.VMEM((bn, inner), jnp.float32),  # per-head concat buffer
        ],
        compiler_params=pltpu.CompilerParams(
            dimension_semantics=("arbitrary",)),   # sequential over depth
    )(*inputs)
    return out.reshape(b, n, dim)


# ----------------------------- parameters ----------------------------------- #

def init_params(key, dim, depth, heads, dim_head, mlp_dim):
    """Per-layer params stacked on a leading depth axis; weights pre-cast to
    bf16; 1/sqrt(dim_head) folded into the Wq columns of the fused QKV weight."""
    inner = heads * dim_head
    scale = dim_head ** -0.5

    def uniform(k, shape, fan_in):
        bound = 1.0 / math.sqrt(fan_in)
        return jax.random.uniform(k, shape, jnp.float32, -bound, bound)

    wqkv, wo, bo, w1, b1, w2, b2 = [], [], [], [], [], [], []
    for k in jax.random.split(key, depth):
        ks = jax.random.split(k, 9)
        wq = uniform(ks[0], (dim, inner), dim) * scale
        wk = uniform(ks[1], (dim, inner), dim)
        wv = uniform(ks[2], (dim, inner), dim)
        wqkv.append(jnp.concatenate([wq, wk, wv], axis=1))
        wo.append(uniform(ks[3], (inner, dim), inner))
        bo.append(uniform(ks[4], (1, dim), inner))
        w1.append(uniform(ks[5], (dim, mlp_dim), dim))
        b1.append(uniform(ks[6], (1, mlp_dim), dim))
        w2.append(uniform(ks[7], (mlp_dim, dim), mlp_dim))
        b2.append(uniform(ks[8], (1, dim), mlp_dim))

    stack = lambda xs: jnp.stack(xs, axis=0)
    return {
        "ln1_g": jnp.ones((depth, 1, dim), jnp.float32),
        "ln1_b": jnp.zeros((depth, 1, dim), jnp.float32),
        "wqkv": stack(wqkv).astype(MXU_DTYPE),   # (depth, dim, 3*inner)
        "wo": stack(wo).astype(MXU_DTYPE),       # (depth, inner, dim)
        "bo": stack(bo),                         # (depth, 1, dim) f32
        "ln2_g": jnp.ones((depth, 1, dim), jnp.float32),
        "ln2_b": jnp.zeros((depth, 1, dim), jnp.float32),
        "w1": stack(w1).astype(MXU_DTYPE),       # (depth, dim, mlp)
        "b1": stack(b1),                         # (depth, 1, mlp) f32
        "w2": stack(w2).astype(MXU_DTYPE),       # (depth, mlp, dim)
        "b2": stack(b2),                         # (depth, 1, dim) f32
        "lnf_g": jnp.ones((1, dim), jnp.float32),
        "lnf_b": jnp.zeros((1, dim), jnp.float32),
    }


# ----------------------------- main ------------------------------------------ #

if __name__ == "__main__":
    # Small but lane-dense hyperparameters (every matmul lane dim is a multiple
    # of 128): dim=128, heads=4, dim_head=128 (inner=512), mlp_dim=256.
    dim, depth, heads, dim_head, mlp_dim = 128, 2, 4, 128, 256
    b, n = 2, 16

    key = jax.random.PRNGKey(0)
    kp, kx = jax.random.split(key)
    params = init_params(kp, dim, depth, heads, dim_head, mlp_dim)
    x = jax.random.normal(kx, (b, n, dim), jnp.float32)

    fwd = jax.jit(functools.partial(transformer_forward,
                                    heads=heads, dim_head=dim_head))
    out = fwd(params, x)                     # context=None path
    out = jax.block_until_ready(out)

    assert out.shape == (b, n, dim), out.shape
    assert bool(jnp.all(jnp.isfinite(out)))
    print("KERNEL_OK")
</pallas_src>

<mosaic_0001>
module attributes {stable_mosaic.version = 11 : i64} {
  func.func @kernel(%arg0: i32, %arg1: memref<32x128xf32, #tpu.memory_space<vmem>>, %arg2: memref<1x1x128xf32, #tpu.memory_space<vmem>>, %arg3: memref<1x1x128xf32, #tpu.memory_space<vmem>>, %arg4: memref<1x128x1536xbf16, #tpu.memory_space<vmem>>, %arg5: memref<1x512x128xbf16, #tpu.memory_space<vmem>>, %arg6: memref<1x1x128xf32, #tpu.memory_space<vmem>>, %arg7: memref<1x1x128xf32, #tpu.memory_space<vmem>>, %arg8: memref<1x1x128xf32, #tpu.memory_space<vmem>>, %arg9: memref<1x128x256xbf16, #tpu.memory_space<vmem>>, %arg10: memref<1x1x256xf32, #tpu.memory_space<vmem>>, %arg11: memref<1x256x128xbf16, #tpu.memory_space<vmem>>, %arg12: memref<1x1x128xf32, #tpu.memory_space<vmem>>, %arg13: memref<1x128xf32, #tpu.memory_space<vmem>>, %arg14: memref<1x128xf32, #tpu.memory_space<vmem>>, %arg15: memref<32x128xf32, #tpu.memory_space<vmem>>, %arg16: memref<32x128xf32, #tpu.memory_space<vmem>>, %arg17: memref<32x512xf32, #tpu.memory_space<vmem>>) attributes {dimension_semantics = [#tpu.dimension_semantics<arbitrary>], iteration_bounds = array<i64: 2>, scalar_prefetch = 0 : i64, scratch_operands = 2 : i64, tpu.core_type = #tpu.core_type<tc>, window_params = [{pipeline_mode = #tpu.pipeline_mode<synchronous>, transform_indices = @transform_0, window_bounds = array<i64: 32, 128>}, {transform_indices = @transform_1, window_bounds = array<i64: 1, 1, 128>}, {transform_indices = @transform_2, window_bounds = array<i64: 1, 1, 128>}, {transform_indices = @transform_3, window_bounds = array<i64: 1, 128, 1536>}, {transform_indices = @transform_4, window_bounds = array<i64: 1, 512, 128>}, {transform_indices = @transform_5, window_bounds = array<i64: 1, 1, 128>}, {transform_indices = @transform_6, window_bounds = array<i64: 1, 1, 128>}, {transform_indices = @transform_7, window_bounds = array<i64: 1, 1, 128>}, {transform_indices = @transform_8, window_bounds = array<i64: 1, 128, 256>}, {transform_indices = @transform_9, window_bounds = array<i64: 1, 1, 256>}, {transform_indices = @transform_10, window_bounds = array<i64: 1, 256, 128>}, {transform_indices = @transform_11, window_bounds = array<i64: 1, 1, 128>}, {pipeline_mode = #tpu.pipeline_mode<synchronous>, transform_indices = @transform_12, window_bounds = array<i64: 1, 128>}, {pipeline_mode = #tpu.pipeline_mode<synchronous>, transform_indices = @transform_13, window_bounds = array<i64: 1, 128>}, {pipeline_mode = #tpu.pipeline_mode<synchronous>, transform_indices = @transform_14, window_bounds = array<i64: 32, 128>}]} {
    %c0_i32 = arith.constant 0 : i32
    %0 = arith.cmpi eq, %arg0, %c0_i32 : i32
    %1 = arith.extui %0 : i1 to i32
    %c0_i32_0 = arith.constant 0 : i32
    %2 = arith.cmpi ne, %1, %c0_i32_0 : i32
    scf.if %2 {
      %c0_101 = arith.constant 0 : index
      %c0_102 = arith.constant 0 : index
      %246 = vector.load %arg1[%c0_101, %c0_102] : memref<32x128xf32, #tpu.memory_space<vmem>>, vector<32x128xf32>
      %c0_103 = arith.constant 0 : index
      %c0_104 = arith.constant 0 : index
      %247 = vector.load %arg16[%c0_103, %c0_104] : memref<32x128xf32, #tpu.memory_space<vmem>>, vector<32x128xf32>
      tpu.vector_store %arg16[%c0_103, %c0_104], %246 {strides = array<i32>} : memref<32x128xf32, #tpu.memory_space<vmem>>, vector<32x128xf32>,
    } else {
    }
    %c0 = arith.constant 0 : index
    %c0_1 = arith.constant 0 : index
    %3 = vector.load %arg16[%c0, %c0_1] : memref<32x128xf32, #tpu.memory_space<vmem>>, vector<32x128xf32>
    %c0_2 = arith.constant 0 : index
    %c0_3 = arith.constant 0 : index
    %c0_4 = arith.constant 0 : index
    %4 = vector.load %arg2[%c0_2, %c0_3, %c0_4] : memref<1x1x128xf32, #tpu.memory_space<vmem>>, vector<1x1x128xf32>
    %5 = vector.shape_cast %4 : vector<1x1x128xf32> to vector<1x128xf32>
    %c0_5 = arith.constant 0 : index
    %c0_6 = arith.constant 0 : index
    %c0_7 = arith.constant 0 : index
    %6 = vector.load %arg3[%c0_5, %c0_6, %c0_7] : memref<1x1x128xf32, #tpu.memory_space<vmem>>, vector<1x1x128xf32>
    %7 = vector.shape_cast %6 : vector<1x1x128xf32> to vector<1x128xf32>
    %cst = arith.constant dense<0.000000e+00> : vector<32xf32>
    %8 = vector.multi_reduction <add>, %3, %cst [1] : vector<32x128xf32> to vector<32xf32>
    %9 = vector.shape_cast %8 : vector<32xf32> to vector<32x1xf32>
    %cst_8 = arith.constant 1.280000e+02 : f32
    %10 = vector.broadcast %cst_8 : f32 to vector<32x1xf32>
    %11 = arith.divf %9, %10 : vector<32x1xf32>
    %12 = vector.broadcast %11 : vector<32x1xf32> to vector<32x128xf32>
    %13 = arith.subf %3, %12 : vector<32x128xf32>
    %14 = arith.mulf %13, %13 : vector<32x128xf32>
    %cst_9 = arith.constant dense<0.000000e+00> : vector<32xf32>
    %15 = vector.multi_reduction <add>, %14, %cst_9 [1] : vector<32x128xf32> to vector<32xf32>
    %16 = vector.shape_cast %15 : vector<32xf32> to vector<32x1xf32>
    %cst_10 = arith.constant 1.280000e+02 : f32
    %17 = vector.broadcast %cst_10 : f32 to vector<32x1xf32>
    %18 = arith.divf %16, %17 : vector<32x1xf32>
    %cst_11 = arith.constant 9.99999974E-6 : f32
    %19 = vector.broadcast %cst_11 : f32 to vector<32x1xf32>
    %20 = arith.addf %18, %19 : vector<32x1xf32>
    %21 = math.rsqrt %20 : vector<32x1xf32>
    %22 = vector.broadcast %21 : vector<32x1xf32> to vector<32x128xf32>
    %23 = arith.mulf %13, %22 : vector<32x128xf32>
    %24 = vector.broadcast %5 : vector<1x128xf32> to vector<32x128xf32>
    %25 = arith.mulf %23, %24 : vector<32x128xf32>
    %26 = vector.broadcast %7 : vector<1x128xf32> to vector<32x128xf32>
    %27 = arith.addf %25, %26 : vector<32x128xf32>
    %28 = arith.truncf %27 : vector<32x128xf32> to vector<32x128xbf16>
    %c0_12 = arith.constant 0 : index
    %c0_13 = arith.constant 0 : index
    %c0_14 = arith.constant 0 : index
    %29 = vector.load %arg4[%c0_12, %c0_13, %c0_14] : memref<1x128x1536xbf16, #tpu.memory_space<vmem>>, vector<1x128x1536xbf16>
    %30 = vector.shape_cast %29 : vector<1x128x1536xbf16> to vector<128x1536xbf16>
    %cst_15 = arith.constant dense<0.000000e+00> : vector<32x1536xf32>
    %31 = tpu.matmul %28, %30, %cst_15 {dimension_numbers = #tpu.dot_dimension_numbers<[1], [0], [0], [1], [0, 0, 1, 1], [], []>} : vector<32x128xbf16>, vector<128x1536xbf16>, vector<32x1536xf32> -> vector<32x1536xf32>
    %32 = arith.truncf %31 : vector<32x1536xf32> to vector<32x1536xbf16>
    %33 = vector.extract_strided_slice %32 {offsets = [0, 0], sizes = [32, 512], strides = [1, 1]} : vector<32x1536xbf16> to vector<32x512xbf16>
    %34 = vector.extract_strided_slice %32 {offsets = [0, 512], sizes = [32, 512], strides = [1, 1]} : vector<32x1536xbf16> to vector<32x512xbf16>
    %35 = vector.extract_strided_slice %32 {offsets = [0, 1024], sizes = [32, 512], strides = [1, 1]} : vector<32x1536xbf16> to vector<32x512xbf16>
    %36 = vector.extract_strided_slice %33 {offsets = [0, 0], sizes = [16, 512], strides = [1, 1]} : vector<32x512xbf16> to vector<16x512xbf16>
    %37 = vector.extract_strided_slice %34 {offsets = [0, 0], sizes = [16, 512], strides = [1, 1]} : vector<32x512xbf16> to vector<16x512xbf16>
    %38 = vector.extract_strided_slice %35 {offsets = [0, 0], sizes = [16, 512], strides = [1, 1]} : vector<32x512xbf16> to vector<16x512xbf16>
    %39 = vector.extract_strided_slice %36 {offsets = [0, 0], sizes = [16, 128], strides = [1, 1]} : vector<16x512xbf16> to vector<16x128xbf16>
    %40 = vector.extract_strided_slice %37 {offsets = [0, 0], sizes = [16, 128], strides = [1, 1]} : vector<16x512xbf16> to vector<16x128xbf16>
    %41 = vector.extract_strided_slice %38 {offsets = [0, 0], sizes = [16, 128], strides = [1, 1]} : vector<16x512xbf16> to vector<16x128xbf16>
    %cst_16 = arith.constant dense<0.000000e+00> : vector<16x16xf32>
    %42 = tpu.matmul %39, %40, %cst_16 {dimension_numbers = #tpu.dot_dimension_numbers<[1], [1], [0], [0], [0, 0, 1, 0], [], []>} : vector<16x128xbf16>, vector<16x128xbf16>, vector<16x16xf32> -> vector<16x16xf32>
    %cst_17 = arith.constant dense<0xFF800000> : vector<16xf32>
    %43 = vector.multi_reduction <maximumf>, %42, %cst_17 [1] : vector<16x16xf32> to vector<16xf32>
    %44 = vector.shape_cast %43 : vector<16xf32> to vector<16x1xf32>
    %45 = vector.broadcast %44 : vector<16x1xf32> to vector<16x16xf32>
    %46 = arith.subf %42, %45 : vector<16x16xf32>
    %47 = math.exp %46 : vector<16x16xf32>
    %cst_18 = arith.constant dense<0.000000e+00> : vector<16xf32>
    %48 = vector.multi_reduction <add>, %47, %cst_18 [1] : vector<16x16xf32> to vector<16xf32>
    %49 = vector.shape_cast %48 : vector<16xf32> to vector<16x1xf32>
    %50 = tpu.reciprocal %49 {approx = true} : vector<16x1xf32> -> vector<16x1xf32>
    %51 = vector.broadcast %50 : vector<16x1xf32> to vector<16x16xf32>
    %52 = arith.mulf %47, %51 : vector<16x16xf32>
    %53 = arith.truncf %52 : vector<16x16xf32> to vector<16x16xbf16>
    %cst_19 = arith.constant dense<0.000000e+00> : vector<16x128xf32>
    %54 = tpu.matmul %53, %41, %cst_19 {dimension_numbers = #tpu.dot_dimension_numbers<[1], [0], [0], [1], [0, 0, 1, 1], [], []>} : vector<16x16xbf16>, vector<16x128xbf16>, vector<16x128xf32> -> vector<16x128xf32>
    %c0_20 = arith.constant 0 : index
    %c0_21 = arith.constant 0 : index
    %55 = vector.load %arg17[%c0_20, %c0_21] : memref<32x512xf32, #tpu.memory_space<vmem>>, vector<16x128xf32>
    tpu.vector_store %arg17[%c0_20, %c0_21], %54 {strides = array<i32>} : memref<32x512xf32, #tpu.memory_space<vmem>>, vector<16x128xf32>,
    %56 = vector.extract_strided_slice %36 {offsets = [0, 128], sizes = [16, 128], strides = [1, 1]} : vector<16x512xbf16> to vector<16x128xbf16>
    %57 = vector.extract_strided_slice %37 {offsets = [0, 128], sizes = [16, 128], strides = [1, 1]} : vector<16x512xbf16> to vector<16x128xbf16>
    %58 = vector.extract_strided_slice %38 {offsets = [0, 128], sizes = [16, 128], strides = [1, 1]} : vector<16x512xbf16> to vector<16x128xbf16>
    %cst_22 = arith.constant dense<0.000000e+00> : vector<16x16xf32>
    %59 = tpu.matmul %56, %57, %cst_22 {dimension_numbers = #tpu.dot_dimension_numbers<[1], [1], [0], [0], [0, 0, 1, 0], [], []>} : vector<16x128xbf16>, vector<16x128xbf16>, vector<16x16xf32> -> vector<16x16xf32>
    %cst_23 = arith.constant dense<0xFF800000> : vector<16xf32>
    %60 = vector.multi_reduction <maximumf>, %59, %cst_23 [1] : vector<16x16xf32> to vector<16xf32>
    %61 = vector.shape_cast %60 : vector<16xf32> to vector<16x1xf32>
    %62 = vector.broadcast %61 : vector<16x1xf32> to vector<16x16xf32>
    %63 = arith.subf %59, %62 : vector<16x16xf32>
    %64 = math.exp %63 : vector<16x16xf32>
    %cst_24 = arith.constant dense<0.000000e+00> : vector<16xf32>
    %65 = vector.multi_reduction <add>, %64, %cst_24 [1] : vector<16x16xf32> to vector<16xf32>
    %66 = vector.shape_cast %65 : vector<16xf32> to vector<16x1xf32>
    %67 = tpu.reciprocal %66 {approx = true} : vector<16x1xf32> -> vector<16x1xf32>
    %68 = vector.broadcast %67 : vector<16x1xf32> to vector<16x16xf32>
    %69 = arith.mulf %64, %68 : vector<16x16xf32>
    %70 = arith.truncf %69 : vector<16x16xf32> to vector<16x16xbf16>
    %cst_25 = arith.constant dense<0.000000e+00> : vector<16x128xf32>
    %71 = tpu.matmul %70, %58, %cst_25 {dimension_numbers = #tpu.dot_dimension_numbers<[1], [0], [0], [1], [0, 0, 1, 1], [], []>} : vector<16x16xbf16>, vector<16x128xbf16>, vector<16x128xf32> -> vector<16x128xf32>
    %c0_26 = arith.constant 0 : index
    %c128 = arith.constant 128 : index
    %72 = vector.load %arg17[%c0_26, %c128] : memref<32x512xf32, #tpu.memory_space<vmem>>, vector<16x128xf32>
    tpu.vector_store %arg17[%c0_26, %c128], %71 {strides = array<i32>} : memref<32x512xf32, #tpu.memory_space<vmem>>, vector<16x128xf32>,
    %73 = vector.extract_strided_slice %36 {offsets = [0, 256], sizes = [16, 128], strides = [1, 1]} : vector<16x512xbf16> to vector<16x128xbf16>
    %74 = vector.extract_strided_slice %37 {offsets = [0, 256], sizes = [16, 128], strides = [1, 1]} : vector<16x512xbf16> to vector<16x128xbf16>
    %75 = vector.extract_strided_slice %38 {offsets = [0, 256], sizes = [16, 128], strides = [1, 1]} : vector<16x512xbf16> to vector<16x128xbf16>
    %cst_27 = arith.constant dense<0.000000e+00> : vector<16x16xf32>
    %76 = tpu.matmul %73, %74, %cst_27 {dimension_numbers = #tpu.dot_dimension_numbers<[1], [1], [0], [0], [0, 0, 1, 0], [], []>} : vector<16x128xbf16>, vector<16x128xbf16>, vector<16x16xf32> -> vector<16x16xf32>
    %cst_28 = arith.constant dense<0xFF800000> : vector<16xf32>
    %77 = vector.multi_reduction <maximumf>, %76, %cst_28 [1] : vector<16x16xf32> to vector<16xf32>
    %78 = vector.shape_cast %77 : vector<16xf32> to vector<16x1xf32>
    %79 = vector.broadcast %78 : vector<16x1xf32> to vector<16x16xf32>
    %80 = arith.subf %76, %79 : vector<16x16xf32>
    %81 = math.exp %80 : vector<16x16xf32>
    %cst_29 = arith.constant dense<0.000000e+00> : vector<16xf32>
    %82 = vector.multi_reduction <add>, %81, %cst_29 [1] : vector<16x16xf32> to vector<16xf32>
    %83 = vector.shape_cast %82 : vector<16xf32> to vector<16x1xf32>
    %84 = tpu.reciprocal %83 {approx = true} : vector<16x1xf32> -> vector<16x1xf32>
    %85 = vector.broadcast %84 : vector<16x1xf32> to vector<16x16xf32>
    %86 = arith.mulf %81, %85 : vector<16x16xf32>
    %87 = arith.truncf %86 : vector<16x16xf32> to vector<16x16xbf16>
    %cst_30 = arith.constant dense<0.000000e+00> : vector<16x128xf32>
    %88 = tpu.matmul %87, %75, %cst_30 {dimension_numbers = #tpu.dot_dimension_numbers<[1], [0], [0], [1], [0, 0, 1, 1], [], []>} : vector<16x16xbf16>, vector<16x128xbf16>, vector<16x128xf32> -> vector<16x128xf32>
    %c0_31 = arith.constant 0 : index
    %c256 = arith.constant 256 : index
    %89 = vector.load %arg17[%c0_31, %c256] : memref<32x512xf32, #tpu.memory_space<vmem>>, vector<16x128xf32>
    tpu.vector_store %arg17[%c0_31, %c256], %88 {strides = array<i32>} : memref<32x512xf32, #tpu.memory_space<vmem>>, vector<16x128xf32>,
    %90 = vector.extract_strided_slice %36 {offsets = [0, 384], sizes = [16, 128], strides = [1, 1]} : vector<16x512xbf16> to vector<16x128xbf16>
    %91 = vector.extract_strided_slice %37 {offsets = [0, 384], sizes = [16, 128], strides = [1, 1]} : vector<16x512xbf16> to vector<16x128xbf16>
    %92 = vector.extract_strided_slice %38 {offsets = [0, 384], sizes = [16, 128], strides = [1, 1]} : vector<16x512xbf16> to vector<16x128xbf16>
    %cst_32 = arith.constant dense<0.000000e+00> : vector<16x16xf32>
    %93 = tpu.matmul %90, %91, %cst_32 {dimension_numbers = #tpu.dot_dimension_numbers<[1], [1], [0], [0], [0, 0, 1, 0], [], []>} : vector<16x128xbf16>, vector<16x128xbf16>, vector<16x16xf32> -> vector<16x16xf32>
    %cst_33 = arith.constant dense<0xFF800000> : vector<16xf32>
    %94 = vector.multi_reduction <maximumf>, %93, %cst_33 [1] : vector<16x16xf32> to vector<16xf32>
    %95 = vector.shape_cast %94 : vector<16xf32> to vector<16x1xf32>
    %96 = vector.broadcast %95 : vector<16x1xf32> to vector<16x16xf32>
    %97 = arith.subf %93, %96 : vector<16x16xf32>
    %98 = math.exp %97 : vector<16x16xf32>
    %cst_34 = arith.constant dense<0.000000e+00> : vector<16xf32>
    %99 = vector.multi_reduction <add>, %98, %cst_34 [1] : vector<16x16xf32> to vector<16xf32>
    %100 = vector.shape_cast %99 : vector<16xf32> to vector<16x1xf32>
    %101 = tpu.reciprocal %100 {approx = true} : vector<16x1xf32> -> vector<16x1xf32>
    %102 = vector.broadcast %101 : vector<16x1xf32> to vector<16x16xf32>
    %103 = arith.mulf %98, %102 : vector<16x16xf32>
    %104 = arith.truncf %103 : vector<16x16xf32> to vector<16x16xbf16>
    %cst_35 = arith.constant dense<0.000000e+00> : vector<16x128xf32>
    %105 = tpu.matmul %104, %92, %cst_35 {dimension_numbers = #tpu.dot_dimension_numbers<[1], [0], [0], [1], [0, 0, 1, 1], [], []>} : vector<16x16xbf16>, vector<16x128xbf16>, vector<16x128xf32> -> vector<16x128xf32>
    %c0_36 = arith.constant 0 : index
    %c384 = arith.constant 384 : index
    %106 = vector.load %arg17[%c0_36, %c384] : memref<32x512xf32, #tpu.memory_space<vmem>>, vector<16x128xf32>
    tpu.vector_store %arg17[%c0_36, %c384], %105 {strides = array<i32>} : memref<32x512xf32, #tpu.memory_space<vmem>>, vector<16x128xf32>,
    %107 = vector.extract_strided_slice %33 {offsets = [16, 0], sizes = [16, 512], strides = [1, 1]} : vector<32x512xbf16> to vector<16x512xbf16>
    %108 = vector.extract_strided_slice %34 {offsets = [16, 0], sizes = [16, 512], strides = [1, 1]} : vector<32x512xbf16> to vector<16x512xbf16>
    %109 = vector.extract_strided_slice %35 {offsets = [16, 0], sizes = [16, 512], strides = [1, 1]} : vector<32x512xbf16> to vector<16x512xbf16>
    %110 = vector.extract_strided_slice %107 {offsets = [0, 0], sizes = [16, 128], strides = [1, 1]} : vector<16x512xbf16> to vector<16x128xbf16>
    %111 = vector.extract_strided_slice %108 {offsets = [0, 0], sizes = [16, 128], strides = [1, 1]} : vector<16x512xbf16> to vector<16x128xbf16>
    %112 = vector.extract_strided_slice %109 {offsets = [0, 0], sizes = [16, 128], strides = [1, 1]} : vector<16x512xbf16> to vector<16x128xbf16>
    %cst_37 = arith.constant dense<0.000000e+00> : vector<16x16xf32>
    %113 = tpu.matmul %110, %111, %cst_37 {dimension_numbers = #tpu.dot_dimension_numbers<[1], [1], [0], [0], [0, 0, 1, 0], [], []>} : vector<16x128xbf16>, vector<16x128xbf16>, vector<16x16xf32> -> vector<16x16xf32>
    %cst_38 = arith.constant dense<0xFF800000> : vector<16xf32>
    %114 = vector.multi_reduction <maximumf>, %113, %cst_38 [1] : vector<16x16xf32> to vector<16xf32>
    %115 = vector.shape_cast %114 : vector<16xf32> to vector<16x1xf32>
    %116 = vector.broadcast %115 : vector<16x1xf32> to vector<16x16xf32>
    %117 = arith.subf %113, %116 : vector<16x16xf32>
    %118 = math.exp %117 : vector<16x16xf32>
    %cst_39 = arith.constant dense<0.000000e+00> : vector<16xf32>
    %119 = vector.multi_reduction <add>, %118, %cst_39 [1] : vector<16x16xf32> to vector<16xf32>
    %120 = vector.shape_cast %119 : vector<16xf32> to vector<16x1xf32>
    %121 = tpu.reciprocal %120 {approx = true} : vector<16x1xf32> -> vector<16x1xf32>
    %122 = vector.broadcast %121 : vector<16x1xf32> to vector<16x16xf32>
    %123 = arith.mulf %118, %122 : vector<16x16xf32>
    %124 = arith.truncf %123 : vector<16x16xf32> to vector<16x16xbf16>
    %cst_40 = arith.constant dense<0.000000e+00> : vector<16x128xf32>
    %125 = tpu.matmul %124, %112, %cst_40 {dimension_numbers = #tpu.dot_dimension_numbers<[1], [0], [0], [1], [0, 0, 1, 1], [], []>} : vector<16x16xbf16>, vector<16x128xbf16>, vector<16x128xf32> -> vector<16x128xf32>
    %c16 = arith.constant 16 : index
    %c0_41 = arith.constant 0 : index
    %126 = vector.load %arg17[%c16, %c0_41] : memref<32x512xf32, #tpu.memory_space<vmem>>, vector<16x128xf32>
    tpu.vector_store %arg17[%c16, %c0_41], %125 {strides = array<i32>} : memref<32x512xf32, #tpu.memory_space<vmem>>, vector<16x128xf32>,
    %127 = vector.extract_strided_slice %107 {offsets = [0, 128], sizes = [16, 128], strides = [1, 1]} : vector<16x512xbf16> to vector<16x128xbf16>
    %128 = vector.extract_strided_slice %108 {offsets = [0, 128], sizes = [16, 128], strides = [1, 1]} : vector<16x512xbf16> to vector<16x128xbf16>
    %129 = vector.extract_strided_slice %109 {offsets = [0, 128], sizes = [16, 128], strides = [1, 1]} : vector<16x512xbf16> to vector<16x128xbf16>
    %cst_42 = arith.constant dense<0.000000e+00> : vector<16x16xf32>
    %130 = tpu.matmul %127, %128, %cst_42 {dimension_numbers = #tpu.dot_dimension_numbers<[1], [1], [0], [0], [0, 0, 1, 0], [], []>} : vector<16x128xbf16>, vector<16x128xbf16>, vector<16x16xf32> -> vector<16x16xf32>
    %cst_43 = arith.constant dense<0xFF800000> : vector<16xf32>
    %131 = vector.multi_reduction <maximumf>, %130, %cst_43 [1] : vector<16x16xf32> to vector<16xf32>
    %132 = vector.shape_cast %131 : vector<16xf32> to vector<16x1xf32>
    %133 = vector.broadcast %132 : vector<16x1xf32> to vector<16x16xf32>
    %134 = arith.subf %130, %133 : vector<16x16xf32>
    %135 = math.exp %134 : vector<16x16xf32>
    %cst_44 = arith.constant dense<0.000000e+00> : vector<16xf32>
    %136 = vector.multi_reduction <add>, %135, %cst_44 [1] : vector<16x16xf32> to vector<16xf32>
    %137 = vector.shape_cast %136 : vector<16xf32> to vector<16x1xf32>
    %138 = tpu.reciprocal %137 {approx = true} : vector<16x1xf32> -> vector<16x1xf32>
    %139 = vector.broadcast %138 : vector<16x1xf32> to vector<16x16xf32>
    %140 = arith.mulf %135, %139 : vector<16x16xf32>
    %141 = arith.truncf %140 : vector<16x16xf32> to vector<16x16xbf16>
    %cst_45 = arith.constant dense<0.000000e+00> : vector<16x128xf32>
    %142 = tpu.matmul %141, %129, %cst_45 {dimension_numbers = #tpu.dot_dimension_numbers<[1], [0], [0], [1], [0, 0, 1, 1], [], []>} : vector<16x16xbf16>, vector<16x128xbf16>, vector<16x128xf32> -> vector<16x128xf32>
    %c16_46 = arith.constant 16 : index
    %c128_47 = arith.constant 128 : index
    %143 = vector.load %arg17[%c16_46, %c128_47] : memref<32x512xf32, #tpu.memory_space<vmem>>, vector<16x128xf32>
    tpu.vector_store %arg17[%c16_46, %c128_47], %142 {strides = array<i32>} : memref<32x512xf32, #tpu.memory_space<vmem>>, vector<16x128xf32>,
    %144 = vector.extract_strided_slice %107 {offsets = [0, 256], sizes = [16, 128], strides = [1, 1]} : vector<16x512xbf16> to vector<16x128xbf16>
    %145 = vector.extract_strided_slice %108 {offsets = [0, 256], sizes = [16, 128], strides = [1, 1]} : vector<16x512xbf16> to vector<16x128xbf16>
    %146 = vector.extract_strided_slice %109 {offsets = [0, 256], sizes = [16, 128], strides = [1, 1]} : vector<16x512xbf16> to vector<16x128xbf16>
    %cst_48 = arith.constant dense<0.000000e+00> : vector<16x16xf32>
    %147 = tpu.matmul %144, %145, %cst_48 {dimension_numbers = #tpu.dot_dimension_numbers<[1], [1], [0], [0], [0, 0, 1, 0], [], []>} : vector<16x128xbf16>, vector<16x128xbf16>, vector<16x16xf32> -> vector<16x16xf32>
    %cst_49 = arith.constant dense<0xFF800000> : vector<16xf32>
    %148 = vector.multi_reduction <maximumf>, %147, %cst_49 [1] : vector<16x16xf32> to vector<16xf32>
    %149 = vector.shape_cast %148 : vector<16xf32> to vector<16x1xf32>
    %150 = vector.broadcast %149 : vector<16x1xf32> to vector<16x16xf32>
    %151 = arith.subf %147, %150 : vector<16x16xf32>
    %152 = math.exp %151 : vector<16x16xf32>
    %cst_50 = arith.constant dense<0.000000e+00> : vector<16xf32>
    %153 = vector.multi_reduction <add>, %152, %cst_50 [1] : vector<16x16xf32> to vector<16xf32>
    %154 = vector.shape_cast %153 : vector<16xf32> to vector<16x1xf32>
    %155 = tpu.reciprocal %154 {approx = true} : vector<16x1xf32> -> vector<16x1xf32>
    %156 = vector.broadcast %155 : vector<16x1xf32> to vector<16x16xf32>
    %157 = arith.mulf %152, %156 : vector<16x16xf32>
    %158 = arith.truncf %157 : vector<16x16xf32> to vector<16x16xbf16>
    %cst_51 = arith.constant dense<0.000000e+00> : vector<16x128xf32>
    %159 = tpu.matmul %158, %146, %cst_51 {dimension_numbers = #tpu.dot_dimension_numbers<[1], [0], [0], [1], [0, 0, 1, 1], [], []>} : vector<16x16xbf16>, vector<16x128xbf16>, vector<16x128xf32> -> vector<16x128xf32>
    %c16_52 = arith.constant 16 : index
    %c256_53 = arith.constant 256 : index
    %160 = vector.load %arg17[%c16_52, %c256_53] : memref<32x512xf32, #tpu.memory_space<vmem>>, vector<16x128xf32>
    tpu.vector_store %arg17[%c16_52, %c256_53], %159 {strides = array<i32>} : memref<32x512xf32, #tpu.memory_space<vmem>>, vector<16x128xf32>,
    %161 = vector.extract_strided_slice %107 {offsets = [0, 384], sizes = [16, 128], strides = [1, 1]} : vector<16x512xbf16> to vector<16x128xbf16>
    %162 = vector.extract_strided_slice %108 {offsets = [0, 384], sizes = [16, 128], strides = [1, 1]} : vector<16x512xbf16> to vector<16x128xbf16>
    %163 = vector.extract_strided_slice %109 {offsets = [0, 384], sizes = [16, 128], strides = [1, 1]} : vector<16x512xbf16> to vector<16x128xbf16>
    %cst_54 = arith.constant dense<0.000000e+00> : vector<16x16xf32>
    %164 = tpu.matmul %161, %162, %cst_54 {dimension_numbers = #tpu.dot_dimension_numbers<[1], [1], [0], [0], [0, 0, 1, 0], [], []>} : vector<16x128xbf16>, vector<16x128xbf16>, vector<16x16xf32> -> vector<16x16xf32>
    %cst_55 = arith.constant dense<0xFF800000> : vector<16xf32>
    %165 = vector.multi_reduction <maximumf>, %164, %cst_55 [1] : vector<16x16xf32> to vector<16xf32>
    %166 = vector.shape_cast %165 : vector<16xf32> to vector<16x1xf32>
    %167 = vector.broadcast %166 : vector<16x1xf32> to vector<16x16xf32>
    %168 = arith.subf %164, %167 : vector<16x16xf32>
    %169 = math.exp %168 : vector<16x16xf32>
    %cst_56 = arith.constant dense<0.000000e+00> : vector<16xf32>
    %170 = vector.multi_reduction <add>, %169, %cst_56 [1] : vector<16x16xf32> to vector<16xf32>
    %171 = vector.shape_cast %170 : vector<16xf32> to vector<16x1xf32>
    %172 = tpu.reciprocal %171 {approx = true} : vector<16x1xf32> -> vector<16x1xf32>
    %173 = vector.broadcast %172 : vector<16x1xf32> to vector<16x16xf32>
    %174 = arith.mulf %169, %173 : vector<16x16xf32>
    %175 = arith.truncf %174 : vector<16x16xf32> to vector<16x16xbf16>
    %cst_57 = arith.constant dense<0.000000e+00> : vector<16x128xf32>
    %176 = tpu.matmul %175, %163, %cst_57 {dimension_numbers = #tpu.dot_dimension_numbers<[1], [0], [0], [1], [0, 0, 1, 1], [], []>} : vector<16x16xbf16>, vector<16x128xbf16>, vector<16x128xf32> -> vector<16x128xf32>
    %c16_58 = arith.constant 16 : index
    %c384_59 = arith.constant 384 : index
    %177 = vector.load %arg17[%c16_58, %c384_59] : memref<32x512xf32, #tpu.memory_space<vmem>>, vector<16x128xf32>
    tpu.vector_store %arg17[%c16_58, %c384_59], %176 {strides = array<i32>} : memref<32x512xf32, #tpu.memory_space<vmem>>, vector<16x128xf32>,
    %c0_60 = arith.constant 0 : index
    %c0_61 = arith.constant 0 : index
    %178 = vector.load %arg17[%c0_60, %c0_61] : memref<32x512xf32, #tpu.memory_space<vmem>>, vector<32x512xf32>
    %179 = arith.truncf %178 : vector<32x512xf32> to vector<32x512xbf16>
    %c0_62 = arith.constant 0 : index
    %c0_63 = arith.constant 0 : index
    %c0_64 = arith.constant 0 : index
    %180 = vector.load %arg5[%c0_62, %c0_63, %c0_64] : memref<1x512x128xbf16, #tpu.memory_space<vmem>>, vector<1x512x128xbf16>
    %181 = vector.shape_cast %180 : vector<1x512x128xbf16> to vector<512x128xbf16>
    %cst_65 = arith.constant dense<0.000000e+00> : vector<32x128xf32>
    %182 = tpu.matmul %179, %181, %cst_65 {dimension_numbers = #tpu.dot_dimension_numbers<[1], [0], [0], [1], [0, 0, 1, 1], [], []>} : vector<32x512xbf16>, vector<512x128xbf16>, vector<32x128xf32> -> vector<32x128xf32>
    %c0_66 = arith.constant 0 : index
    %c0_67 = arith.constant 0 : index
    %c0_68 = arith.constant 0 : index
    %183 = vector.load %arg6[%c0_66, %c0_67, %c0_68] : memref<1x1x128xf32, #tpu.memory_space<vmem>>, vector<1x1x128xf32>
    %184 = vector.shape_cast %183 : vector<1x1x128xf32> to vector<1x128xf32>
    %185 = vector.broadcast %184 : vector<1x128xf32> to vector<32x128xf32>
    %186 = arith.addf %182, %185 : vector<32x128xf32>
    %187 = arith.addf %3, %186 : vector<32x128xf32>
    %c0_69 = arith.constant 0 : index
    %c0_70 = arith.constant 0 : index
    %c0_71 = arith.constant 0 : index
    %188 = vector.load %arg7[%c0_69, %c0_70, %c0_71] : memref<1x1x128xf32, #tpu.memory_space<vmem>>, vector<1x1x128xf32>
    %189 = vector.shape_cast %188 : vector<1x1x128xf32> to vector<1x128xf32>
    %c0_72 = arith.constant 0 : index
    %c0_73 = arith.constant 0 : index
    %c0_74 = arith.constant 0 : index
    %190 = vector.load %arg8[%c0_72, %c0_73, %c0_74] : memref<1x1x128xf32, #tpu.memory_space<vmem>>, vector<1x1x128xf32>
    %191 = vector.shape_cast %190 : vector<1x1x128xf32> to vector<1x128xf32>
    %cst_75 = arith.constant dense<0.000000e+00> : vector<32xf32>
    %192 = vector.multi_reduction <add>, %187, %cst_75 [1] : vector<32x128xf32> to vector<32xf32>
    %193 = vector.shape_cast %192 : vector<32xf32> to vector<32x1xf32>
    %cst_76 = arith.constant 1.280000e+02 : f32
    %194 = vector.broadcast %cst_76 : f32 to vector<32x1xf32>
    %195 = arith.divf %193, %194 : vector<32x1xf32>
    %196 = vector.broadcast %195 : vector<32x1xf32> to vector<32x128xf32>
    %197 = arith.subf %187, %196 : vector<32x128xf32>
    %198 = arith.mulf %197, %197 : vector<32x128xf32>
    %cst_77 = arith.constant dense<0.000000e+00> : vector<32xf32>
    %199 = vector.multi_reduction <add>, %198, %cst_77 [1] : vector<32x128xf32> to vector<32xf32>
    %200 = vector.shape_cast %199 : vector<32xf32> to vector<32x1xf32>
    %cst_78 = arith.constant 1.280000e+02 : f32
    %201 = vector.broadcast %cst_78 : f32 to vector<32x1xf32>
    %202 = arith.divf %200, %201 : vector<32x1xf32>
    %cst_79 = arith.constant 9.99999974E-6 : f32
    %203 = vector.broadcast %cst_79 : f32 to vector<32x1xf32>
    %204 = arith.addf %202, %203 : vector<32x1xf32>
    %205 = math.rsqrt %204 : vector<32x1xf32>
    %206 = vector.broadcast %205 : vector<32x1xf32> to vector<32x128xf32>
    %207 = arith.mulf %197, %206 : vector<32x128xf32>
    %208 = vector.broadcast %189 : vector<1x128xf32> to vector<32x128xf32>
    %209 = arith.mulf %207, %208 : vector<32x128xf32>
    %210 = vector.broadcast %191 : vector<1x128xf32> to vector<32x128xf32>
    %211 = arith.addf %209, %210 : vector<32x128xf32>
    %212 = arith.truncf %211 : vector<32x128xf32> to vector<32x128xbf16>
    %c0_80 = arith.constant 0 : index
    %c0_81 = arith.constant 0 : index
    %c0_82 = arith.constant 0 : index
    %213 = vector.load %arg9[%c0_80, %c0_81, %c0_82] : memref<1x128x256xbf16, #tpu.memory_space<vmem>>, vector<1x128x256xbf16>
    %214 = vector.shape_cast %213 : vector<1x128x256xbf16> to vector<128x256xbf16>
    %cst_83 = arith.constant dense<0.000000e+00> : vector<32x256xf32>
    %215 = tpu.matmul %212, %214, %cst_83 {dimension_numbers = #tpu.dot_dimension_numbers<[1], [0], [0], [1], [0, 0, 1, 1], [], []>} : vector<32x128xbf16>, vector<128x256xbf16>, vector<32x256xf32> -> vector<32x256xf32>
    %c0_84 = arith.constant 0 : index
    %c0_85 = arith.constant 0 : index
    %c0_86 = arith.constant 0 : index
    %216 = vector.load %arg10[%c0_84, %c0_85, %c0_86] : memref<1x1x256xf32, #tpu.memory_space<vmem>>, vector<1x1x256xf32>
    %217 = vector.shape_cast %216 : vector<1x1x256xf32> to vector<1x256xf32>
    %218 = vector.broadcast %217 : vector<1x256xf32> to vector<32x256xf32>
    %219 = arith.addf %215, %218 : vector<32x256xf32>
    %cst_87 = arith.constant 5.000000e-01 : f32
    %220 = vector.broadcast %cst_87 : f32 to vector<32x256xf32>
    %221 = arith.mulf %220, %219 : vector<32x256xf32>
    %cst_88 = arith.constant 4.471500e-02 : f32
    %222 = vector.broadcast %cst_88 : f32 to vector<32x256xf32>
    %223 = arith.mulf %222, %219 : vector<32x256xf32>
    %224 = arith.mulf %223, %219 : vector<32x256xf32>
    %225 = arith.mulf %224, %219 : vector<32x256xf32>
    %226 = arith.addf %219, %225 : vector<32x256xf32>
    %cst_89 = arith.constant 0.797884583 : f32
    %227 = vector.broadcast %cst_89 : f32 to vector<32x256xf32>
    %228 = arith.mulf %227, %226 : vector<32x256xf32>
    %229 = math.tanh %228 : vector<32x256xf32>
    %cst_90 = arith.constant 1.000000e+00 : f32
    %230 = vector.broadcast %cst_90 : f32 to vector<32x256xf32>
    %231 = arith.addf %230, %229 : vector<32x256xf32>
    %232 = arith.mulf %221, %231 : vector<32x256xf32>
    %233 = arith.truncf %232 : vector<32x256xf32> to vector<32x256xbf16>
    %c0_91 = arith.constant 0 : index
    %c0_92 = arith.constant 0 : index
    %c0_93 = arith.constant 0 : index
    %234 = vector.load %arg11[%c0_91, %c0_92, %c0_93] : memref<1x256x128xbf16, #tpu.memory_space<vmem>>, vector<1x256x128xbf16>
    %235 = vector.shape_cast %234 : vector<1x256x128xbf16> to vector<256x128xbf16>
    %cst_94 = arith.constant dense<0.000000e+00> : vector<32x128xf32>
    %236 = tpu.matmul %233, %235, %cst_94 {dimension_numbers = #tpu.dot_dimension_numbers<[1], [0], [0], [1], [0, 0, 1, 1], [], []>} : vector<32x256xbf16>, vector<256x128xbf16>, vector<32x128xf32> -> vector<32x128xf32>
    %c0_95 = arith.constant 0 : index
    %c0_96 = arith.constant 0 : index
    %c0_97 = arith.constant 0 : index
    %237 = vector.load %arg12[%c0_95, %c0_96, %c0_97] : memref<1x1x128xf32, #tpu.memory_space<vmem>>, vector<1x1x128xf32>
    %238 = vector.shape_cast %237 : vector<1x1x128xf32> to vector<1x128xf32>
    %239 = vector.broadcast %238 : vector<1x128xf32> to vector<32x128xf32>
    %240 = arith.addf %236, %239 : vector<32x128xf32>
    %241 = arith.addf %187, %240 : vector<32x128xf32>
    %c0_98 = arith.constant 0 : index
    %c0_99 = arith.constant 0 : index
    %242 = vector.load %arg16[%c0_98, %c0_99] : memref<32x128xf32, #tpu.memory_space<vmem>>, vector<32x128xf32>
    tpu.vector_store %arg16[%c0_98, %c0_99], %241 {strides = array<i32>} : memref<32x128xf32, #tpu.memory_space<vmem>>, vector<32x128xf32>,
    %c1_i32 = arith.constant 1 : i32
    %243 = arith.cmpi eq, %arg0, %c1_i32 : i32
    %244 = arith.extui %243 : i1 to i32
    %c0_i32_100 = arith.constant 0 : i32
    %245 = arith.cmpi ne, %244, %c0_i32_100 : i32
    scf.if %245 {
      %c0_101 = arith.constant 0 : index
      %c0_102 = arith.constant 0 : index
      %246 = vector.load %arg13[%c0_101, %c0_102] : memref<1x128xf32, #tpu.memory_space<vmem>>, vector<1x128xf32>
      %c0_103 = arith.constant 0 : index
      %c0_104 = arith.constant 0 : index
      %247 = vector.load %arg14[%c0_103, %c0_104] : memref<1x128xf32, #tpu.memory_space<vmem>>, vector<1x128xf32>
      %cst_105 = arith.constant dense<0.000000e+00> : vector<32xf32>
      %248 = vector.multi_reduction <add>, %241, %cst_105 [1] : vector<32x128xf32> to vector<32xf32>
      %249 = vector.shape_cast %248 : vector<32xf32> to vector<32x1xf32>
      %cst_106 = arith.constant 1.280000e+02 : f32
      %250 = vector.broadcast %cst_106 : f32 to vector<32x1xf32>
      %251 = arith.divf %249, %250 : vector<32x1xf32>
      %252 = vector.broadcast %251 : vector<32x1xf32> to vector<32x128xf32>
      %253 = arith.subf %241, %252 : vector<32x128xf32>
      %254 = arith.mulf %253, %253 : vector<32x128xf32>
      %cst_107 = arith.constant dense<0.000000e+00> : vector<32xf32>
      %255 = vector.multi_reduction <add>, %254, %cst_107 [1] : vector<32x128xf32> to vector<32xf32>
      %256 = vector.shape_cast %255 : vector<32xf32> to vector<32x1xf32>
      %cst_108 = arith.constant 1.280000e+02 : f32
      %257 = vector.broadcast %cst_108 : f32 to vector<32x1xf32>
      %258 = arith.divf %256, %257 : vector<32x1xf32>
      %cst_109 = arith.constant 9.99999974E-6 : f32
      %259 = vector.broadcast %cst_109 : f32 to vector<32x1xf32>
      %260 = arith.addf %258, %259 : vector<32x1xf32>
      %261 = math.rsqrt %260 : vector<32x1xf32>
      %262 = vector.broadcast %261 : vector<32x1xf32> to vector<32x128xf32>
      %263 = arith.mulf %253, %262 : vector<32x128xf32>
      %264 = vector.broadcast %246 : vector<1x128xf32> to vector<32x128xf32>
      %265 = arith.mulf %263, %264 : vector<32x128xf32>
      %266 = vector.broadcast %247 : vector<1x128xf32> to vector<32x128xf32>
      %267 = arith.addf %265, %266 : vector<32x128xf32>
      %c0_110 = arith.constant 0 : index
      %c0_111 = arith.constant 0 : index
      %268 = vector.load %arg15[%c0_110, %c0_111] : memref<32x128xf32, #tpu.memory_space<vmem>>, vector<32x128xf32>
      tpu.vector_store %arg15[%c0_110, %c0_111], %267 {strides = array<i32>} : memref<32x128xf32, #tpu.memory_space<vmem>>, vector<32x128xf32>,
    } else {
    }
    return
  }
  func.func @transform_0(%arg0: i32) -> (i32, i32) {
    %c0_i32 = arith.constant 0 : i32
    %c0_i32_0 = arith.constant 0 : i32
    %c0_i32_1 = arith.constant 0 : i32
    return %c0_i32, %c0_i32_0 : i32, i32
  }
  func.func @transform_1(%arg0: i32) -> (i32, i32, i32) {
    %c0_i32 = arith.constant 0 : i32
    %c0_i32_0 = arith.constant 0 : i32
    %c0_i32_1 = arith.constant 0 : i32
    return %arg0, %c0_i32, %c0_i32_0 : i32, i32, i32
  }
  func.func @transform_2(%arg0: i32) -> (i32, i32, i32) {
    %c0_i32 = arith.constant 0 : i32
    %c0_i32_0 = arith.constant 0 : i32
    %c0_i32_1 = arith.constant 0 : i32
    return %arg0, %c0_i32, %c0_i32_0 : i32, i32, i32
  }
  func.func @transform_3(%arg0: i32) -> (i32, i32, i32) {
    %c0_i32 = arith.constant 0 : i32
    %c0_i32_0 = arith.constant 0 : i32
    %c0_i32_1 = arith.constant 0 : i32
    return %arg0, %c0_i32, %c0_i32_0 : i32, i32, i32
  }
  func.func @transform_4(%arg0: i32) -> (i32, i32, i32) {
    %c0_i32 = arith.constant 0 : i32
    %c0_i32_0 = arith.constant 0 : i32
    %c0_i32_1 = arith.constant 0 : i32
    return %arg0, %c0_i32, %c0_i32_0 : i32, i32, i32
  }
  func.func @transform_5(%arg0: i32) -> (i32, i32, i32) {
    %c0_i32 = arith.constant 0 : i32
    %c0_i32_0 = arith.constant 0 : i32
    %c0_i32_1 = arith.constant 0 : i32
    return %arg0, %c0_i32, %c0_i32_0 : i32, i32, i32
  }
  func.func @transform_6(%arg0: i32) -> (i32, i32, i32) {
    %c0_i32 = arith.constant 0 : i32
    %c0_i32_0 = arith.constant 0 : i32
    %c0_i32_1 = arith.constant 0 : i32
    return %arg0, %c0_i32, %c0_i32_0 : i32, i32, i32
  }
  func.func @transform_7(%arg0: i32) -> (i32, i32, i32) {
    %c0_i32 = arith.constant 0 : i32
    %c0_i32_0 = arith.constant 0 : i32
    %c0_i32_1 = arith.constant 0 : i32
    return %arg0, %c0_i32, %c0_i32_0 : i32, i32, i32
  }
  func.func @transform_8(%arg0: i32) -> (i32, i32, i32) {
    %c0_i32 = arith.constant 0 : i32
    %c0_i32_0 = arith.constant 0 : i32
    %c0_i32_1 = arith.constant 0 : i32
    return %arg0, %c0_i32, %c0_i32_0 : i32, i32, i32
  }
  func.func @transform_9(%arg0: i32) -> (i32, i32, i32) {
    %c0_i32 = arith.constant 0 : i32
    %c0_i32_0 = arith.constant 0 : i32
    %c0_i32_1 = arith.constant 0 : i32
    return %arg0, %c0_i32, %c0_i32_0 : i32, i32, i32
  }
  func.func @transform_10(%arg0: i32) -> (i32, i32, i32) {
    %c0_i32 = arith.constant 0 : i32
    %c0_i32_0 = arith.constant 0 : i32
    %c0_i32_1 = arith.constant 0 : i32
    return %arg0, %c0_i32, %c0_i32_0 : i32, i32, i32
  }
  func.func @transform_11(%arg0: i32) -> (i32, i32, i32) {
    %c0_i32 = arith.constant 0 : i32
    %c0_i32_0 = arith.constant 0 : i32
    %c0_i32_1 = arith.constant 0 : i32
    return %arg0, %c0_i32, %c0_i32_0 : i32, i32, i32
  }
  func.func @transform_12(%arg0: i32) -> (i32, i32) {
    %c0_i32 = arith.constant 0 : i32
    %c0_i32_0 = arith.constant 0 : i32
    %c0_i32_1 = arith.constant 0 : i32
    return %c0_i32, %c0_i32_0 : i32, i32
  }
  func.func @transform_13(%arg0: i32) -> (i32, i32) {
    %c0_i32 = arith.constant 0 : i32
    %c0_i32_0 = arith.constant 0 : i32
    %c0_i32_1 = arith.constant 0 : i32
    return %c0_i32, %c0_i32_0 : i32, i32
  }
  func.func @transform_14(%arg0: i32) -> (i32, i32) {
    %c0_i32 = arith.constant 0 : i32
    %c0_i32_0 = arith.constant 0 : i32
    %c0_i32_1 = arith.constant 0 : i32
    return %c0_i32, %c0_i32_0 : i32, i32
  }
}

</mosaic_0001>

<bundles_post_ra>
// kernel: transformer_forward.1
= control target key start
LH: loop header
LB: loop body
LE: loop exit
PB: predicated region body
PF: predicated region fallthrough
CT: control target
= control target key end

     0   :  { %s6117_s0 = inlined_call_operand.hbm [shape: f32[32,128], index: 0, kind: input, shape index: {}]   ;;  %s6118_s1 = inlined_call_operand.vmem [shape: f32[2,1,128], index: 1, kind: input, shape index: {}]   ;;  %s6119_s2 = inlined_call_operand.hbm [shape: f32[2,1,128], index: 2, kind: input, shape index: {}]   ;;  %s6120_s3 = inlined_call_operand.hbm [shape: bf16[2,128,1536], index: 3, kind: input, shape index: {}]   ;;  %s6121_s4 = inlined_call_operand.hbm [shape: bf16[2,512,128], index: 4, kind: input, shape index: {}]   ;;  %s6122_s5 = inlined_call_operand.hbm [shape: f32[2,1,128], index: 5, kind: input, shape index: {}]   ;;  %s6123_s6 = inlined_call_operand.vmem [shape: f32[2,1,128], index: 6, kind: input, shape index: {}]   ;;  %s6124_s7 = inlined_call_operand.hbm [shape: f32[2,1,128], index: 7, kind: input, shape index: {}]   ;;  %s6125_s8 = inlined_call_operand.hbm [shape: bf16[2,128,256], index: 8, kind: input, shape index: {}]   ;;  %s6126_s9 = inlined_call_operand.hbm [shape: f32[2,1,256], index: 9, kind: input, shape index: {}]   ;;  %s6127_s10 = inlined_call_operand.hbm [shape: bf16[2,256,128], index: 10, kind: input, shape index: {}]   ;;  %s6128_s11 = inlined_call_operand.hbm [shape: f32[2,1,128], index: 11, kind: input, shape index: {}]   ;;  %s6129_s12 = inlined_call_operand.vmem [shape: f32[1,128], index: 12, kind: input, shape index: {}]   ;;  %s6130_s13 = inlined_call_operand.vmem [shape: f32[1,128], index: 13, kind: input, shape index: {}]   ;;  %s6131_s14 = inlined_call_operand.hbm [shape: f32[32,128], index: 14, kind: output, shape index: {}]  }
   0x1   :  { %6145 = sst [smem:[#allocation32_spill]] %s6117_s0 }
   0x2   :  { %6146 = sst [smem:[#allocation33_spill]] %s6118_s1 }
   0x3   :  { %6147 = sst [smem:[#allocation34_spill]] %s6119_s2 }
   0x4   :  { %6148 = sst [smem:[#allocation35_spill]] %s6120_s3 }
   0x5   :  { %6149 = sst [smem:[#allocation36_spill]] %s6121_s4 }
   0x6   :  { %6150 = sst [smem:[#allocation37_spill]] %s6123_s6 }
   0x7   :  { %6151 = sst [smem:[#allocation38_spill]] %s6127_s10 }
   0x8   :  { %6152 = sst [smem:[#allocation39_spill]] %s6128_s11 }
   0x9   :  { %6153 = sst [smem:[#allocation40_spill]] %s6129_s12 }
   0xa   :  { %6154 = sst [smem:[#allocation41_spill]] %s6130_s13 }
   0xb   :  { %6155 = sst [smem:[#allocation42_spill]] %s6131_s14 }
   0xc   :  { %19 = vsyncpa [#allocation5], 0 }
   0xd   :  { %20 = vsyncpa [#allocation8], 0 }
   0xe   :  { %22 = vsyncpa [#allocation8 + $0x1], 0 }
   0xf   :  { %23 = vsyncpa [#allocation11], 0 }
  0x10   :  { %25 = vsyncpa [#allocation11 + $0x1], 0 }
  0x11   :  { %26 = vsyncpa [#allocation14], 0 }
  0x12   :  { %28 = vsyncpa [#allocation14 + $0x1], 0 }
  0x13   :  { %29 = vsyncpa [#allocation17], 0 }
  0x14   :  { %31 = vsyncpa [#allocation17 + $0x1], 0 }
  0x15   :  { %32 = vsyncpa [#allocation20], 0 }
  0x16   :  { %34 = vsyncpa [#allocation20 + $0x1], 0 }
  0x17   :  { %35 = vsyncpa [#allocation6], 0  ;;  %s5080_s29 = smov 0   ;;  %s5082_s30 = smov 0  }
  0x18   :  { %s5084_s15 = smov 0   ;;  %s5086_s16 = smov 0  }
  0x19 LB: > { %6156 = sst [smem:[#allocation29_spill]] %s4988_s15  ;;  %s5101_s17 = sadd.s32 1, %s4992_s16   ;;  %s4992_s16 = sphi %s5086_s16, %s6192_s16   ;;  %s4988_s15 = sphi %s5084_s15, %s6194_s15   ;;  %s4984_s30 = sphi %s5082_s30, %s6196_s30   ;;  %s4980_s29 = sphi %s5080_s29, %s6195_s29  }
  0x1a   : > { %6157 = sst [smem:[#allocation30_spill]] %s5101_s17  ;;  %s95_s18 = sadd.s32 1, %s4988_s15 }
  0x1b   : > { %s92_s19 = ssub.s32 %s4992_s16, %s5101_s17  ;;  %p102_p0 = scmp.ne.s32.totalorder %s4988_s15, %s4984_s30 }
  0x1c   : > { %p93_p1 = scmp.eq.s32.totalorder %s92_s19, 0  ;;  %p103_p2 = scmp.eq.s32.totalorder %s4992_s16, 0 }
  0x1d   : > { %p4441_p3 = scmp.lt.s32.totalorder %s4992_s16, 2  ;;  %s5114_s21 = sand.u32 1, %s4992_s16  }
  0x1e   : > { %s5111_s20 = scalar_select %p93_p1, %s4988_s15, %s95_s18  }
  0x1f   : > { %p104_p4 = por %p103_p2, %p102_p0  ;;  %s5117_s22 = sand.u32 1, %s4988_s15  }
  0x20   : > { %6158 = sst [smem:[#allocation31_spill]] %s5111_s20  ;;  %s458_s27 = scalar_lea.vmem [#allocation7], %s5117_s22 }
  0x21   : > { %s6159_s2 = sld [smem:[#allocation34_spill]]  ;;  %s465_s28 = sshll.u32 %s458_s27, 4  ;;  %s466_s28 = int_to_ptr.vmem [resolvable:$true] %s465_s28 }
  0x22   : > { %p5124_p5 = pnand %p4441_p3, %p104_p4  ;;  %s3545_s19 = sshll.u32 %s5117_s22, 8 }
  0x23   : > { %s4216_s20 = sshll.u32 %s4992_s16, 8  ;;  %s6137_s15 = scalar_lea.sflag [#allocation8], %s5114_s21 }
  0x24   : > { %p5133_p7 = pneg %p5124_p5 }
  0x27   : > { %s461_s25 = scalar_lea.hbm %s6159_s2, %s4992_s16  ;;  %s4613_s27 = scalar_lea.hbm %s6159_s2, 2 }
  0x28   : > { %s463_s26 = sshll.u32 %s461_s25, 4  ;;  %s464_s26 = int_to_ptr.hbm [resolvable:$true] %s463_s26 }
  0x29   : > { %s4606_s17 = sshra.s32 %s464_s26, 4  ;;  %s4607_s17 = int_to_ptr.hbm [resolvable:$true] %s4606_s17 }
  0x2a   : > { %s4608_s14 = scalar_lea.hbm %s4607_s17, 1  ;;  %p4614_p10 = scmp.lt.s32.totalorder %s4607_s17, %s6159_s2 }
  0x2b   : > { %p4609_p6 = scmp.ne.s32.totalorder %s4607_s17, %s4608_s14  ;;  %p4615_p11 = scmp.lt.s32.totalorder %s4613_s27, %s4608_s14 }
  0x2d   : > { %p4611_p8 = pnand %p5133_p7, %p4609_p6  ;;  %p4616_p12 = por %p4615_p11, %p4614_p10 }
  0x2f   : > { %p4612_p9 = pneg %p4611_p8 }
  0x31   : > { %p4617_p13 = pnand %p4616_p12, %p4612_p9 }
  0x33   : > { %4620 = shalt.err (!%p4617_p13)
}
  0x34   : > { %4415 = dma.hbm_to_vmem [thread:$0]  (!%p5124_p5), %s464_s26, 16, %s466_s28, %s6137_s15  }
  0x35   : > { %s6162_s4 = sld [smem:[#allocation36_spill]]  ;;  %s498_s25 = scalar_lea.vmem [#allocation10], %s3545_s19 }
  0x36   : > { %s506_s11 = sshll.u32 %s498_s25, 4  ;;  %s6142_s12 = scalar_lea.sflag [#allocation11], %s5114_s21  ;;  %s507_s11 = int_to_ptr.vmem [resolvable:$true] %s506_s11 }
  0x3b   : > { %s503_s24 = scalar_lea.hbm %s6162_s4, %s4216_s20  ;;  %s4643_s26 = scalar_lea.hbm %s6162_s4, 512 }
  0x3c   : > { %s504_s10 = sshll.u32 %s503_s24, 4  ;;  %s505_s10 = int_to_ptr.hbm [resolvable:$true] %s504_s10 }
  0x3d   : > { %s4636_s13 = sshra.s32 %s505_s10, 4  ;;  %s4637_s13 = int_to_ptr.hbm [resolvable:$true] %s4636_s13 }
  0x3e   : > { %s4638_s14 = scalar_lea.hbm %s4637_s13, 256  ;;  %p4644_p3 = scmp.lt.s32.totalorder %s4637_s13, %s6162_s4 }
  0x3f   : > { %p4639_p0 = scmp.ne.s32.totalorder %s4637_s13, %s4638_s14  ;;  %p4645_p4 = scmp.lt.s32.totalorder %s4643_s26, %s4638_s14 }
  0x41   : > { %p4641_p1 = pnand %p4639_p0, %p5133_p7  ;;  %p4646_p6 = por %p4645_p4, %p4644_p3 }
  0x43   : > { %p4642_p2 = pneg %p4641_p1 }
  0x45   : > { %p4647_p8 = pnand %p4646_p6, %p4642_p2 }
  0x47   : > { %4650 = shalt.err (!%p4647_p8)
}
  0x48   : > { %s6138_s6 = smov 64   ;;  %s6139_s20 = smov 4  }
  0x49   : > { %4421 = dma.hbm_to_vmem [thread:$0]  (!%p5124_p5), %s505_s10, 4096, %s507_s11, %s6142_s12, %s6138_s6, %s6138_s6, %s6139_s20  }
  0x4a   : > { %s545_s25 = scalar_lea.hbm %s6124_s7, %s4992_s16  ;;  %s542_s14 = scalar_lea.vmem [#allocation13], %s5117_s22 }
  0x4b   : > { %s547_s13 = sshll.u32 %s545_s25, 4  ;;  %s549_s17 = sshll.u32 %s542_s14, 4  ;;  %s548_s13 = int_to_ptr.hbm [resolvable:$true] %s547_s13  ;;  %s550_s17 = int_to_ptr.vmem [resolvable:$true] %s549_s17 }
  0x4c   : > { %s6140_s27 = scalar_lea.sflag [#allocation14], %s5114_s21  ;;  %s4666_s26 = sshra.s32 %s548_s13, 4  ;;  %s4667_s26 = int_to_ptr.hbm [resolvable:$true] %s4666_s26 }
  0x4d   : > { %s4668_s28 = scalar_lea.hbm %s4667_s26, 1  ;;  %s4673_s10 = scalar_lea.hbm %s6124_s7, 2 }
  0x4e   : > { %p4669_p9 = scmp.ne.s32.totalorder %s4667_s26, %s4668_s28  ;;  %p4674_p12 = scmp.lt.s32.totalorder %s4667_s26, %s6124_s7 }
  0x4f   : > { %p4675_p13 = scmp.lt.s32.totalorder %s4673_s10, %s4668_s28 }
  0x50   : > { %p4671_p10 = pnand %p4669_p9, %p5133_p7 }
  0x51   : > { %p4676_p0 = por %p4675_p13, %p4674_p12 }
  0x52   : > { %p4672_p11 = pneg %p4671_p10 }
  0x54   : > { %p4677_p1 = pnand %p4676_p0, %p4672_p11 }
  0x56   : > { %4680 = shalt.err (!%p4677_p1)
}
  0x57   : > { %4427 = dma.hbm_to_vmem [thread:$0]  (!%p5124_p5), %s548_s13, 16, %s550_s17, %s6140_s27  }
  0x58   : > { %s3551_s24 = sshll.u32 %s5117_s22, 1  ;;  %s3552_s15 = sshll.u32 %s4992_s16, 1 }
  0x59   : > { %s586_s1 = scalar_lea.hbm %s6126_s9, %s3552_s15  ;;  %s582_s26 = scalar_lea.vmem [#allocation16], %s3551_s24 }
  0x5a   : > { %s590_s28 = sshll.u32 %s582_s26, 4  ;;  %s588_s10 = sshll.u32 %s586_s1, 4  ;;  %s591_s28 = int_to_ptr.vmem [resolvable:$true] %s590_s28  ;;  %s589_s10 = int_to_ptr.hbm [resolvable:$true] %s588_s10 }
  0x5b   : > { %s6141_s11 = scalar_lea.sflag [#allocation17], %s5114_s21  ;;  %s4696_s19 = sshra.s32 %s589_s10, 4  ;;  %s4697_s19 = int_to_ptr.hbm [resolvable:$true] %s4696_s19 }
  0x5c   : > { %s4698_s6 = scalar_lea.hbm %s4697_s19, 2  ;;  %s4703_s20 = scalar_lea.hbm %s6126_s9, 4 }
  0x5d   : > { %p4699_p2 = scmp.ne.s32.totalorder %s4697_s19, %s4698_s6  ;;  %p4704_p6 = scmp.lt.s32.totalorder %s4697_s19, %s6126_s9 }
  0x5e   : > { %p4705_p8 = scmp.lt.s32.totalorder %s4703_s20, %s4698_s6 }
  0x5f   : > { %p4701_p3 = pnand %p4699_p2, %p5133_p7 }
  0x60   : > { %p4706_p9 = por %p4705_p8, %p4704_p6 }
  0x61   : > { %p4702_p4 = pneg %p4701_p3 }
  0x63   : > { %p4707_p10 = pnand %p4706_p9, %p4702_p4 }
  0x65   : > { %4710 = shalt.err (!%p4707_p10)
}
  0x66   : > { %4433 = dma.hbm_to_vmem [thread:$0]  (!%p5124_p5), %s589_s10, 32, %s591_s28, %s6141_s11  }
  0x67   : > { %s5205_s24 = sadd.s32 4294967295, %s4992_s16   ;;  %p108_p11 = scmp.ne.s32.totalorder %s4984_s30, %s4980_s29 }
  0x68   : > { %p109_p12 = scmp.eq.s32.totalorder %s5205_s24, 0  ;;  %p3541_p13 = scmp.ge.s32.totalorder %s4992_s16, 1 }
  0x69   : > { %p416_p0 = scmp.lt.s32.totalorder %s4992_s16, 3  ;;  %p3542_p2 = scmp.ne.s32.totalorder %s5205_s24, 0 }
  0x6a   : > { %p5214_p1 = por %p109_p12, %p108_p11  ;;  %s6165_s0 = sld [smem:[#allocation32_spill]] }
  0x6b   : > { %p5219_p3 = pnand %p3541_p13, %p416_p0  ;;  %s4996_s29 = smov [#allocation4]  }
  0x6c   : > { %s429_s1 = sshll.u32 %s4996_s29, 4  ;;  %s4379_s26 = smul.u32 768, %s5117_s22  ;;  %s430_s1 = int_to_ptr.vmem [resolvable:$true] %s429_s1 }
  0x6d   : > { %p4408_p4 = pneg %p5219_p3  ;;  %s4380_s28 = smul.u32 768, %s4992_s16 }
  0x6e   : > { %s6143_s10 = smov 128   ;;  %s6144_s19 = smov 8  }
  0x6f   : > { %p4409_p6 = pnand %p4408_p4, %p109_p12  ;;  %s6166_s3 = sld [smem:[#allocation35_spill]] }
  0x70   : > { %s427_s14 = sshll.u32 %s6165_s0, 4  ;;  %s476_s15 = scalar_lea.vmem [#allocation9], %s4379_s26  ;;  %s428_s14 = int_to_ptr.hbm [resolvable:$true] %s427_s14 }
  0x71   : > { %4411 = dma.hbm_to_vmem [thread:$0]  (!%p4409_p6), %s428_s14, 512, %s430_s1, [#allocation5], %s6143_s10, %s6143_s10, %s6144_s19  }
  0x72   : > { %s484_s11 = sshll.u32 %s476_s15, 4  ;;  %s485_s11 = int_to_ptr.vmem [resolvable:$true] %s484_s11 }
  0x75   : > { %s481_s25 = scalar_lea.hbm %s6166_s3, %s4380_s28  ;;  %s4763_s14 = scalar_lea.hbm %s6166_s3, 1536 }
  0x76   : > { %s482_s27 = sshll.u32 %s481_s25, 4  ;;  %s483_s27 = int_to_ptr.hbm [resolvable:$true] %s482_s27 }
  0x77   : > { %s4756_s29 = sshra.s32 %s483_s27, 4  ;;  %s4757_s29 = int_to_ptr.hbm [resolvable:$true] %s4756_s29 }
  0x78   : > { %s4758_s12 = scalar_lea.hbm %s4757_s29, 768  ;;  %p4764_p11 = scmp.lt.s32.totalorder %s4757_s29, %s6166_s3 }
  0x79   : > { %p4759_p8 = scmp.ne.s32.totalorder %s4757_s29, %s4758_s12  ;;  %p4765_p13 = scmp.lt.s32.totalorder %s4763_s14, %s4758_s12 }
  0x7b   : > { %p4761_p9 = pnand %p4759_p8, %p5133_p7  ;;  %p4766_p0 = por %p4765_p13, %p4764_p11 }
  0x7d   : > { %p4762_p10 = pneg %p4761_p9 }
  0x7f   : > { %p4767_p4 = pnand %p4766_p0, %p4762_p10 }
  0x81   : > { %4770 = shalt.err (!%p4767_p4)
}
  0x82   : > { %s4999_s26 = smov 768   ;;  %s5000_s28 = smov 48  }
  0x83   : > { %s6167_s13 = scalar_lea.sflag [#allocation8], %s5114_s21  ;;  %s522_s10 = scalar_lea.hbm %s6122_s5, %s4992_s16 }
  0x84   : > { %4418 = dma.hbm_to_vmem [thread:$0]  (!%p5124_p5), %s483_s27, 12288, %s485_s11, %s6167_s13, %s4999_s26, %s4999_s26, %s5000_s28  }
  0x85   : > { %s519_s17 = scalar_lea.vmem [#allocation12], %s5117_s22  ;;  %s524_s25 = sshll.u32 %s522_s10, 4  ;;  %s525_s25 = int_to_ptr.hbm [resolvable:$true] %s524_s25 }
  0x86   : > { %s526_s12 = sshll.u32 %s519_s17, 4  ;;  %s3548_s15 = sshll.u32 %s5117_s22, 7  ;;  %s527_s12 = int_to_ptr.vmem [resolvable:$true] %s526_s12 }
  0x87   : > { %s4786_s29 = sshra.s32 %s525_s25, 4  ;;  %s4793_s11 = scalar_lea.hbm %s6122_s5, 2  ;;  %s4787_s29 = int_to_ptr.hbm [resolvable:$true] %s4786_s29 }
  0x88   : > { %s4788_s14 = scalar_lea.hbm %s4787_s29, 1  ;;  %p4794_p10 = scmp.lt.s32.totalorder %s4787_s29, %s6122_s5 }
  0x89   : > { %p4789_p6 = scmp.ne.s32.totalorder %s4787_s29, %s4788_s14  ;;  %p4795_p11 = scmp.lt.s32.totalorder %s4793_s11, %s4788_s14 }
  0x8b   : > { %p4791_p8 = pnand %p4789_p6, %p5133_p7  ;;  %p4796_p13 = por %p4795_p11, %p4794_p10 }
  0x8d   : > { %p4792_p9 = pneg %p4791_p8 }
  0x8f   : > { %p4797_p0 = pnand %p4796_p13, %p4792_p9 }
  0x91   : > { %4800 = shalt.err (!%p4797_p0)
}
  0x92   : > { %s6168_s28 = scalar_lea.sflag [#allocation11], %s5114_s21  ;;  %s4217_s13 = sshll.u32 %s4992_s16, 7 }
  0x93   : > { %4424 = dma.hbm_to_vmem [thread:$0]  (!%p5124_p5), %s525_s25, 16, %s527_s12, %s6168_s28  }
  0x94   : > { %s565_s2 = scalar_lea.hbm %s6125_s8, %s4217_s13  ;;  %s560_s10 = scalar_lea.vmem [#allocation15], %s3548_s15 }
  0x95   : > { %s568_s17 = sshll.u32 %s560_s10, 4  ;;  %s566_s29 = sshll.u32 %s565_s2, 4  ;;  %s569_s17 = int_to_ptr.vmem [resolvable:$true] %s568_s17  ;;  %s567_s29 = int_to_ptr.hbm [resolvable:$true] %s566_s29 }
  0x96   : > { %s4816_s14 = sshra.s32 %s567_s29, 4  ;;  %s4823_s25 = scalar_lea.hbm %s6125_s8, 256  ;;  %s4817_s14 = int_to_ptr.hbm [resolvable:$true] %s4816_s14 }
  0x97   : > { %s4818_s1 = scalar_lea.hbm %s4817_s14, 128  ;;  %p4824_p9 = scmp.lt.s32.totalorder %s4817_s14, %s6125_s8 }
  0x98   : > { %p4819_p4 = scmp.ne.s32.totalorder %s4817_s14, %s4818_s1  ;;  %p4825_p10 = scmp.lt.s32.totalorder %s4823_s25, %s4818_s1 }
  0x9a   : > { %p4821_p6 = pnand %p4819_p4, %p5133_p7  ;;  %p4826_p11 = por %p4825_p10, %p4824_p9 }
  0x9c   : > { %p4822_p8 = pneg %p4821_p6 }
  0x9e   : > { %p4827_p13 = pnand %p4826_p11, %p4822_p8 }
  0xa0   : > { %4830 = shalt.err (!%p4827_p13)
}
  0xa1   : > { %s6169_s28 = smov 8   ;;  %s6170_s0 = smov 128  }
  0xa2   : > { %s6171_s19 = scalar_lea.sflag [#allocation14], %s5114_s21  ;;  %s6172_s11 = sld [smem:[#allocation38_spill]] }
  0xa3   : > { %4430 = dma.hbm_to_vmem [thread:$0]  (!%p5124_p5), %s567_s29, 2048, %s569_s17, %s6171_s19, %s6170_s0, %s6170_s0, %s6169_s28  }
  0xa4   : > { %s601_s14 = scalar_lea.vmem [#allocation18], %s3548_s15 }
  0xa5   : > { %s609_s1 = sshll.u32 %s601_s14, 4  ;;  %s610_s1 = int_to_ptr.vmem [resolvable:$true] %s609_s1 }
  0xa8   : > { %s606_s12 = scalar_lea.hbm %s6172_s11, %s4217_s13  ;;  %s4853_s17 = scalar_lea.hbm %s6172_s11, 256 }
  0xa9   : > { %s607_s25 = sshll.u32 %s606_s12, 4  ;;  %s608_s25 = int_to_ptr.hbm [resolvable:$true] %s607_s25 }
  0xaa   : > { %s4846_s27 = sshra.s32 %s608_s25, 4  ;;  %s4847_s27 = int_to_ptr.hbm [resolvable:$true] %s4846_s27 }
  0xab   : > { %s4848_s26 = scalar_lea.hbm %s4847_s27, 128  ;;  %p4854_p8 = scmp.lt.s32.totalorder %s4847_s27, %s6172_s11 }
  0xac   : > { %p4849_p0 = scmp.ne.s32.totalorder %s4847_s27, %s4848_s26  ;;  %p4855_p9 = scmp.lt.s32.totalorder %s4853_s17, %s4848_s26 }
  0xae   : > { %p4851_p4 = pnand %p4849_p0, %p5133_p7  ;;  %p4856_p10 = por %p4855_p9, %p4854_p8 }
  0xb0   : > { %p4852_p6 = pneg %p4851_p4 }
  0xb2   : > { %p4857_p11 = pnand %p4856_p10, %p4852_p6 }
  0xb4   : > { %4860 = shalt.err (!%p4857_p11)
}
  0xb5   : > { %s6173_s15 = smov 4   ;;  %s6174_s13 = smov 64  }
  0xb6   : > { %s6175_s0 = scalar_lea.sflag [#allocation17], %s5114_s21  ;;  %s6176_s19 = sld [smem:[#allocation39_spill]] }
  0xb7   : > { %4436 = dma.hbm_to_vmem [thread:$0]  (!%p5124_p5), %s608_s25, 2048, %s610_s1, %s6175_s0, %s6174_s13, %s6174_s13, %s6173_s15  }
  0xb8   : > { %s622_s12 = scalar_lea.vmem [#allocation19], %s5117_s22  ;;  %s620_s27 = scalar_lea.sflag [#allocation20], %s5117_s22 }
  0xb9   : > { %s629_s14 = sshll.u32 %s622_s12, 4  ;;  %s630_s14 = int_to_ptr.vmem [resolvable:$true] %s629_s14 }
  0xbc   : > { %s625_s2 = scalar_lea.hbm %s6176_s19, %s4992_s16  ;;  %s4883_s1 = scalar_lea.hbm %s6176_s19, 2 }
  0xbd   : > { %s627_s10 = sshll.u32 %s625_s2, 4  ;;  %s628_s10 = int_to_ptr.hbm [resolvable:$true] %s627_s10 }
  0xbe   : > { %s4876_s26 = sshra.s32 %s628_s10, 4  ;;  %s4877_s26 = int_to_ptr.hbm [resolvable:$true] %s4876_s26 }
  0xbf   : > { %s4878_s17 = scalar_lea.hbm %s4877_s26, 1  ;;  %p4884_p6 = scmp.lt.s32.totalorder %s4877_s26, %s6176_s19 }
  0xc0   : > { %p4879_p13 = scmp.ne.s32.totalorder %s4877_s26, %s4878_s17  ;;  %p4885_p8 = scmp.lt.s32.totalorder %s4883_s1, %s4878_s17 }
  0xc2   : > { %p4881_p0 = pnand %p4879_p13, %p5133_p7  ;;  %p4886_p9 = por %p4885_p8, %p4884_p6 }
  0xc4   : > { %p4882_p4 = pneg %p4881_p0 }
  0xc6   : > { %p4887_p10 = pnand %p4886_p9, %p4882_p4 }
  0xc8   : > { %4890 = shalt.err (!%p4887_p10)
}
  0xc9   : > { %4439 = dma.hbm_to_vmem [thread:$0]  (!%p5124_p5), %s628_s10, 16, %s630_s14, %s620_s27  }
  0xca   : > { %638 = sbr.rel (%p5219_p3) target bundleno = 2367 (0x93f), region = 76 }
  0xcf   : > { %4951 = dma.done.wait (%p109_p12), [#allocation5], 512  }
  0xd0   : > { %4953 = vsyncadd (%p109_p12), [#allocation5], 4294966784  ;;  %s645_s16 = sand.u32 1, %s5205_s24   ;;  %s5333_s22 = sand.u32 1, %s4984_s30  }
  0xd1   : > { %s646_s23 = scalar_lea.sflag [#allocation8], %s645_s16  ;;  %s648_s15 = scalar_lea.vmem [#allocation7], %s5333_s22 }
  0xd2   : > { %4955 = dma.done.wait (%p5214_p1), %s646_s23, 12304  }
  0xd3   : > { %4957 = vsyncadd (%p5214_p1), %s646_s23, 4294954992  ;;  %s4381_s18 = smul.u32 768, %s5333_s22  ;;  %s3558_s20 = sshll.u32 %s5333_s22, 8 }
  0xd4   : > { %s665_s0 = scalar_lea.sflag [#allocation11], %s645_s16  ;;  %s5344_s3 = scalar_lea.vmem [#allocation10], %s3558_s20 }
  0xd5   : > { %s5342_s13 = scalar_lea.vmem [#allocation9], %s4381_s18 }
  0xd6   : > { %4959 = dma.done.wait (%p5214_p1), %s665_s0, 4112  }
  0xd7   : > { %4961 = vsyncadd (%p5214_p1), %s665_s0, 4294963184  ;;  %s677_s4 = scalar_lea.vmem [#allocation12], %s5333_s22  ;;  %s684_s2 = scalar_lea.sflag [#allocation14], %s645_s16 }
  0xd8   : > { %s686_s10 = scalar_lea.vmem [#allocation13], %s5333_s22 }
  0xd9   : > { %4963 = dma.done.wait (%p5214_p1), %s684_s2, 2064  }
  0xda   : > { %4965 = vsyncadd (%p5214_p1), %s684_s2, 4294965232  ;;  %s3559_s12 = sshll.u32 %s5333_s22, 7  ;;  %s3560_s14 = sshll.u32 %s5333_s22, 1 }
  0xdb   : > { %s5358_s27 = scalar_lea.vmem [#allocation15], %s3559_s12  ;;  %s703_s26 = scalar_lea.sflag [#allocation17], %s645_s16 }
  0xdc   : > { %s5360_s17 = scalar_lea.vmem [#allocation16], %s3560_s14 }
  0xdd   : > { %4967 = dma.done.wait (%p5214_p1), %s703_s26, 2080  }
  0xde   : > { %4969 = vsyncadd (%p5214_p1), %s703_s26, 4294965216  ;;  %s5366_s21 = scalar_lea.vmem [#allocation18], %s3559_s12  ;;  %s723_s29 = scalar_lea.sflag [#allocation20], %s5333_s22 }
  0xdf   : > { %s725_s1 = scalar_lea.vmem [#allocation19], %s5333_s22 }
  0xe0   : > { %4971 = dma.done.wait (%p5214_p1), %s723_s29, 16  }
  0xe1   : > { %4973 = vsyncadd (%p5214_p1), %s723_s29, 4294967280  ;;  %p808_p5 = scmp.lt.s32.totalorder %s5205_s24, 1  ;;  %s6177_s23 = sld [smem:[#allocation33_spill]] }
  0xe2   : > { %s6178_s2 = sld [smem:[#allocation37_spill]] }
  0xe3   : > { %s5376_s25 = scalar_select %p808_p5, %s5205_s24, 1 }
  0xe4   : > { %818 = sbr.rel (%p3542_p2) target bundleno = 238 (0xee), region = 120 }
  0xe7   : > { %s810_s18 = scalar_lea.vmem %s6177_s23, %s5376_s25 }
  0xe8   : > { %s813_s12 = scalar_lea.vmem %s6178_s2, %s5376_s25 }
  0xe9   : > { %v819_v0 = vld [vmem:[#allocation4] sm:$0xff]  ;;  %v820_v1 = vld [vmem:[#allocation4 + $0x8] sm:$0xff]  ;;  %v821_v2 = vld [vmem:[#allocation4 + $0x10] sm:$0xff] }
  0xea   : > { %823 = vst [vmem:[#allocation2 + $0x10] sm:$0xff] %v819_v0  ;;  %v822_v3 = vld [vmem:[#allocation4 + $0x18] sm:$0xff] }
  0xeb   : > { %824 = vst [vmem:[#allocation2] sm:$0xff] %v820_v1 }
  0xec   : > { %825 = vst [vmem:[#allocation2 + $0x18] sm:$0xff] %v821_v2 }
  0xed   : > { %826 = vst [vmem:[#allocation2 + $0x8] sm:$0xff] %v822_v3 }
  0xee PF: > { %v5001_v8 = vmov 128.0   ;;  %v3901_v31 = vld [vmem:[%s5342_s13 + $0x2a0] sm:$0xf]  ;;  %v4309_v32 = vld [vmem:[%s5342_s13 + $0x2cc] sm:$0xf0]  ;;  %vm1790_vm13 = vcmask 130048  }
  0xef   : > { %4494 = vrcp.f32 %v5001_v8  ;;  %v4303_v33 = vld [vmem:[%s5342_s13 + $0x2a4] sm:$0xf]  ;;  %v3902_v34 = vor.u32 %v4309_v32, %v3901_v31  ;;  %v3903_v35 = vld [vmem:[%s5342_s13 + $0x2d0] sm:$0xf0]  ;;  %v3909_v36 = vld [vmem:[%s5342_s13 + $0x2a8] sm:$0xf] }
  0xf0   : > { %v4310_v37 = vld [vmem:[%s5342_s13 + $0x2d4] sm:$0xf0]  ;;  %v3906_v38 = vor.u32 %v4303_v33, %v3903_v35  ;;  %v4304_v40 = vld [vmem:[%s5342_s13 + $0x2ac] sm:$0xf]  ;;  %v3911_v41 = vld [vmem:[%s5342_s13 + $0x2d8] sm:$0xf0] }
  0xf1   : > { %v827_v5 = vld [vmem:[#allocation2 + $0x10] sm:$0xff]  ;;  %v3910_v39 = vor.u32 %v4310_v37, %v3909_v36  ;;  %1512 = vmatpush.bf16.msra.mxu0 %v3902_v34  ;;  %v3914_v42 = vor.u32 %v4304_v40, %v3911_v41  ;;  %v3853_v43 = vld [vmem:[%s5342_s13 + $0x240] sm:$0xf]  ;;  %v4291_v45 = vld [vmem:[%s5342_s13 + $0x244] sm:$0xf]  ;;  %p4211_p7 = scmp.ne.s32.totalorder %s5205_s24, 1 }
  0xf2   : > { %833 = vadd.xlane.f32.xlu0 %v827_v5  ;;  %v828_v7 = vld [vmem:[#allocation2] sm:$0xff]  ;;  %1531 = vmatpush.bf16.msra.mxu1 %v3906_v38  ;;  %v4297_v44 = vld [vmem:[%s5342_s13 + $0x26c] sm:$0xf0]  ;;  %v3855_v47 = vld [vmem:[%s5342_s13 + $0x270] sm:$0xf0] }
  0xf3   : > { %v829_v4 = vld [vmem:[#allocation2 + $0x18] sm:$0xff]  ;;  %1550 = vmatpush.bf16.msra.mxu2 %v3910_v39  ;;  %1569 = vmatpush.bf16.msra.mxu3 %v3914_v42  ;;  %v3854_v46 = vor.u32 %v4297_v44, %v3853_v43  ;;  %v3861_v48 = vld [vmem:[%s5342_s13 + $0x248] sm:$0xf]  ;;  %v3858_v50 = vor.u32 %v4291_v45, %v3855_v47  ;;  %v4292_v52 = vld [vmem:[%s5342_s13 + $0x24c] sm:$0xf] }
  0xf4   : > { %837 = vadd.xlane.f32.xlu1 %v829_v4  ;;  %v830_v6 = vld [vmem:[#allocation2 + $0x8] sm:$0xff]  ;;  %v4298_v49 = vld [vmem:[%s5342_s13 + $0x274] sm:$0xf0]  ;;  %v3863_v53 = vld [vmem:[%s5342_s13 + $0x278] sm:$0xf0] }
  0xf5   : > { %v4495_v9 = vpop.eup %4494  ;;  %v3862_v51 = vor.u32 %v4298_v49, %v3861_v48  ;;  %1513 = vmatpush.bf16.msra.mxu0 %v3854_v46  ;;  %v3866_v54 = vor.u32 %v4292_v52, %v3863_v53  ;;  %v3805_v55 = vld [vmem:[%s5342_s13 + $0x1e0] sm:$0xf]  ;;  %v4285_v56 = vld [vmem:[%s5342_s13 + $0x20c] sm:$0xf0]  ;;  %v4279_v57 = vld [vmem:[%s5342_s13 + $0x1e4] sm:$0xf] }
  0xf6   : > { %v842_v10 = vmul.f32 128.0, %v4495_v9  ;;  %vm846_vm0 = vweird.f32 %v4495_v9  ;;  %1532 = vmatpush.bf16.msra.mxu1 %v3858_v50  ;;  %v3806_v58 = vor.u32 %v4285_v56, %v3805_v55  ;;  %v3807_v59 = vld [vmem:[%s5342_s13 + $0x210] sm:$0xf0]  ;;  %v3813_v60 = vld [vmem:[%s5342_s13 + $0x1e8] sm:$0xf] }
  0xf7   : > { %1551 = vmatpush.bf16.msra.mxu2 %v3862_v51  ;;  %1570 = vmatpush.bf16.msra.mxu3 %v3866_v54  ;;  %v4286_v61 = vld [vmem:[%s5342_s13 + $0x214] sm:$0xf0]  ;;  %v3810_v62 = vor.u32 %v4279_v57, %v3807_v59  ;;  %v4280_v0 = vld [vmem:[%s5342_s13 + $0x1ec] sm:$0xf]  ;;  %v3815_v1 = vld [vmem:[%s5342_s13 + $0x218] sm:$0xf0] }
  0xf8   : > { %v843_v11 = vsub.f32 1.0, %v842_v10  ;;  %v3814_v63 = vor.u32 %v4286_v61, %v3813_v60  ;;  %v3818_v2 = vor.u32 %v4280_v0, %v3815_v1  ;;  %v3757_v3 = vld [vmem:[%s5342_s13 + $0x180] sm:$0xf]  ;;  %v3765_v8 = vld [vmem:[%s5342_s13 + $0x188] sm:$0xf] }
  0xf9   : > { %1514 = vmatpush.bf16.msra.mxu0 %v3806_v58  ;;  %v3661_v32 = vld [vmem:[%s5342_s13 + $0xc0] sm:$0xf]  ;;  %v4249_v33 = vld [vmem:[%s5342_s13 + $0xec] sm:$0xf0]  ;;  %v4243_v34 = vld [vmem:[%s5342_s13 + $0xc4] sm:$0xf] }
  0xfa   : > { %835 = vadd.xlane.f32.xlu0 %v828_v7  ;;  %v844_v12 = vmul.f32 %v4495_v9, %v843_v11  ;;  %1533 = vmatpush.bf16.msra.mxu1 %v3810_v62  ;;  %v3662_v35 = vor.u32 %v4249_v33, %v3661_v32  ;;  %v3663_v36 = vld [vmem:[%s5342_s13 + $0xf0] sm:$0xf0]  ;;  %v3669_v37 = vld [vmem:[%s5342_s13 + $0xc8] sm:$0xf]  ;;  %v4250_v38 = vld [vmem:[%s5342_s13 + $0xf4] sm:$0xf0] }
  0xfb   : > { %1552 = vmatpush.bf16.msra.mxu2 %v3814_v63  ;;  %1571 = vmatpush.bf16.msra.mxu3 %v3818_v2  ;;  %v3666_v39 = vor.u32 %v4243_v34, %v3663_v36  ;;  %v3670_v40 = vor.u32 %v4250_v38, %v3669_v37  ;;  %v4244_v41 = vld [vmem:[%s5342_s13 + $0xcc] sm:$0xf]  ;;  %v3671_v42 = vld [vmem:[%s5342_s13 + $0xf8] sm:$0xf0]  ;;  %v3613_v44 = vld [vmem:[%s5342_s13 + $0x60] sm:$0xf] }
  0xfc   : > { %839 = vadd.xlane.f32.xlu1 %v830_v6  ;;  %v845_v13 = vadd.f32 %v4495_v9, %v844_v12  ;;  %v4268_v12 = vld [vmem:[%s5342_s13 + $0x18c] sm:$0xf]  ;;  %v3674_v43 = vor.u32 %v4244_v41, %v3671_v42  ;;  %v4237_v45 = vld [vmem:[%s5342_s13 + $0x8c] sm:$0xf0]  ;;  %v4231_v46 = vld [vmem:[%s5342_s13 + $0x64] sm:$0xf] }
  0xfd   : > { %v3614_v47 = vor.u32 %v4237_v45, %v3613_v44  ;;  %v3615_v48 = vld [vmem:[%s5342_s13 + $0x90] sm:$0xf0]  ;;  %v3621_v49 = vld [vmem:[%s5342_s13 + $0x68] sm:$0xf]  ;;  %v4238_v50 = vld [vmem:[%s5342_s13 + $0x94] sm:$0xf0] }
  0xfe   : > { %v5388_v14 = vsel %vm846_vm0, %v4495_v9, %v845_v13  ;;  %v4274_v9 = vld [vmem:[%s5342_s13 + $0x1b4] sm:$0xf0]  ;;  %v3767_v13 = vld [vmem:[%s5342_s13 + $0x1b8] sm:$0xf0]  ;;  %v3618_v53 = vor.u32 %v4231_v46, %v3615_v48  ;;  %v3622_v54 = vor.u32 %v4238_v50, %v3621_v49  ;;  %v4232_v55 = vld [vmem:[%s5342_s13 + $0x6c] sm:$0xf] }
  0xff   : > { %v3766_v11 = vor.u32 %v4274_v9, %v3765_v8  ;;  %v3623_v56 = vld [vmem:[%s5342_s13 + $0x98] sm:$0xf0]  ;;  %v3565_v60 = vld [vmem:[%s5342_s13] sm:$0xf]  ;;  %v4225_v61 = vld [vmem:[%s5342_s13 + $0x2c] sm:$0xf0] }
 0x100   : > { %v3626_v59 = vor.u32 %v4232_v55, %v3623_v56  ;;  %v4219_v62 = vld [vmem:[%s5342_s13 + $0x4] sm:$0xf]  ;;  %v3566_v1 = vor.u32 %v4225_v61, %v3565_v60  ;;  %v3567_v2 = vld [vmem:[%s5342_s13 + $0x30] sm:$0xf0]  ;;  %v3575_v8 = vld [vmem:[%s5342_s13 + $0x38] sm:$0xf0] }
 0x101   : > { %1553 = vmatpush.bf16.msra.mxu2 %v3766_v11  ;;  %v4311_v11 = vld [vmem:[%s5342_s13 + $0x2dc] sm:$0xf0]  ;;  %v4293_v33 = vld [vmem:[%s5342_s13 + $0x254] sm:$0xf]  ;;  %v3871_v34 = vld [vmem:[%s5342_s13 + $0x280] sm:$0xf0] }
 0x102   : > { %v4299_v32 = vld [vmem:[%s5342_s13 + $0x27c] sm:$0xf0]  ;;  %v4300_v42 = vld [vmem:[%s5342_s13 + $0x284] sm:$0xf0]  ;;  %v3879_v44 = vld [vmem:[%s5342_s13 + $0x288] sm:$0xf0] }
 0x103   : > { %v3821_v45 = vld [vmem:[%s5342_s13 + $0x1f0] sm:$0xf]  ;;  %v4287_v46 = vld [vmem:[%s5342_s13 + $0x21c] sm:$0xf0]  ;;  %v4281_v50 = vld [vmem:[%s5342_s13 + $0x1f4] sm:$0xf] }
 0x104   : > { %v3829_v55 = vld [vmem:[%s5342_s13 + $0x1f8] sm:$0xf]  ;;  %v4288_v56 = vld [vmem:[%s5342_s13 + $0x224] sm:$0xf0]  ;;  %v3831_v60 = vld [vmem:[%s5342_s13 + $0x228] sm:$0xf0] }
 0x105   : > { %v3773_v61 = vld [vmem:[%s5342_s13 + $0x190] sm:$0xf] }
 0x165   : > { %v834_v16 = vpop.xlane.xlu0 %833 }
 0x166   : > { %v848_v18 = vmul.f32 %v5388_v14, %v834_v16  ;;  %v3709_v16 = vld [vmem:[%s5342_s13 + $0x120] sm:$0xf] }
 0x167   : > { %v838_v15 = vpop.xlane.xlu1 %837 }
 0x168   : > { %v850_v17 = vmul.f32 %v5388_v14, %v838_v15  ;;  %v5394_v20 = vsub.f32 %v827_v5, %v848_v18  ;;  %v4267_v5 = vld [vmem:[%s5342_s13 + $0x184] sm:$0xf]  ;;  %v3770_v15 = vor.u32 %v4268_v12, %v3767_v13  ;;  %v4305_v12 = vld [vmem:[%s5342_s13 + $0x2b4] sm:$0xf] }
 0x169   : > { %v4255_v18 = vld [vmem:[%s5342_s13 + $0x124] sm:$0xf] }
 0x16a   : > { %v5392_v19 = vsub.f32 %v829_v4, %v850_v17  ;;  %v856_v22 = vmul.f32 %v5394_v20, %v5394_v20  ;;  %v4273_v4 = vld [vmem:[%s5342_s13 + $0x1ac] sm:$0xf0]  ;;  %1572 = vmatpush.bf16.msra.mxu3 %v3770_v15 }
 0x16b   : > { %v4261_v17 = vld [vmem:[%s5342_s13 + $0x14c] sm:$0xf0] }
 0x16c   : > { %v858_v21 = vmul.f32 %v5392_v19, %v5392_v19  ;;  %860 = vadd.xlane.f32.xlu2 %v856_v22  ;;  %v3711_v22 = vld [vmem:[%s5342_s13 + $0x150] sm:$0xf0] }
 0x16d   : > { %v836_v24 = vpop.xlane.xlu0 %835 }
 0x16e   : > { %864 = vadd.xlane.f32.xlu0 %v858_v21  ;;  %v849_v26 = vmul.f32 %v5388_v14, %v836_v24  ;;  %v3710_v21 = vor.u32 %v4261_v17, %v3709_v16  ;;  %v4262_v24 = vld [vmem:[%s5342_s13 + $0x154] sm:$0xf0]  ;;  %v3919_v17 = vld [vmem:[%s5342_s13 + $0x2e0] sm:$0xf0] }
 0x16f   : > { %v840_v23 = vpop.xlane.xlu1 %839 }
 0x170   : > { %v851_v25 = vmul.f32 %v5388_v14, %v840_v23  ;;  %v5404_v28 = vsub.f32 %v828_v7, %v849_v26  ;;  %v3759_v7 = vld [vmem:[%s5342_s13 + $0x1b0] sm:$0xf0]  ;;  %v3717_v23 = vld [vmem:[%s5342_s13 + $0x128] sm:$0xf] }
 0x171   : > { %v3762_v10 = vor.u32 %v4267_v5, %v3759_v7  ;;  %v3718_v26 = vor.u32 %v4262_v24, %v3717_v23  ;;  %v4226_v5 = vld [vmem:[%s5342_s13 + $0x34] sm:$0xf0]  ;;  %v3922_v24 = vor.u32 %v4305_v12, %v3919_v17 }
 0x172   : > { %v5402_v27 = vsub.f32 %v830_v6, %v851_v25  ;;  %v857_v30 = vmul.f32 %v5404_v28, %v5404_v28  ;;  %v3758_v6 = vor.u32 %v4273_v4, %v3757_v3  ;;  %v3714_v25 = vor.u32 %v4255_v18, %v3711_v22  ;;  %v3573_v4 = vld [vmem:[%s5342_s13 + $0x8] sm:$0xf]  ;;  %v3925_v18 = vld [vmem:[%s5342_s13 + $0x2b8] sm:$0xf] }
 0x173   : > { %1534 = vmatpush.bf16.msra.mxu1 %v3762_v10  ;;  %1554 = vmatpush.bf16.msra.mxu2 %v3718_v26  ;;  %v3570_v3 = vor.u32 %v4219_v62, %v3567_v2  ;;  %v3574_v7 = vor.u32 %v4226_v5, %v3573_v4  ;;  %v3917_v10 = vld [vmem:[%s5342_s13 + $0x2b0] sm:$0xf]  ;;  %v4306_v26 = vld [vmem:[%s5342_s13 + $0x2bc] sm:$0xf]  ;;  %v4269_v2 = vld [vmem:[%s5342_s13 + $0x194] sm:$0xf] }
 0x174   : > { %v859_v29 = vmul.f32 %v5402_v27, %v5402_v27  ;;  %862 = vadd.xlane.f32.xlu2 %v857_v30  ;;  %1515 = vmatpush.bf16.msra.mxu0 %v3758_v6  ;;  %v3719_v30 = vld [vmem:[%s5342_s13 + $0x158] sm:$0xf0]  ;;  %v4220_v6 = vld [vmem:[%s5342_s13 + $0xc] sm:$0xf]  ;;  %v3918_v16 = vor.u32 %v4311_v11, %v3917_v10  ;;  %v4276_v10 = vld [vmem:[%s5342_s13 + $0x1c4] sm:$0xf0] }
 0x175   : > { %v3578_v9 = vor.u32 %v4220_v6, %v3575_v8  ;;  %v3775_v6 = vld [vmem:[%s5342_s13 + $0x1c0] sm:$0xf0]  ;;  %v4270_v11 = vld [vmem:[%s5342_s13 + $0x19c] sm:$0xf] }
 0x176   : > { %866 = vadd.xlane.f32.xlu1 %v859_v29  ;;  %v4256_v29 = vld [vmem:[%s5342_s13 + $0x12c] sm:$0xf] }
 0x177   : > { %v3722_v31 = vor.u32 %v4256_v29, %v3719_v30  ;;  %1535 = vmatpush.bf16.msra.mxu1 %v3714_v25  ;;  %1555 = vmatpush.bf16.msra.mxu2 %v3670_v40  ;;  %v3927_v29 = vld [vmem:[%s5342_s13 + $0x2e8] sm:$0xf0]  ;;  %v3869_v30 = vld [vmem:[%s5342_s13 + $0x250] sm:$0xf]  ;;  %v3877_v40 = vld [vmem:[%s5342_s13 + $0x258] sm:$0xf] }
 0x178   : > { %1516 = vmatpush.bf16.msra.mxu0 %v3710_v21  ;;  %v4312_v21 = vld [vmem:[%s5342_s13 + $0x2e4] sm:$0xf0]  ;;  %v3870_v38 = vor.u32 %v4299_v32, %v3869_v30  ;;  %v3878_v49 = vor.u32 %v4300_v42, %v3877_v40  ;;  %v3727_v32 = vld [vmem:[%s5342_s13 + $0x160] sm:$0xf0]  ;;  %v5567_v42 = vld [vmem:[%s810_s18] ss:$0 sm:$0xff] }
 0x179   : > { %1573 = vmatpush.bf16.msra.mxu3 %v3722_v31  ;;  %v3926_v25 = vor.u32 %v4312_v21, %v3925_v18  ;;  %v3930_v31 = vor.u32 %v4306_v26, %v3927_v29  ;;  %v4263_v26 = vld [vmem:[%s5342_s13 + $0x15c] sm:$0xf0]  ;;  %v4257_v29 = vld [vmem:[%s5342_s13 + $0x134] sm:$0xf]  ;;  %v4264_v40 = vld [vmem:[%s5342_s13 + $0x164] sm:$0xf0] }
 0x17b   : > { %1536 = vmatpush.bf16.msra.mxu1 %v3666_v39  ;;  %1556 = vmatpush.bf16.msra.mxu2 %v3622_v54  ;;  %v3874_v39 = vor.u32 %v4293_v33, %v3871_v34  ;;  %v3733_v33 = vld [vmem:[%s5342_s13 + $0x138] sm:$0xf] }
 0x17c   : > { %1517 = vmatpush.bf16.msra.mxu0 %v3662_v35 }
 0x17d   : > { %1574 = vmatpush.bf16.msra.mxu3 %v3674_v43  ;;  %v4294_v43 = vld [vmem:[%s5342_s13 + $0x25c] sm:$0xf] }
 0x17f   : > { %1537 = vmatpush.bf16.msra.mxu1 %v3618_v53  ;;  %1557 = vmatpush.bf16.msra.mxu2 %v3574_v7  ;;  %v3822_v53 = vor.u32 %v4287_v46, %v3821_v45  ;;  %v3781_v7 = vld [vmem:[%s5342_s13 + $0x198] sm:$0xf]  ;;  %v3677_v45 = vld [vmem:[%s5342_s13 + $0xd0] sm:$0xf] }
 0x180   : > { %1518 = vmatpush.bf16.msra.mxu0 %v3614_v47 }
 0x181   : > { %1575 = vmatpush.bf16.msra.mxu3 %v3626_v59  ;;  %v3830_v59 = vor.u32 %v4288_v56, %v3829_v55  ;;  %v3685_v55 = vld [vmem:[%s5342_s13 + $0xd8] sm:$0xf]  ;;  %v4252_v56 = vld [vmem:[%s5342_s13 + $0x104] sm:$0xf0] }
 0x183   : > { %1538 = vmatpush.bf16.msra.mxu1 %v3570_v3  ;;  %1626 = vmatpush.bf16.msrb.mxu2 %v3926_v25  ;;  %v3725_v25 = vld [vmem:[%s5342_s13 + $0x130] sm:$0xf] }
 0x184   : > { %1519 = vmatpush.bf16.msra.mxu0 %v3566_v1  ;;  %v4275_v1 = vld [vmem:[%s5342_s13 + $0x1bc] sm:$0xf0] }
 0x185   : > { %1576 = vmatpush.bf16.msra.mxu3 %v3578_v9  ;;  %v3774_v5 = vor.u32 %v4275_v1, %v3773_v61  ;;  %v3778_v9 = vor.u32 %v4269_v2, %v3775_v6  ;;  %v3687_v61 = vld [vmem:[%s5342_s13 + $0x108] sm:$0xf0]  ;;  %v4239_v2 = vld [vmem:[%s5342_s13 + $0x9c] sm:$0xf0] }
 0x187   : > { %1607 = vmatpush.bf16.msrb.mxu1 %v3922_v24  ;;  %1627 = vmatpush.bf16.msrb.mxu2 %v3878_v49  ;;  %v3941_v49 = vld [vmem:[%s5342_s13 + $0x2c8] sm:$0xf] }
 0x188   : > { %1588 = vmatpush.bf16.msrb.mxu0 %v3918_v16  ;;  %v3783_v16 = vld [vmem:[%s5342_s13 + $0x1c8] sm:$0xf0] }
 0x189   : > { %1645 = vmatpush.bf16.msrb.mxu3 %v3930_v31  ;;  %v3786_v21 = vor.u32 %v4270_v11, %v3783_v16  ;;  %v4234_v11 = vld [vmem:[%s5342_s13 + $0x7c] sm:$0xf] }
 0x18b   : > { %1608 = vmatpush.bf16.msrb.mxu1 %v3874_v39  ;;  %1628 = vmatpush.bf16.msrb.mxu2 %v3830_v59  ;;  %v3730_v39 = vor.u32 %v4257_v29, %v3727_v32  ;;  %v3686_v59 = vor.u32 %v4252_v56, %v3685_v55  ;;  %v3591_v32 = vld [vmem:[%s5342_s13 + $0x48] sm:$0xf0] }
 0x18c   : > { %1589 = vmatpush.bf16.msrb.mxu0 %v3870_v38 }
 0x190   : > { %1590 = vmatpush.bf16.msrb.mxu0 %v3822_v53 }
 0x194   : > { %1591 = vmatpush.bf16.msrb.mxu0 %v3774_v5 }
 0x1df   : > { %v861_v51 = vpop.xlane.xlu2 %860 }
 0x1e0   : > { %v868_v57 = vmul.f32 %v861_v51, %v5388_v14  ;;  %v3823_v51 = vld [vmem:[%s5342_s13 + $0x220] sm:$0xf0] }
 0x1e1   : > { %v865_v52 = vpop.xlane.xlu0 %864  ;;  %v3826_v54 = vor.u32 %v4281_v50, %v3823_v51  ;;  %v4251_v50 = vld [vmem:[%s5342_s13 + $0xfc] sm:$0xf0]  ;;  %v4245_v51 = vld [vmem:[%s5342_s13 + $0xd4] sm:$0xf] }
 0x1e2   : > { %v870_v58 = vmul.f32 %v865_v52, %v5388_v14  ;;  %v5471_v63 = vadd.f32 1e-05, %v868_v57  ;;  %v3882_v52 = vor.u32 %v4294_v43, %v3879_v44  ;;  %v4282_v57 = vld [vmem:[%s5342_s13 + $0x1fc] sm:$0xf]  ;;  %v3735_v44 = vld [vmem:[%s5342_s13 + $0x168] sm:$0xf0]  ;;  %v3678_v53 = vor.u32 %v4251_v50, %v3677_v45 }
 0x1e3   : > { %v3834_v62 = vor.u32 %v4282_v57, %v3831_v60  ;;  %1609 = vmatpush.bf16.msrb.mxu1 %v3826_v54  ;;  %v3679_v54 = vld [vmem:[%s5342_s13 + $0x100] sm:$0xf0]  ;;  %v4246_v60 = vld [vmem:[%s5342_s13 + $0xdc] sm:$0xf] }
 0x1e4   : > { %v5473_v0 = vadd.f32 1e-05, %v870_v58  ;;  %4496 = vrsqrt.f32 %v5471_v63  ;;  %1646 = vmatpush.bf16.msrb.mxu3 %v3882_v52  ;;  %vm882_vm2 = vweird.f32 %v5471_v63  ;;  %v3690_v1 = vor.u32 %v4246_v60, %v3687_v61  ;;  %v4307_v45 = vld [vmem:[%s5342_s13 + $0x2c4] sm:$0xf]  ;;  %v3893_v61 = vld [vmem:[%s5342_s13 + $0x268] sm:$0xf] }
 0x1e6   : > { %4498 = vrsqrt.f32 %v5473_v0  ;;  %vm902_vm9 = vweird.f32 %v5473_v0 }
 0x1e7   : > { %v863_v15 = vpop.xlane.xlu2 %862  ;;  %1610 = vmatpush.bf16.msrb.mxu1 %v3778_v9  ;;  %v3637_v9 = vld [vmem:[%s5342_s13 + $0x78] sm:$0xf] }
 0x1e8   : > { %v869_v23 = vmul.f32 %v863_v15, %v5388_v14  ;;  %v3782_v15 = vor.u32 %v4276_v10, %v3781_v7  ;;  %1647 = vmatpush.bf16.msrb.mxu3 %v3834_v62  ;;  %v3629_v62 = vld [vmem:[%s5342_s13 + $0x70] sm:$0xf]  ;;  %v4240_v10 = vld [vmem:[%s5342_s13 + $0xa4] sm:$0xf0] }
 0x1e9   : > { %v867_v13 = vpop.xlane.xlu1 %866  ;;  %v3630_v6 = vor.u32 %v4239_v2, %v3629_v62  ;;  %v3638_v16 = vor.u32 %v4240_v10, %v3637_v9  ;;  %v4296_v62 = vld [vmem:[%s5342_s13 + $0x26c] sm:$0xf]  ;;  %v3839_v9 = vld [vmem:[%s5342_s13 + $0x230] sm:$0xf0]  ;;  %v3845_v10 = vld [vmem:[%s5342_s13 + $0x208] sm:$0xf] }
 0x1ea   : > { %v871_v22 = vmul.f32 %v867_v13, %v5388_v14  ;;  %v5496_v35 = vpop.eup %4496  ;;  %v5500_v37 = vadd.f32 1e-05, %v869_v23  ;;  %1629 = vmatpush.bf16.msrb.mxu2 %v3782_v15 }
 0x1eb   : > { %v877_v41 = vmul.f32 %v5496_v35, %v5471_v63  ;;  %vm883_vm1 = vweird.f32 %v5496_v35  ;;  %v3726_v63 = vor.u32 %v4263_v26, %v3725_v25  ;;  %1611 = vmatpush.bf16.msrb.mxu1 %v3730_v39  ;;  %v3589_v26 = vld [vmem:[%s5342_s13 + $0x18] sm:$0xf]  ;;  %v4265_v39 = vld [vmem:[%s5342_s13 + $0x16c] sm:$0xf0] }
 0x1ec   : > { %v5498_v36 = vadd.f32 1e-05, %v871_v22  ;;  %v5511_v47 = vpop.eup %4498  ;;  %vm5548_vm3 = vmor %vm882_vm2, %vm883_vm1  ;;  %1648 = vmatpush.bf16.msrb.mxu3 %v3786_v21  ;;  %vm892_vm5 = vweird.f32 %v5500_v37  ;;  %v4227_v21 = vld [vmem:[%s5342_s13 + $0x3c] sm:$0xf0] }
 0x1ed   : > { %v878_v48 = vmul.f32 %v5496_v35, %v877_v41  ;;  %v897_v4 = vmul.f32 %v5511_v47, %v5473_v0  ;;  %v4258_v41 = vld [vmem:[%s5342_s13 + $0x13c] sm:$0xf]  ;;  %1592 = vmatpush.bf16.msrb.mxu0 %v3726_v63  ;;  %vm903_vm10 = vweird.f32 %v5511_v47 }
 0x1ee   : > { %4500 = vrsqrt.f32 %v5498_v36  ;;  %vm912_vm7 = vweird.f32 %v5498_v36  ;;  %v4222_v63 = vld [vmem:[%s5342_s13 + $0x1c] sm:$0xf]  ;;  %vm5633_vm12 = vmor %vm902_vm9, %vm903_vm10 }
 0x1ef   : > { %4502 = vrsqrt.f32 %v5500_v37  ;;  %v879_v58 = vmul.f32 0.5, %v878_v48  ;;  %v898_v22 = vmul.f32 %v5511_v47, %v897_v4  ;;  %v3631_v4 = vld [vmem:[%s5342_s13 + $0xa0] sm:$0xf0] }
 0x1f1   : > { %v880_v3 = vsub.f32 1.5, %v879_v58  ;;  %v5569_v43 = vmul.f32 0.5, %v898_v22  ;;  %v3682_v58 = vor.u32 %v4245_v51, %v3679_v54  ;;  %1593 = vmatpush.bf16.msrb.mxu0 %v3678_v53  ;;  %v3943_v53 = vld [vmem:[%s5342_s13 + $0x2f8] sm:$0xf0]  ;;  %v3885_v54 = vld [vmem:[%s5342_s13 + $0x260] sm:$0xf] }
 0x1f3   : > { %v881_v17 = vmul.f32 %v5496_v35, %v880_v3  ;;  %v4233_v3 = vld [vmem:[%s5342_s13 + $0x74] sm:$0xf]  ;;  %1612 = vmatpush.bf16.msrb.mxu1 %v3682_v58 }
 0x1f4   : > { %v5528_v8 = vpop.eup %4500  ;;  %v3634_v7 = vor.u32 %v4233_v3, %v3631_v4  ;;  %v3887_v58 = vld [vmem:[%s5342_s13 + $0x290] sm:$0xf0]  ;;  %v3895_v3 = vld [vmem:[%s5342_s13 + $0x298] sm:$0xf0]  ;;  %v3837_v4 = vld [vmem:[%s5342_s13 + $0x200] sm:$0xf] }
 0x1f5   : > { %v5532_v12 = vpop.eup %4502  ;;  %v907_v13 = vmul.f32 %v5528_v8, %v5498_v36  ;;  %v885_v34 = vsel %vm5548_vm3, %v5496_v35, %v881_v17  ;;  %v3734_v35 = vor.u32 %v4264_v40, %v3733_v33  ;;  %v3639_v17 = vld [vmem:[%s5342_s13 + $0xa8] sm:$0xf0]  ;;  %vm913_vm8 = vweird.f32 %v5528_v8  ;;  %1594 = vmatpush.bf16.msrb.mxu0 %v3630_v6 }
 0x1f6   : > { %v887_v18 = vmul.f32 %v5532_v12, %v5500_v37  ;;  %vm893_vm4 = vweird.f32 %v5532_v12  ;;  %v3738_v37 = vor.u32 %v4258_v41, %v3735_v44  ;;  %v916_v52 = vmul.f32 %v885_v34, %v5394_v20  ;;  %v5593_v20 = vld [vmem:[%s648_s15] ss:$0 sm:$0xff]  ;;  %vm5627_vm11 = vmor %vm912_vm7, %vm913_vm8  ;;  %v4313_v44 = vld [vmem:[%s5342_s13 + $0x2ec] sm:$0xf0] }
 0x1f7   : > { %v908_v23 = vmul.f32 %v5528_v8, %v907_v13  ;;  %vm5577_vm6 = vmor %vm892_vm5, %vm893_vm4  ;;  %1630 = vmatpush.bf16.msrb.mxu2 %v3734_v35  ;;  %v3642_v22 = vor.u32 %v4234_v11, %v3639_v17  ;;  %1613 = vmatpush.bf16.msrb.mxu1 %v3634_v7  ;;  %v3594_v41 = vor.u32 %v4222_v63, %v3591_v32  ;;  %v3933_v35 = vld [vmem:[%s5342_s13 + $0x2c0] sm:$0xf]  ;;  %v4283_v7 = vld [vmem:[%s5342_s13 + $0x204] sm:$0xf] }
 0x1f8   : > { %v888_v24 = vmul.f32 %v5532_v12, %v887_v18  ;;  %1649 = vmatpush.bf16.msrb.mxu3 %v3738_v37  ;;  %v923_v13 = vmul.f32 %v5567_v42, %v916_v52  ;;  %v3581_v18 = vld [vmem:[%s5342_s13 + $0x10] sm:$0xf]  ;;  %v4314_v37 = vld [vmem:[%s5342_s13 + $0x2f4] sm:$0xf0]  ;;  %v4308_v52 = vld [vmem:[%s5342_s13 + $0x2cc] sm:$0xf]  ;;  %v3898_v6 = vor.u32 %v4296_v62, %v3895_v3  ;;  %v3842_v17 = vor.u32 %v4283_v7, %v3839_v9 }
 0x1f9   : > { %v5552_v31 = vmul.f32 0.5, %v908_v23  ;;  %v4221_v23 = vld [vmem:[%s5342_s13 + $0x14] sm:$0xf]  ;;  %v3582_v25 = vor.u32 %v4227_v21, %v3581_v18  ;;  %v3942_v51 = vor.u32 %v4314_v37, %v3941_v49  ;;  %v3946_v56 = vor.u32 %v4308_v52, %v3943_v53  ;;  %v3789_v18 = vld [vmem:[%s5342_s13 + $0x1a0] sm:$0xf] }
 0x1fa   : > { %v889_v38 = vmul.f32 0.5, %v888_v24  ;;  %v3583_v24 = vld [vmem:[%s5342_s13 + $0x40] sm:$0xf0]  ;;  %v930_v33 = vadd.f32 %v5593_v20, %v923_v13  ;;  %v4290_v13 = vld [vmem:[%s5342_s13 + $0x234] sm:$0xf0] }
 0x1fb   : > { %v910_v46 = vsub.f32 1.5, %v5552_v31  ;;  %1631 = vmatpush.bf16.msrb.mxu2 %v3686_v59  ;;  %v3586_v30 = vor.u32 %v4221_v23, %v3583_v24  ;;  %v4228_v31 = vld [vmem:[%s5342_s13 + $0x44] sm:$0xf0]  ;;  %1595 = vmatpush.bf16.msrb.mxu0 %v3582_v25  ;;  %v4277_v23 = vld [vmem:[%s5342_s13 + $0x1cc] sm:$0xf0] }
 0x1fc   : > { %v890_v48 = vsub.f32 1.5, %v889_v38  ;;  %1650 = vmatpush.bf16.msrb.mxu3 %v3690_v1  ;;  %v3590_v36 = vor.u32 %v4228_v31, %v3589_v26  ;;  %v4271_v24 = vld [vmem:[%s5342_s13 + $0x1a4] sm:$0xf]  ;;  %v3797_v26 = vld [vmem:[%s5342_s13 + $0x1a8] sm:$0xf] }
 0x1fd   : > { %v911_v29 = vmul.f32 %v5528_v8, %v910_v46  ;;  %1614 = vmatpush.bf16.msrb.mxu1 %v3586_v30  ;;  %v3934_v46 = vor.u32 %v4313_v44, %v3933_v35  ;;  %v4278_v31 = vld [vmem:[%s5342_s13 + $0x1d4] sm:$0xf0]  ;;  %v3799_v63 = vld [vmem:[%s5342_s13 + $0x1d8] sm:$0xf0]  ;;  %v3653_v62 = vld [vmem:[%s5342_s13 + $0x88] sm:$0xf] }
 0x1fe   : > { %v891_v57 = vmul.f32 %v5532_v12, %v890_v48  ;;  %v3935_v48 = vld [vmem:[%s5342_s13 + $0x2f0] sm:$0xf0]  ;;  %v3798_v0 = vor.u32 %v4278_v31, %v3797_v26  ;;  %v4266_v35 = vld [vmem:[%s5342_s13 + $0x174] sm:$0xf0]  ;;  %v4229_v7 = vld [vmem:[%s5342_s13 + $0x4c] sm:$0xf0] }
 0x1ff   : > { %1632 = vmatpush.bf16.msrb.mxu2 %v3638_v16  ;;  %v3938_v50 = vor.u32 %v4307_v45, %v3935_v48  ;;  %v4260_v45 = vld [vmem:[%s5342_s13 + $0x14c] sm:$0xf]  ;;  %v3693_v48 = vld [vmem:[%s5342_s13 + $0xe0] sm:$0xf]  ;;  %v4223_v9 = vld [vmem:[%s5342_s13 + $0x24] sm:$0xf] }
 0x200   : > { %v895_v5 = vsel %vm5577_vm6, %v5532_v12, %v891_v57  ;;  %v900_v12 = vsub.f32 1.5, %v5569_v43  ;;  %1651 = vmatpush.bf16.msrb.mxu3 %v3642_v22  ;;  %v915_v43 = vsel %vm5627_vm11, %v5528_v8, %v911_v29  ;;  %v4295_v57 = vld [vmem:[%s5342_s13 + $0x264] sm:$0xf]  ;;  %v3790_v29 = vor.u32 %v4277_v23, %v3789_v18  ;;  %v4224_v18 = vld [vmem:[%s5342_s13 + $0x2c] sm:$0xf] }
 0x201   : > { %v917_v15 = vmul.f32 %v895_v5, %v5404_v28  ;;  %v919_v55 = vmul.f32 %v915_v43, %v5402_v27  ;;  %v3890_v60 = vor.u32 %v4295_v57, %v3887_v58  ;;  %v4302_v27 = vld [vmem:[%s5342_s13 + $0x294] sm:$0xf0]  ;;  %v4289_v5 = vld [vmem:[%s5342_s13 + $0x22c] sm:$0xf0]  ;;  %v3749_v43 = vld [vmem:[%s5342_s13 + $0x148] sm:$0xf] }
 0x202   : > { %v901_v38 = vmul.f32 %v5511_v47, %v900_v12  ;;  %v3894_v2 = vor.u32 %v4302_v27, %v3893_v61  ;;  %v3838_v16 = vor.u32 %v4289_v5, %v3837_v4  ;;  %v3846_v12 = vor.u32 %v4290_v13, %v3845_v10  ;;  %v3645_v57 = vld [vmem:[%s5342_s13 + $0x80] sm:$0xf]  ;;  %v4241_v58 = vld [vmem:[%s5342_s13 + $0xac] sm:$0xf0]  ;;  %v4236_v4 = vld [vmem:[%s5342_s13 + $0x8c] sm:$0xf] }
 0x203   : > { %v924_v28 = vmul.f32 %v5567_v42, %v917_v15  ;;  %1633 = vmatpush.bf16.msrb.mxu2 %v3590_v36  ;;  %v926_v11 = vmul.f32 %v5567_v42, %v919_v55  ;;  %v4284_v15 = vld [vmem:[%s5342_s13 + $0x20c] sm:$0xf]  ;;  %v4259_v36 = vld [vmem:[%s5342_s13 + $0x144] sm:$0xf]  ;;  %v3750_v49 = vor.u32 %v4266_v35, %v3749_v43  ;;  %v4254_v55 = vld [vmem:[%s5342_s13 + $0x114] sm:$0xf0] }
 0x204   : > { %v905_v8 = vsel %vm5633_vm12, %v5511_v47, %v901_v38  ;;  %1652 = vmatpush.bf16.msrb.mxu3 %v3594_v41  ;;  %v4301_v47 = vld [vmem:[%s5342_s13 + $0x28c] sm:$0xf0]  ;;  %v3741_v38 = vld [vmem:[%s5342_s13 + $0x140] sm:$0xf]  ;;  %v3743_v41 = vld [vmem:[%s5342_s13 + $0x170] sm:$0xf0] }
 0x205   : > { %v931_v34 = vadd.f32 %v5593_v20, %v924_v28  ;;  %v3886_v59 = vor.u32 %v4301_v47, %v3885_v54  ;;  %v918_v1 = vmul.f32 %v905_v8, %v5392_v19  ;;  %v3847_v19 = vld [vmem:[%s5342_s13 + $0x238] sm:$0xf0]  ;;  %v3791_v28 = vld [vmem:[%s5342_s13 + $0x1d0] sm:$0xf0]  ;;  %v933_v25 = vadd.f32 %v5593_v20, %v926_v11  ;;  %v4253_v8 = vld [vmem:[%s5342_s13 + $0x10c] sm:$0xf0] }
 0x206   : > { %v3850_v22 = vor.u32 %v4284_v15, %v3847_v19  ;;  %v3794_v30 = vor.u32 %v4271_v24, %v3791_v28  ;;  %v3746_v44 = vor.u32 %v4259_v36, %v3743_v41  ;;  %v3694_v52 = vor.u32 %v4253_v8, %v3693_v48  ;;  %v3701_v54 = vld [vmem:[%s5342_s13 + $0xe8] sm:$0xf]  ;;  %v3703_v47 = vld [vmem:[%s5342_s13 + $0x118] sm:$0xf0]  ;;  %v3599_v10 = vld [vmem:[%s5342_s13 + $0x50] sm:$0xf0] }
 0x207   : > { %v5637_v40 = vpack.c.bf16 %v931_v34, %v930_v33  ;;  %v925_v21 = vmul.f32 %v5567_v42, %v918_v1  ;;  %v4272_v42 = vld [vmem:[%s5342_s13 + $0x1ac] sm:$0xf]  ;;  %v3702_v61 = vor.u32 %v4254_v55, %v3701_v54  ;;  %v4242_v1 = vld [vmem:[%s5342_s13 + $0xb4] sm:$0xf0]  ;;  %v3655_v5 = vld [vmem:[%s5342_s13 + $0xb8] sm:$0xf0] }
 0x208   : > { %v3802_v34 = vor.u32 %v4272_v42, %v3799_v63  ;;  %v3654_v11 = vor.u32 %v4242_v1, %v3653_v62  ;;  %v3658_v13 = vor.u32 %v4236_v4, %v3655_v5  ;;  %v3605_v15 = vld [vmem:[%s5342_s13 + $0x28] sm:$0xf] }
 0x209   : > { %1520 = vmatmul.bf16.vlgmr.msra.gmra.mxu0 %v5637_v40  ;;  %1539 = vmatmul.bf16.vlgmr.msra.gmra.mxu1 %v5637_v40  ;;  %v932_v32 = vadd.f32 %v5593_v20, %v925_v21  ;;  %v3742_v20 = vor.u32 %v4265_v39, %v3741_v38  ;;  %v3607_v21 = vld [vmem:[%s5342_s13 + $0x58] sm:$0xf0] }
 0x20a   : > { %1558 = vmatmul.bf16.vlgmr.msra.gmra.mxu2 %v5637_v40  ;;  %1577 = vmatmul.bf16.vlgmr.msra.gmra.mxu3 %v5637_v40 }
 0x20b   : > { %1664 = vmatpush.bf16.msra.mxu0 %v3934_v46  ;;  %1683 = vmatpush.bf16.msra.mxu1 %v3938_v50  ;;  %v5687_v33 = vpack.c.bf16 %v933_v25, %v932_v32  ;;  %v3751_v46 = vld [vmem:[%s5342_s13 + $0x178] sm:$0xf0]  ;;  %v4247_v50 = vld [vmem:[%s5342_s13 + $0xe4] sm:$0xf] }
 0x20c   : > { %1702 = vmatpush.bf16.msra.mxu2 %v3942_v51  ;;  %1721 = vmatpush.bf16.msra.mxu3 %v3946_v56  ;;  %v3754_v37 = vor.u32 %v4260_v45, %v3751_v46  ;;  %v3695_v51 = vld [vmem:[%s5342_s13 + $0x110] sm:$0xf0]  ;;  %v4248_v56 = vld [vmem:[%s5342_s13 + $0xec] sm:$0xf] }
 0x20d   : > { %v3698_v53 = vor.u32 %v4247_v50, %v3695_v51  ;;  %v3706_v27 = vor.u32 %v4248_v56, %v3703_v47 }
 0x20f   : > { %1665 = vmatpush.bf16.msra.mxu0 %v3886_v59  ;;  %1684 = vmatpush.bf16.msra.mxu1 %v3890_v60  ;;  %v4235_v59 = vld [vmem:[%s5342_s13 + $0x84] sm:$0xf]  ;;  %v3647_v60 = vld [vmem:[%s5342_s13 + $0xb0] sm:$0xf0] }
 0x210   : > { %1703 = vmatpush.bf16.msra.mxu2 %v3894_v2  ;;  %1722 = vmatpush.bf16.msra.mxu3 %v3898_v6  ;;  %v3646_v2 = vor.u32 %v4241_v58, %v3645_v57  ;;  %v3650_v3 = vor.u32 %v4235_v59, %v3647_v60  ;;  %v3597_v6 = vld [vmem:[%s5342_s13 + $0x20] sm:$0xf] }
 0x211   : > { %v3598_v19 = vor.u32 %v4229_v7, %v3597_v6 }
 0x213   : > { %1666 = vmatpush.bf16.msra.mxu0 %v3838_v16  ;;  %1685 = vmatpush.bf16.msra.mxu1 %v3842_v17  ;;  %v3602_v16 = vor.u32 %v4223_v9, %v3599_v10  ;;  %v4230_v17 = vld [vmem:[%s5342_s13 + $0x54] sm:$0xf0] }
 0x214   : > { %1704 = vmatpush.bf16.msra.mxu2 %v3846_v12  ;;  %1723 = vmatpush.bf16.msra.mxu3 %v3850_v22  ;;  %v3606_v12 = vor.u32 %v4230_v17, %v3605_v15  ;;  %v3610_v22 = vor.u32 %v4224_v18, %v3607_v21 }
 0x217   : > { %1667 = vmatpush.bf16.msra.mxu0 %v3790_v29  ;;  %1686 = vmatpush.bf16.msra.mxu1 %v3794_v30 }
 0x218   : > { %1705 = vmatpush.bf16.msra.mxu2 %v3798_v0  ;;  %1724 = vmatpush.bf16.msra.mxu3 %v3802_v34 }
 0x219   : > { %1525 = vmatmul.bf16.gmra.mxu0 %v5687_v33  ;;  %1544 = vmatmul.bf16.gmra.mxu1 %v5687_v33 }
 0x21a   : > { %1563 = vmatmul.bf16.gmra.mxu2 %v5687_v33  ;;  %1582 = vmatmul.bf16.gmra.mxu3 %v5687_v33 }
 0x21b   : > { %1668 = vmatpush.bf16.msra.mxu0 %v3742_v20  ;;  %1687 = vmatpush.bf16.msra.mxu1 %v3746_v44 }
 0x21c   : > { %1706 = vmatpush.bf16.msra.mxu2 %v3750_v49  ;;  %1725 = vmatpush.bf16.msra.mxu3 %v3754_v37 }
 0x21f   : > { %1669 = vmatpush.bf16.msra.mxu0 %v3694_v52  ;;  %1688 = vmatpush.bf16.msra.mxu1 %v3698_v53 }
 0x220   : > { %1707 = vmatpush.bf16.msra.mxu2 %v3702_v61  ;;  %1726 = vmatpush.bf16.msra.mxu3 %v3706_v27 }
 0x223   : > { %1670 = vmatpush.bf16.msra.mxu0 %v3646_v2  ;;  %1689 = vmatpush.bf16.msra.mxu1 %v3650_v3 }
 0x224   : > { %1708 = vmatpush.bf16.msra.mxu2 %v3654_v11  ;;  %1727 = vmatpush.bf16.msra.mxu3 %v3658_v13 }
 0x227   : > { %1671 = vmatpush.bf16.msra.mxu0 %v3598_v19  ;;  %1690 = vmatpush.bf16.msra.mxu1 %v3602_v16 }
 0x228   : > { %1709 = vmatpush.bf16.msra.mxu2 %v3606_v12  ;;  %1728 = vmatpush.bf16.msra.mxu3 %v3610_v22 }
 0x229   : > { %1596 = vmatmul.bf16.vlgmr.msrb.gmra.mxu0 %v5637_v40  ;;  %1615 = vmatmul.bf16.vlgmr.msrb.gmra.mxu1 %v5637_v40 }
 0x22a   : > { %1634 = vmatmul.bf16.vlgmr.msrb.gmra.mxu2 %v5637_v40  ;;  %1653 = vmatmul.bf16.vlgmr.msrb.gmra.mxu3 %v5637_v40 }
 0x239   : > { %1601 = vmatmul.bf16.gmra.mxu0 %v5687_v33  ;;  %1620 = vmatmul.bf16.gmra.mxu1 %v5687_v33 }
 0x23a   : > { %1639 = vmatmul.bf16.gmra.mxu2 %v5687_v33  ;;  %1658 = vmatmul.bf16.gmra.mxu3 %v5687_v33 }
 0x249   : > { %1672 = vmatmul.bf16.vlgmr.msra.gmra.mxu0 %v5637_v40  ;;  %1691 = vmatmul.bf16.vlgmr.msra.gmra.mxu1 %v5637_v40 }
 0x24a   : > { %1710 = vmatmul.bf16.vlgmr.msra.gmra.mxu2 %v5637_v40  ;;  %1729 = vmatmul.bf16.vlgmr.msra.gmra.mxu3 %v5637_v40 }
 0x259   : > { %1677 = vmatmul.bf16.gmra.mxu0 %v5687_v33  ;;  %1696 = vmatmul.bf16.gmra.mxu1 %v5687_v33 }
 0x25a   : > { %1715 = vmatmul.bf16.gmra.mxu2 %v5687_v33  ;;  %1734 = vmatmul.bf16.gmra.mxu3 %v5687_v33 }
 0x286   : > { %v1521_v23 = vpop.f32.mrf.mxu0  ;;  %v1540_v24 = vpop.f32.mrf.mxu1 }
 0x287   : > { %v1740_v55 = vpack.c.bf16 %v1540_v24, %v1521_v23 }
 0x289   : > { %v1766_v3 = vunpack.c.l.b16 %v1740_v55  ;;  %v1839_v4 = vunpack.c.h.b16 %v1740_v55 }
 0x28d   : > { %v5741_v28 = vpop.f32.mrf.mxu2  ;;  %v5743_v25 = vpop.f32.mrf.mxu3 }
 0x28e   : > { %v1523_v26 = vpop.f32.mrf.mxu0  ;;  %v1542_v29 = vpop.f32.mrf.mxu1 }
 0x28f   : > { %v1746_v51 = vpack.c.bf16 %v1542_v29, %v1523_v26  ;;  %v1741_v29 = vpack.c.bf16 %v5743_v25, %v5741_v28 }
 0x291   : > { %v1767_v60 = vunpack.c.l.b16 %v1746_v51  ;;  %v1840_v61 = vunpack.c.h.b16 %v1746_v51 }
 0x293   : > { %v1768_v7 = vpack.c.b16 %v1767_v60, %v1766_v3  ;;  %v1841_v9 = vpack.c.b16 %v1840_v61, %v1839_v4 }
 0x295   : > { %v1561_v30 = vpop.f32.mrf.mxu2  ;;  %v1580_v31 = vpop.f32.mrf.mxu3 }
 0x296   : > { %v1526_v42 = vpop.f32.mrf.mxu0  ;;  %v1545_v40 = vpop.f32.mrf.mxu1  ;;  %v1747_v22 = vpack.c.bf16 %v1580_v31, %v1561_v30  ;;  %v1909_v30 = vunpack.c.l.b16 %v1741_v29  ;;  %v1981_v31 = vunpack.c.h.b16 %v1741_v29 }
 0x297   : > { %v5745_v63 = vpack.c.bf16 %v1545_v40, %v1526_v42 }
 0x29d   : > { %v1564_v32 = vpop.f32.mrf.mxu2  ;;  %v1583_v0 = vpop.f32.mrf.mxu3 }
 0x29e   : > { %v5747_v34 = vpack.c.bf16 %v1583_v0, %v1564_v32  ;;  %v5749_v38 = vpop.f32.mrf.mxu0  ;;  %v5751_v33 = vpop.f32.mrf.mxu1 }
 0x2a5   : > { %v5753_v39 = vpop.f32.mrf.mxu2  ;;  %v5755_v36 = vpop.f32.mrf.mxu3 }
 0x2a6   : > { %v1597_v20 = vpop.f32.mrf.mxu0  ;;  %v1616_v41 = vpop.f32.mrf.mxu1 }
 0x2a7   : > { %v1742_v43 = vpack.c.bf16 %v1616_v41, %v1597_v20  ;;  %v1910_v41 = vunpack.c.l.b16 %v1747_v22 }
 0x2a9   : > { %v1772_v49 = vunpack.c.l.b16 %v1742_v43  ;;  %v1843_v37 = vunpack.c.h.b16 %v1742_v43  ;;  %v1982_v43 = vunpack.c.h.b16 %v1747_v22 }
 0x2ad   : > { %v1635_v35 = vpop.f32.mrf.mxu2  ;;  %v1654_v44 = vpop.f32.mrf.mxu3 }
 0x2ae   : > { %v1599_v45 = vpop.f32.mrf.mxu0  ;;  %v1618_v46 = vpop.f32.mrf.mxu1  ;;  %v1743_v54 = vpack.c.bf16 %v1654_v44, %v1635_v35 }
 0x2af   : > { %v1748_v48 = vpack.c.bf16 %v1618_v46, %v1599_v45 }
 0x2b0   : > { %v1915_v27 = vunpack.c.l.b16 %v1743_v54  ;;  %v1985_v62 = vunpack.c.h.b16 %v1743_v54 }
 0x2b1   : > { %v1773_v8 = vunpack.c.l.b16 %v1748_v48  ;;  %v1844_v50 = vunpack.c.h.b16 %v1748_v48 }
 0x2b3   : > { %v1774_v52 = vpack.c.b16 %v1773_v8, %v1772_v49  ;;  %v1845_v53 = vpack.c.b16 %v1844_v50, %v1843_v37  ;;  %v1911_v37 = vpack.c.b16 %v1910_v41, %v1909_v30  ;;  %v1983_v8 = vpack.c.b16 %v1982_v43, %v1981_v31 }
 0x2b5   : > { %v1637_v56 = vpop.f32.mrf.mxu2  ;;  %v1656_v47 = vpop.f32.mrf.mxu3  ;;  %1783 = vmatpush.bf16.xpose.msrb.mxu0 %v1774_v52  ;;  %1854 = vmatpush.bf16.xpose.msrb.mxu2 %v1845_v53 }
 0x2b6   : > { %v1749_v57 = vpack.c.bf16 %v1656_v47, %v1637_v56  ;;  %v1602_v58 = vpop.f32.mrf.mxu0  ;;  %v1621_v59 = vpop.f32.mrf.mxu1 }
 0x2b7   : > { %v1754_v10 = vpack.c.bf16 %v1621_v59, %v1602_v58 }
 0x2b8   : > { %v1916_v1 = vunpack.c.l.b16 %v1749_v57  ;;  %v1986_v2 = vunpack.c.h.b16 %v1749_v57  ;;  %v1758_v57 = vpack.c.bf16 %v5751_v33, %v5749_v38 }
 0x2b9   : > { %v2057_v17 = vunpack.c.l.b16 %v1754_v10  ;;  %v2127_v18 = vunpack.c.h.b16 %v1754_v10 }
 0x2ba   : > { %v1917_v5 = vpack.c.b16 %v1916_v1, %v1915_v27  ;;  %v1987_v6 = vpack.c.b16 %v1986_v2, %v1985_v62  ;;  %v2052_v1 = vunpack.c.l.b16 %v1758_v57  ;;  %v2124_v2 = vunpack.c.h.b16 %v1758_v57 }
 0x2bc   : > { %1784 = vmatmul.bf16.vlgmr.msrb.gmra.mxu0 %v1768_v7  ;;  %1855 = vmatmul.bf16.vlgmr.msrb.gmra.mxu2 %v1841_v9  ;;  %v2051_v7 = vunpack.c.l.b16 %v5745_v63  ;;  %v2123_v9 = vunpack.c.h.b16 %v5745_v63 }
 0x2bd   : > { %1926 = vmatpush.bf16.xpose.msra.mxu0 %v1917_v5  ;;  %1996 = vmatpush.bf16.xpose.msra.mxu2 %v1987_v6  ;;  %v1640_v11 = vpop.f32.mrf.mxu2  ;;  %v1659_v13 = vpop.f32.mrf.mxu3 }
 0x2be   : > { %v1604_v15 = vpop.f32.mrf.mxu0  ;;  %v1623_v19 = vpop.f32.mrf.mxu1  ;;  %v1755_v26 = vpack.c.bf16 %v1659_v13, %v1640_v11  ;;  %v2053_v33 = vpack.c.b16 %v2052_v1, %v2051_v7  ;;  %v2125_v11 = vpack.c.b16 %v2124_v2, %v2123_v9  ;;  %v1759_v13 = vpack.c.bf16 %v5755_v36, %v5753_v39 }
 0x2bf   : > { %v1760_v16 = vpack.c.bf16 %v1623_v19, %v1604_v15 }
 0x2c0   : > { %v2199_v35 = vunpack.c.l.b16 %v1755_v26  ;;  %v2269_v44 = vunpack.c.h.b16 %v1755_v26  ;;  %v2194_v15 = vunpack.c.l.b16 %v1759_v13  ;;  %v2266_v19 = vunpack.c.h.b16 %v1759_v13 }
 0x2c1   : > { %v2058_v21 = vunpack.c.l.b16 %v1760_v16  ;;  %v2128_v12 = vunpack.c.h.b16 %v1760_v16  ;;  %v2193_v16 = vunpack.c.l.b16 %v5747_v34 }
 0x2c3   : > { %v2059_v23 = vpack.c.b16 %v2058_v21, %v2057_v17  ;;  %v2129_v24 = vpack.c.b16 %v2128_v12, %v2127_v18  ;;  %v2265_v17 = vunpack.c.h.b16 %v5747_v34  ;;  %v2195_v18 = vpack.c.b16 %v2194_v15, %v2193_v16 }
 0x2c5   : > { %v1642_v42 = vpop.f32.mrf.mxu2  ;;  %v1661_v40 = vpop.f32.mrf.mxu3  ;;  %2068 = vmatpush.bf16.xpose.msrb.mxu0 %v2059_v23  ;;  %2138 = vmatpush.bf16.xpose.msrb.mxu2 %v2129_v24  ;;  %v2267_v21 = vpack.c.b16 %v2266_v19, %v2265_v17 }
 0x2c6   : > { %v1761_v32 = vpack.c.bf16 %v1661_v40, %v1642_v42  ;;  %v1673_v0 = vpop.f32.mrf.mxu0  ;;  %v1692_v20 = vpop.f32.mrf.mxu1 }
 0x2c7   : > { %v1744_v28 = vpack.c.bf16 %v1692_v20, %v1673_v0 }
 0x2c8   : > { %v2200_v45 = vunpack.c.l.b16 %v1761_v32  ;;  %v2270_v46 = vunpack.c.h.b16 %v1761_v32 }
 0x2c9   : > { %v1816_v54 = vunpack.c.l.b16 %v1744_v28  ;;  %v1884_v55 = vunpack.c.h.b16 %v1744_v28 }
 0x2ca   : > { %v2201_v48 = vpack.c.b16 %v2200_v45, %v2199_v35  ;;  %v2271_v49 = vpack.c.b16 %v2270_v46, %v2269_v44 }
 0x2cc   : > { %1927 = vmatmul.bf16.vlgmr.msra.gmra.mxu0 %v1911_v37  ;;  %1997 = vmatmul.bf16.vlgmr.msra.gmra.mxu2 %v1983_v8 }
 0x2cd   : > { %v1711_v25 = vpop.f32.mrf.mxu2  ;;  %v1730_v50 = vpop.f32.mrf.mxu3  ;;  %2210 = vmatpush.bf16.xpose.msra.mxu0 %v2201_v48  ;;  %2280 = vmatpush.bf16.xpose.msra.mxu2 %v2271_v49 }
 0x2ce   : > { %v1675_v51 = vpop.f32.mrf.mxu0  ;;  %v1694_v52 = vpop.f32.mrf.mxu1  ;;  %v1745_v60 = vpack.c.bf16 %v1730_v50, %v1711_v25 }
 0x2cf   : > { %v1750_v53 = vpack.c.bf16 %v1694_v52, %v1675_v51 }
 0x2d0   : > { %v1958_v3 = vunpack.c.l.b16 %v1745_v60  ;;  %v2026_v4 = vunpack.c.h.b16 %v1745_v60 }
 0x2d1   : > { %v1817_v56 = vunpack.c.l.b16 %v1750_v53  ;;  %v1885_v47 = vunpack.c.h.b16 %v1750_v53 }
 0x2d3   : > { %v1818_v58 = vpack.c.b16 %v1817_v56, %v1816_v54  ;;  %v1886_v59 = vpack.c.b16 %v1885_v47, %v1884_v55 }
 0x2d5   : > { %v1713_v61 = vpop.f32.mrf.mxu2  ;;  %v1732_v27 = vpop.f32.mrf.mxu3  ;;  %1830 = vmatpush.bf16.msrb.mxu1 %v1818_v58  ;;  %1898 = vmatpush.bf16.msrb.mxu3 %v1886_v59 }
 0x2d6   : > { %v1751_v62 = vpack.c.bf16 %v1732_v27, %v1713_v61  ;;  %v5767_v63 = vpop.f32.mrf.mxu0 }
 0x2d8   : > { %v1959_v5 = vunpack.c.l.b16 %v1751_v62  ;;  %v2027_v6 = vunpack.c.h.b16 %v1751_v62 }
 0x2da   : > { %v1960_v10 = vpack.c.b16 %v1959_v5, %v1958_v3  ;;  %v2028_v38 = vpack.c.b16 %v2027_v6, %v2026_v4 }
 0x2dc   : > { %1972 = vmatpush.bf16.msra.mxu1 %v1960_v10  ;;  %2040 = vmatpush.bf16.msra.mxu3 %v2028_v38 }
 0x2dd   : > { %2069 = vmatmul.bf16.vlgmr.msrb.gmra.mxu0 %v2053_v33  ;;  %2139 = vmatmul.bf16.vlgmr.msrb.gmra.mxu2 %v2125_v11  ;;  %v5769_v12 = vpop.f32.mrf.mxu2 }
 0x2de   : > { %v5771_v22 = vpop.f32.mrf.mxu0 }
 0x2e5   : > { %v5773_v23 = vpop.f32.mrf.mxu2 }
 0x2ed   : > { %2211 = vmatmul.bf16.vlgmr.msra.gmra.mxu0 %v2195_v18  ;;  %2281 = vmatmul.bf16.vlgmr.msra.gmra.mxu2 %v2267_v21 }
 0x339   : > { %v1785_v39 = vpop.f32.mrf.mxu0 }
 0x33a   : > { %v1791_v36 = vsel %vm1790_vm13, %v1785_v39, -inf }
 0x33b   : > { %1792 = vmax.xlane.f32.xlu1 %v1791_v36 }
 0x33f   : > { %v1856_v24 = vpop.f32.mrf.mxu2 }
 0x340   : > { %v1861_v34 = vsel %vm1790_vm13, %v1856_v24, -inf }
 0x341   : > { %1862 = vmax.xlane.f32.xlu2 %v1861_v34  ;;  %v1787_v26 = vpop.f32.mrf.mxu0 }
 0x342   : > { %v1794_v40 = vsel %vm1790_vm13, %v1787_v26, -inf }
 0x347   : > { %v1858_v29 = vpop.f32.mrf.mxu2 }
 0x348   : > { %v1864_v42 = vsel %vm1790_vm13, %v1858_v29, -inf }
 0x349   : > { %1865 = vmax.xlane.f32.xlu0 %v1864_v42  ;;  %v1928_v32 = vpop.f32.mrf.mxu0  ;;  %1795 = vmax.xlane.f32.xlu2 %v1794_v40 }
 0x34a   : > { %v1933_v41 = vsel %vm1790_vm13, %v1928_v32, -inf }
 0x34f   : > { %v1998_v0 = vpop.f32.mrf.mxu2 }
 0x350   : > { %v2003_v20 = vsel %vm1790_vm13, %v1998_v0, -inf }
 0x351   : > { %2004 = vmax.xlane.f32.xlu0 %v2003_v20  ;;  %v5781_v43 = vpop.f32.mrf.mxu0  ;;  %1934 = vmax.xlane.f32.xlu2 %v1933_v41 }
 0x352   : > { %v1936_v45 = vsel %vm1790_vm13, %v5781_v43, -inf }
 0x357   : > { %v5783_v35 = vpop.f32.mrf.mxu2 }
 0x358   : > { %v2006_v44 = vsel %vm1790_vm13, %v5783_v35, -inf }
 0x359   : > { %2007 = vmax.xlane.f32.xlu1 %v2006_v44  ;;  %1937 = vmax.xlane.f32.xlu0 %v1936_v45 }
 0x35a   : > { %v5789_v46 = vpop.f32.mrf.mxu0 }
 0x35b   : > { %v2075_v48 = vsel %vm1790_vm13, %v5789_v46, -inf }
 0x360   : > { %v5791_v30 = vpop.f32.mrf.mxu2 }
 0x361   : > { %v2145_v31 = vsel %vm1790_vm13, %v5791_v30, -inf  ;;  %2076 = vmax.xlane.f32.xlu0 %v2075_v48 }
 0x362   : > { %2146 = vmax.xlane.f32.xlu1 %v2145_v31  ;;  %v5797_v49 = vpop.f32.mrf.mxu0 }
 0x363   : > { %v2078_v8 = vsel %vm1790_vm13, %v5797_v49, -inf }
 0x368   : > { %v5799_v37 = vpop.f32.mrf.mxu2 }
 0x369   : > { %v2148_v28 = vsel %vm1790_vm13, %v5799_v37, -inf }
 0x36a   : > { %v5805_v25 = vpop.f32.mrf.mxu0  ;;  %2079 = vmax.xlane.f32.xlu1 %v2078_v8  ;;  %2149 = vmax.xlane.f32.xlu2 %v2148_v28 }
 0x36b   : > { %v2217_v50 = vsel %vm1790_vm13, %v5805_v25, -inf }
 0x36c   : > { %2218 = vmax.xlane.f32.xlu0 %v2217_v50 }
 0x370   : > { %v5809_v51 = vpop.f32.mrf.mxu2 }
 0x371   : > { %v2287_v52 = vsel %vm1790_vm13, %v5809_v51, -inf }
 0x372   : > { %2288 = vmax.xlane.f32.xlu2 %v2287_v52  ;;  %v5821_v7 = vpop.f32.mrf.mxu0 }
 0x373   : > { %v2220_v15 = vsel %vm1790_vm13, %v5821_v7, -inf }
 0x378   : > { %v5813_v53 = vpop.f32.mrf.mxu2 }
 0x379   : > { %v2290_v54 = vsel %vm1790_vm13, %v5813_v53, -inf }
 0x37a   : > { %2291 = vmax.xlane.f32.xlu0 %v2290_v54 }
 0x3ae   : > { %v1793_v57 = vpop.xlane.xlu1 %1792 }
 0x3af   : > { %v1797_v62 = vsub.f32 %v1785_v39, %v1793_v57 }
 0x3b1   : > { %v1799_v4 = vmul.f32 1.442695, %v1797_v62 }
 0x3b4   : > { %v1863_v55 = vpop.xlane.xlu2 %1862 }
 0x3b5   : > { %v1867_v56 = vsub.f32 %v1856_v24, %v1863_v55 }
 0x3b7   : > { %v1869_v47 = vmul.f32 1.442695, %v1867_v56 }
 0x3b9   : > { %4504 = vpow2.f32 %v1869_v47 }
 0x3bc   : > { %v1866_v58 = vpop.xlane.xlu0 %1865  ;;  %v1796_v59 = vpop.xlane.xlu2 %1795 }
 0x3bd   : > { %v1868_v60 = vsub.f32 %v1858_v29, %v1866_v58  ;;  %v1798_v61 = vsub.f32 %v1787_v26, %v1796_v59 }
 0x3bf   : > { %v5817_v27 = vpop.eup %4504  ;;  %v1871_v1 = vmul.f32 1.442695, %v1868_v60  ;;  %v1801_v2 = vmul.f32 1.442695, %v1798_v61 }
 0x3c0   : > { %v1873_v3 = vsel %vm1790_vm13, %v5817_v27, 0.0 }
 0x3c1   : > { %4506 = vpow2.f32 %v1871_v1  ;;  %1874 = vadd.xlane.f32.xlu1 %v1873_v3 }
 0x3c2   : > { %4508 = vpow2.f32 %v1801_v2 }
 0x3c3   : > { %4510 = vpow2.f32 %v1799_v4 }
 0x3c4   : > { %v2005_v5 = vpop.xlane.xlu0 %2004  ;;  %v1935_v6 = vpop.xlane.xlu2 %1934 }
 0x3c5   : > { %v2009_v9 = vsub.f32 %v1998_v0, %v2005_v5  ;;  %v1939_v10 = vsub.f32 %v1928_v32, %v1935_v6 }
 0x3c7   : > { %v5823_v38 = vpop.eup %4506  ;;  %v2011_v33 = vmul.f32 1.442695, %v2009_v9  ;;  %v1941_v11 = vmul.f32 1.442695, %v1939_v10 }
 0x3c8   : > { %v5825_v13 = vpop.eup %4508  ;;  %v1876_v19 = vsel %vm1790_vm13, %v5823_v38, 0.0 }
 0x3c9   : > { %4512 = vpow2.f32 %v2011_v33  ;;  %2221 = vmax.xlane.f32.xlu1 %v2220_v15  ;;  %1877 = vadd.xlane.f32.xlu2 %v1876_v19  ;;  %v1806_v16 = vsel %vm1790_vm13, %v5825_v13, 0.0  ;;  %v5833_v21 = vpop.eup %4510  ;;  %v1697_v15 = vpop.f32.mrf.mxu1 }
 0x3ca   : > { %4514 = vpow2.f32 %v1941_v11  ;;  %1807 = vadd.xlane.f32.xlu0 %v1806_v16  ;;  %v1803_v40 = vsel %vm1790_vm13, %v5833_v21, 0.0 }
 0x3cc   : > { %v2008_v17 = vpop.xlane.xlu1 %2007  ;;  %v1938_v18 = vpop.xlane.xlu0 %1937 }
 0x3cd   : > { %v2010_v39 = vsub.f32 %v5783_v35, %v2008_v17  ;;  %v1940_v36 = vsub.f32 %v5781_v43, %v1938_v18 }
 0x3cf   : > { %v5837_v24 = vpop.eup %4512  ;;  %v2013_v34 = vmul.f32 1.442695, %v2010_v39  ;;  %v1943_v26 = vmul.f32 1.442695, %v1940_v36 }
 0x3d0   : > { %v5839_v29 = vpop.eup %4514  ;;  %v2015_v42 = vsel %vm1790_vm13, %v5837_v24, 0.0 }
 0x3d1   : > { %4516 = vpow2.f32 %v2013_v34  ;;  %2016 = vadd.xlane.f32.xlu1 %v2015_v42  ;;  %1804 = vadd.xlane.f32.xlu2 %v1803_v40  ;;  %v1945_v32 = vsel %vm1790_vm13, %v5839_v29, 0.0  ;;  %v1699_v19 = vpop.f32.mrf.mxu1  ;;  %v1735_v42 = vpop.f32.mrf.mxu3 }
 0x3d2   : > { %4518 = vpow2.f32 %v1943_v26  ;;  %1946 = vadd.xlane.f32.xlu0 %v1945_v32  ;;  %v1762_v39 = vpack.c.bf16 %v1699_v19, %v5771_v22  ;;  %v1756_v26 = vpack.c.bf16 %v1697_v15, %v5767_v63 }
 0x3d4   : > { %v2077_v20 = vpop.xlane.xlu0 %2076 }
 0x3d5   : > { %v2147_v0 = vpop.xlane.xlu1 %2146  ;;  %v2081_v43 = vsub.f32 %v5789_v46, %v2077_v20 }
 0x3d6   : > { %v2151_v41 = vsub.f32 %v5791_v30, %v2147_v0  ;;  %v2169_v0 = vunpack.c.h.b16 %v1762_v39 }
 0x3d7   : > { %v5849_v35 = vpop.eup %4516  ;;  %v2083_v45 = vmul.f32 1.442695, %v2081_v43 }
 0x3d8   : > { %v2153_v44 = vmul.f32 1.442695, %v2151_v41  ;;  %v5851_v31 = vpop.eup %4518  ;;  %v2018_v48 = vsel %vm1790_vm13, %v5849_v35, 0.0 }
 0x3d9   : > { %v1948_v8 = vsel %vm1790_vm13, %v5851_v31, 0.0  ;;  %2019 = vadd.xlane.f32.xlu2 %v2018_v48 }
 0x3da   : > { %4520 = vpow2.f32 %v2153_v44  ;;  %1949 = vadd.xlane.f32.xlu1 %v1948_v8  ;;  %v2168_v44 = vunpack.c.h.b16 %v1756_v26 }
 0x3db   : > { %4522 = vpow2.f32 %v2083_v45 }
 0x3dc   : > { %v2170_v22 = vpack.c.b16 %v2169_v0, %v2168_v44  ;;  %v4329_v44 = vld [vmem:[%s5344_s3 + $0x70] sm:$0xff] }
 0x3dd   : > { %v2080_v28 = vpop.xlane.xlu1 %2079  ;;  %v2150_v30 = vpop.xlane.xlu2 %2149 }
 0x3de   : > { %v2082_v46 = vsub.f32 %v5797_v49, %v2080_v28  ;;  %v2152_v50 = vsub.f32 %v5799_v37, %v2150_v30  ;;  %v2101_v30 = vunpack.c.l.b16 %v1762_v39 }
 0x3df   : > { %v2219_v52 = vpop.xlane.xlu0 %2218 }
 0x3e0   : > { %v5859_v54 = vpop.eup %4520  ;;  %v2085_v55 = vmul.f32 1.442695, %v2082_v46  ;;  %v2155_v56 = vmul.f32 1.442695, %v2152_v50  ;;  %v2223_v47 = vsub.f32 %v5805_v25, %v2219_v52  ;;  %v2100_v52 = vunpack.c.l.b16 %v1756_v26 }
 0x3e1   : > { %v5862_v57 = vpop.eup %4522  ;;  %v2157_v58 = vsel %vm1790_vm13, %v5859_v54, 0.0 }
 0x3e2   : > { %4524 = vpow2.f32 %v2085_v55  ;;  %v2087_v59 = vsel %vm1790_vm13, %v5862_v57, 0.0  ;;  %2158 = vadd.xlane.f32.xlu2 %v2157_v58  ;;  %v2225_v49 = vmul.f32 1.442695, %v2223_v47 }
 0x3e3   : > { %4526 = vpow2.f32 %v2155_v56  ;;  %2088 = vadd.xlane.f32.xlu1 %v2087_v59  ;;  %v1757_v59 = vpack.c.bf16 %v1735_v42, %v5769_v12 }
 0x3e4   : > { %4528 = vpow2.f32 %v2225_v49  ;;  %v2102_v49 = vpack.c.b16 %v2101_v30, %v2100_v52  ;;  %v4325_v30 = vld [vmem:[%s5344_s3 + $0x50] sm:$0xff]  ;;  %v4316_v52 = vld [vmem:[%s5344_s3 + $0x8] sm:$0xff] }
 0x3e5   : > { %v2289_v37 = vpop.xlane.xlu2 %2288 }
 0x3e6   : > { %v2293_v60 = vsub.f32 %v5809_v51, %v2289_v37 }
 0x3e8   : > { %v5869_v61 = vpop.eup %4524  ;;  %v2295_v25 = vmul.f32 1.442695, %v2293_v60 }
 0x3e9   : > { %v5871_v62 = vpop.eup %4526  ;;  %v2090_v1 = vsel %vm1790_vm13, %v5869_v61, 0.0 }
 0x3ea   : > { %4530 = vpow2.f32 %v2295_v25  ;;  %2091 = vadd.xlane.f32.xlu2 %v2090_v1  ;;  %v2160_v2 = vsel %vm1790_vm13, %v5871_v62, 0.0  ;;  %v5877_v4 = vpop.eup %4528  ;;  %v2310_v1 = vunpack.c.h.b16 %v1757_v59 }
 0x3eb   : > { %2161 = vadd.xlane.f32.xlu0 %v2160_v2  ;;  %v2229_v9 = vsel %vm1790_vm13, %v5877_v4, 0.0 }
 0x3ed   : > { %v2292_v3 = vpop.xlane.xlu0 %2291 }
 0x3ee   : > { %v2294_v51 = vsub.f32 %v5813_v53, %v2292_v3 }
 0x3f0   : > { %v5880_v5 = vpop.eup %4530  ;;  %v2297_v6 = vmul.f32 1.442695, %v2294_v51  ;;  %v4322_v51 = vld [vmem:[%s5344_s3 + $0x38] sm:$0xff] }
 0x3f1   : > { %v2299_v10 = vsel %vm1790_vm13, %v5880_v5, 0.0  ;;  %2617 = vmatpush.bf16.msrb.mxu0 %v4322_v51 }
 0x3f2   : > { %4532 = vpow2.f32 %v2297_v6  ;;  %2230 = vadd.xlane.f32.xlu2 %v2229_v9 }
 0x3f3   : > { %2300 = vadd.xlane.f32.xlu0 %v2299_v10 }
 0x3f8   : > { %v5886_v33 = vpop.eup %4532 }
 0x3f9   : > { %v2302_v11 = vsel %vm1790_vm13, %v5886_v33, 0.0 }
 0x3fa   : > { %2303 = vadd.xlane.f32.xlu1 %v2302_v11 }
 0x434   : > { %v1875_v53 = vpop.xlane.xlu1 %1874 }
 0x435   : > { %4534 = vrcp.f32 %v1875_v53 }
 0x43b   : > { %v4535_v34 = vpop.eup %4534 }
 0x43c   : > { %v2222_v16 = vpop.xlane.xlu1 %2221  ;;  %v1878_v17 = vpop.xlane.xlu2 %1877  ;;  %v1881_v20 = vmul.f32 %v4535_v34, %v5817_v27 }
 0x43d   : > { %v2224_v18 = vsub.f32 %v5821_v7, %v2222_v16  ;;  %4536 = vrcp.f32 %v1878_v17  ;;  %v1808_v40 = vpop.xlane.xlu0 %1807  ;;  %v1737_v27 = vpop.f32.mrf.mxu3 }
 0x43e   : > { %v1763_v55 = vpack.c.bf16 %v1737_v27, %v5773_v23  ;;  %v4338_v27 = vld [vmem:[%s5344_s3 + $0xb8] sm:$0xff] }
 0x43f   : > { %v2227_v36 = vmul.f32 1.442695, %v2224_v18  ;;  %2655 = vmatpush.bf16.msrb.mxu2 %v4338_v27  ;;  %v4592_v27 = vld [vmem:[#allocation2 + $0x10] sm:$0xff] }
 0x440   : > { %v2311_v25 = vunpack.c.h.b16 %v1763_v55  ;;  %v2243_v10 = vunpack.c.l.b16 %v1763_v55  ;;  %v4324_v55 = vld [vmem:[%s5344_s3 + $0x48] sm:$0xff] }
 0x441   : > { %4538 = vpow2.f32 %v2227_v36 }
 0x442   : > { %4540 = vrcp.f32 %v1808_v40  ;;  %v2312_v3 = vpack.c.b16 %v2311_v25, %v2310_v1  ;;  %v4334_v25 = vld [vmem:[%s5344_s3 + $0x98] sm:$0xff]  ;;  %v4333_v1 = vld [vmem:[%s5344_s3 + $0x90] sm:$0xff] }
 0x443   : > { %v4537_v32 = vpop.eup %4536 }
 0x444   : > { %v1882_v41 = vmul.f32 %v4537_v32, %v5823_v38  ;;  %v1805_v43 = vpop.xlane.xlu2 %1804  ;;  %v2017_v45 = vpop.xlane.xlu1 %2016 }
 0x445   : > { %4542 = vrcp.f32 %v1805_v43  ;;  %v1947_v37 = vpop.xlane.xlu0 %1946 }
 0x446   : > { %v1883_v7 = vpack.c.bf16 %v1882_v41, %v1881_v20  ;;  %4544 = vrcp.f32 %v2017_v45  ;;  %v4328_v45 = vld [vmem:[%s5344_s3 + $0x68] sm:$0xff] }
 0x447   : > { %v5895_v48 = vpop.eup %4538 }
 0x448   : > { %3948 = vmatmul.msk.bf16.vlgmr.msrb.gmra.mxu3 %vm1790_vm13, %v1883_v7  ;;  %v2232_v63 = vsel %vm1790_vm13, %v5895_v48, 0.0  ;;  %v4541_v8 = vpop.eup %4540  ;;  %v4320_v7 = vld [vmem:[%s5344_s3 + $0x28] sm:$0xff] }
 0x449   : > { %2182 = vmatpush.bf16.msrb.mxu3 %v2170_v22  ;;  %2233 = vadd.xlane.f32.xlu0 %v2232_v63  ;;  %v1812_v46 = vmul.f32 %v4541_v8, %v5825_v13  ;;  %v4346_v22 = vld [vmem:[%s5344_s3 + $0xf8] sm:$0xff] }
 0x44a   : > { %v4318_v63 = vld [vmem:[%s5344_s3 + $0x18] sm:$0xff] }
 0x44b   : > { %v4543_v28 = vpop.eup %4542  ;;  %v4326_v8 = vld [vmem:[%s5344_s3 + $0x58] sm:$0xff] }
 0x44c   : > { %v2020_v38 = vpop.xlane.xlu2 %2019  ;;  %v1811_v50 = vmul.f32 %v4543_v28, %v5833_v21  ;;  %v4545_v58 = vpop.eup %4544  ;;  %v4317_v28 = vld [vmem:[%s5344_s3 + $0x10] sm:$0xff] }
 0x44d   : > { %4546 = vrcp.f32 %v2020_v38  ;;  %v1950_v47 = vpop.xlane.xlu1 %1949  ;;  %v2023_v13 = vmul.f32 %v4545_v58, %v5837_v24  ;;  %v4345_v38 = vld [vmem:[%s5344_s3 + $0xf0] sm:$0xff]  ;;  %v4315_v58 = vld [vmem:[%s5344_s3] sm:$0xff] }
 0x44e   : > { %v1813_v56 = vpack.c.bf16 %v1812_v46, %v1811_v50  ;;  %4548 = vrcp.f32 %v1950_v47  ;;  %v4337_v46 = vld [vmem:[%s5344_s3 + $0xb0] sm:$0xff]  ;;  %v4344_v50 = vld [vmem:[%s5344_s3 + $0xe8] sm:$0xff]  ;;  %v4343_v47 = vld [vmem:[%s5344_s3 + $0xe0] sm:$0xff] }
 0x44f   : > { %4550 = vrcp.f32 %v1947_v37  ;;  %2656 = vmatpush.bf16.msrb.mxu2 %v4337_v46 }
 0x450   : > { %3947 = vmatmul.msk.bf16.vlgmr.msrb.gmra.mxu1 %vm1790_vm13, %v1813_v56  ;;  %v4336_v56 = vld [vmem:[%s5344_s3 + $0xa8] sm:$0xff] }
 0x451   : > { %2114 = vmatpush.bf16.msrb.mxu1 %v2102_v49  ;;  %v4335_v49 = vld [vmem:[%s5344_s3 + $0xa0] sm:$0xff] }
 0x453   : > { %v4547_v60 = vpop.eup %4546  ;;  %2657 = vmatpush.bf16.msrb.mxu2 %v4336_v56  ;;  %v4593_v56 = vld [vmem:[#allocation2] sm:$0xff] }
 0x454   : > { %v2024_v21 = vmul.f32 %v4547_v60, %v5849_v35  ;;  %v4549_v12 = vpop.eup %4548  ;;  %v2242_v35 = vunpack.c.l.b16 %v1757_v59  ;;  %v4323_v59 = vld [vmem:[%s5344_s3 + $0x40] sm:$0xff]  ;;  %v4342_v60 = vld [vmem:[%s5344_s3 + $0xd8] sm:$0xff] }
 0x455   : > { %v2159_v2 = vpop.xlane.xlu2 %2158  ;;  %v4551_v6 = vpop.eup %4550  ;;  %v1954_v9 = vmul.f32 %v4549_v12, %v5851_v31 }
 0x456   : > { %v2025_v23 = vpack.c.bf16 %v2024_v21, %v2023_v13  ;;  %4552 = vrcp.f32 %v2159_v2  ;;  %v1953_v24 = vmul.f32 %v4551_v6, %v5839_v29  ;;  %v2244_v19 = vpack.c.b16 %v2243_v10, %v2242_v35  ;;  %v2089_v17 = vpop.xlane.xlu1 %2088  ;;  %v4341_v13 = vld [vmem:[%s5344_s3 + $0xd0] sm:$0xff] }
 0x457   : > { %2658 = vmatpush.bf16.msrb.mxu2 %v4335_v49 }
 0x458   : > { %3950 = vmatmul.msk.bf16.vlgmr.msra.gmra.mxu3 %vm1790_vm13, %v2025_v23  ;;  %v1955_v15 = vpack.c.bf16 %v1954_v9, %v1953_v24  ;;  %v4340_v23 = vld [vmem:[%s5344_s3 + $0xc8] sm:$0xff]  ;;  %v4339_v9 = vld [vmem:[%s5344_s3 + $0xc0] sm:$0xff] }
 0x459   : > { %2324 = vmatpush.bf16.msra.mxu3 %v2312_v3  ;;  %v4332_v3 = vld [vmem:[%s5344_s3 + $0x88] sm:$0xff] }
 0x45b   : > { %2659 = vmatpush.bf16.msrb.mxu2 %v4334_v25 }
 0x45c   : > { %v4553_v16 = vpop.eup %4552 }
 0x45d   : > { %v2092_v53 = vpop.xlane.xlu2 %2091  ;;  %v2165_v31 = vmul.f32 %v4553_v16, %v5859_v54  ;;  %v4330_v54 = vld [vmem:[%s5344_s3 + $0x78] sm:$0xff] }
 0x45e   : > { %v2162_v11 = vpop.xlane.xlu0 %2161 }
 0x45f   : > { %4554 = vrcp.f32 %v2162_v11  ;;  %2660 = vmatpush.bf16.msrb.mxu2 %v4333_v1  ;;  %v4331_v11 = vld [vmem:[%s5344_s3 + $0x80] sm:$0xff] }
 0x460   : > { %3949 = vmatmul.msk.bf16.vlgmr.msra.gmra.mxu1 %vm1790_vm13, %v1955_v15  ;;  %4556 = vrcp.f32 %v2092_v53 }
 0x461   : > { %2256 = vmatpush.bf16.msra.mxu1 %v2244_v19  ;;  %4558 = vrcp.f32 %v2089_v17 }
 0x463   : > { %2661 = vmatpush.bf16.msrb.mxu2 %v4332_v3 }
 0x465   : > { %v4555_v18 = vpop.eup %4554  ;;  %v2231_v37 = vpop.xlane.xlu2 %2230 }
 0x466   : > { %v2166_v39 = vmul.f32 %v4555_v18, %v5871_v62  ;;  %v2301_v29 = vpop.xlane.xlu0 %2300  ;;  %v4557_v34 = vpop.eup %4556 }
 0x467   : > { %v4559_v26 = vpop.eup %4558  ;;  %4560 = vrcp.f32 %v2301_v29  ;;  %v2096_v42 = vmul.f32 %v4557_v34, %v5869_v61  ;;  %2662 = vmatpush.bf16.msrb.mxu2 %v4331_v11 }
 0x468   : > { %v2167_v36 = vpack.c.bf16 %v2166_v39, %v2165_v31  ;;  %v2095_v32 = vmul.f32 %v4559_v26, %v5862_v57  ;;  %v4321_v57 = vld [vmem:[%s5344_s3 + $0x30] sm:$0xff] }
 0x469   : > { %2618 = vmatpush.bf16.msrb.mxu0 %v4321_v57 }
 0x46a   : > { %3952 = vmatmul.msk.bf16.vlgmr.msrb.gmra.mxu3 %vm1790_vm13, %v2167_v36  ;;  %v2097_v0 = vpack.c.bf16 %v2096_v42, %v2095_v32 }
 0x46b   : > { %2674 = vmatpush.bf16.msrb.mxu3 %v4346_v22 }
 0x46d   : > { %v2304_v40 = vpop.xlane.xlu1 %2303  ;;  %v4561_v62 = vpop.eup %4560  ;;  %2619 = vmatpush.bf16.msrb.mxu0 %v4320_v7 }
 0x46e   : > { %4562 = vrcp.f32 %v2304_v40  ;;  %v2307_v41 = vmul.f32 %v4561_v62, %v5880_v5  ;;  %v4319_v5 = vld [vmem:[%s5344_s3 + $0x20] sm:$0xff] }
 0x46f   : > { %2675 = vmatpush.bf16.msrb.mxu3 %v4345_v38  ;;  %4564 = vrcp.f32 %v2231_v37 }
 0x470   : > { %3951 = vmatmul.msk.bf16.vlgmr.msrb.gmra.mxu1 %vm1790_vm13, %v2097_v0 }
 0x471   : > { %2636 = vmatpush.bf16.msrb.mxu1 %v4330_v54  ;;  %2620 = vmatpush.bf16.msrb.mxu0 %v4319_v5 }
 0x473   : > { %2676 = vmatpush.bf16.msrb.mxu3 %v4344_v50 }
 0x474   : > { %v4563_v20 = vpop.eup %4562 }
 0x475   : > { %v2308_v61 = vmul.f32 %v4563_v20, %v5886_v33  ;;  %2637 = vmatpush.bf16.msrb.mxu1 %v4329_v44  ;;  %v4327_v33 = vld [vmem:[%s5344_s3 + $0x60] sm:$0xff]  ;;  %2621 = vmatpush.bf16.msrb.mxu0 %v4318_v63  ;;  %v4565_v2 = vpop.eup %4564 }
 0x476   : > { %v2237_v51 = vmul.f32 %v4565_v2, %v5877_v4  ;;  %v4594_v2 = vld [vmem:[#allocation2 + $0x18] sm:$0xff] }
 0x477   : > { %v2309_v43 = vpack.c.bf16 %v2308_v61, %v2307_v41  ;;  %2677 = vmatpush.bf16.msrb.mxu3 %v4343_v47 }
 0x479   : > { %2638 = vmatpush.bf16.msrb.mxu1 %v4328_v45  ;;  %2622 = vmatpush.bf16.msrb.mxu0 %v4317_v28 }
 0x47a   : > { %3954 = vmatmul.msk.bf16.vlgmr.msra.gmra.mxu3 %vm1790_vm13, %v2309_v43  ;;  %v4490_v43 = vld [vmem:[%s677_s4] ss:$0 sm:$0xff] }
 0x47b   : > { %2678 = vmatpush.bf16.msrb.mxu3 %v4342_v60 }
 0x47d   : > { %2639 = vmatpush.bf16.msrb.mxu1 %v4327_v33  ;;  %2623 = vmatpush.bf16.msrb.mxu0 %v4316_v52 }
 0x47f   : > { %2679 = vmatpush.bf16.msrb.mxu3 %v4341_v13 }
 0x481   : > { %2640 = vmatpush.bf16.msrb.mxu1 %v4326_v8  ;;  %2624 = vmatpush.bf16.msrb.mxu0 %v4315_v58 }
 0x483   : > { %2680 = vmatpush.bf16.msrb.mxu3 %v4340_v23 }
 0x485   : > { %2641 = vmatpush.bf16.msrb.mxu1 %v4325_v30 }
 0x487   : > { %2681 = vmatpush.bf16.msrb.mxu3 %v4339_v9 }
 0x489   : > { %2642 = vmatpush.bf16.msrb.mxu1 %v4324_v55 }
 0x48d   : > { %2643 = vmatpush.bf16.msrb.mxu1 %v4323_v59 }
 0x4bc   : > { %v2234_v21 = vpop.xlane.xlu0 %2233 }
 0x4bd   : > { %4566 = vrcp.f32 %v2234_v21 }
 0x4c3   : > { %v4567_v12 = vpop.eup %4566 }
 0x4c4   : > { %v2238_v6 = vmul.f32 %v4567_v12, %v5895_v48 }
 0x4c6   : > { %v2239_v10 = vpack.c.bf16 %v2238_v6, %v2237_v51 }
 0x4c8   : > { %3953 = vmatmul.msk.bf16.vlgmr.msra.gmra.mxu1 %vm1790_vm13, %v2239_v10 }
 0x4cb   : > { %v1900_v24 = vpop.f32.mrf.mxu3 }
 0x4cd   : > { %v1832_v35 = vpop.f32.mrf.mxu1 }
 0x4d3   : > { %v1902_v15 = vpop.f32.mrf.mxu3 }
 0x4d4   : > { %v2350_v53 = vpack.c.bf16 %v1902_v15, %v1900_v24  ;;  %v4595_v24 = vld [vmem:[#allocation2 + $0x8] sm:$0xff] }
 0x4d5   : > { %v1834_v19 = vpop.f32.mrf.mxu1 }
 0x4d6   : > { %v2349_v16 = vpack.c.bf16 %v1834_v19, %v1832_v35 }
 0x4d8   : > { %2644 = vmatmul.bf16.vlgmr.msrb.gmra.mxu1 %v2350_v53  ;;  %2625 = vmatmul.bf16.vlgmr.msrb.gmra.mxu0 %v2349_v16 }
 0x4db   : > { %v2042_v17 = vpop.f32.mrf.mxu3 }
 0x4dd   : > { %v1974_v4 = vpop.f32.mrf.mxu1 }
 0x4e3   : > { %v2044_v18 = vpop.f32.mrf.mxu3 }
 0x4e4   : > { %v2352_v48 = vpack.c.bf16 %v2044_v18, %v2042_v17 }
 0x4e5   : > { %v1976_v31 = vpop.f32.mrf.mxu1 }
 0x4e6   : > { %2682 = vmatmul.bf16.vlgmr.msrb.gmra.mxu3 %v2352_v48  ;;  %v2351_v39 = vpack.c.bf16 %v1976_v31, %v1974_v4  ;;  %v4141_v31 = vld [vmem:[%s5358_s27 + $0x70] sm:$0xf] }
 0x4e8   : > { %2663 = vmatmul.bf16.vlgmr.msrb.gmra.mxu2 %v2351_v39  ;;  %v4362_v39 = vld [vmem:[%s5358_s27 + $0x74] sm:$0xf0] }
 0x4ed   : > { %v2184_v36 = vpop.f32.mrf.mxu3  ;;  %v2116_v29 = vpop.f32.mrf.mxu1 }
 0x4f5   : > { %v2186_v34 = vpop.f32.mrf.mxu3  ;;  %v2118_v42 = vpop.f32.mrf.mxu1 }
 0x4f6   : > { %v2354_v26 = vpack.c.bf16 %v2186_v34, %v2184_v36  ;;  %v2353_v40 = vpack.c.bf16 %v2118_v42, %v2116_v29  ;;  %v4361_v36 = vld [vmem:[%s5358_s27 + $0x74] sm:$0xf]  ;;  %v4142_v29 = vor.u32 %v4362_v39, %v4141_v31  ;;  %v4143_v34 = vld [vmem:[%s5358_s27 + $0x78] sm:$0xf0]  ;;  %v4133_v42 = vld [vmem:[%s5358_s27 + $0x60] sm:$0xf] }
 0x4f7   : > { %v4087_v31 = vld [vmem:[%s5358_s27 + $0x8] sm:$0xf0] }
 0x4f8   : > { %2649 = vmatmul.bf16.gmra.mxu1 %v2354_v26  ;;  %2630 = vmatmul.bf16.gmra.mxu0 %v2353_v40  ;;  %v4146_v26 = vor.u32 %v4361_v36, %v4143_v34  ;;  %v4360_v40 = vld [vmem:[%s5358_s27 + $0x64] sm:$0xf0] }
 0x4f9   : > { %2897 = vmatpush.bf16.msra.mxu0 %v4142_v29 }
 0x4fa   : > { %2916 = vmatpush.bf16.msra.mxu1 %v4146_v26 }
 0x4fd   : > { %v2326_v32 = vpop.f32.mrf.mxu3 }
 0x505   : > { %v2328_v54 = vpop.f32.mrf.mxu3 }
 0x506   : > { %v2356_v0 = vpack.c.bf16 %v2328_v54, %v2326_v32  ;;  %v4359_v32 = vld [vmem:[%s5358_s27 + $0x64] sm:$0xf]  ;;  %v4134_v54 = vor.u32 %v4360_v40, %v4133_v42 }
 0x508   : > { %2687 = vmatmul.bf16.gmra.mxu3 %v2356_v0  ;;  %v4135_v0 = vld [vmem:[%s5358_s27 + $0x68] sm:$0xf0]  ;;  %2898 = vmatpush.bf16.msra.mxu0 %v4134_v54 }
 0x545   : > { %v2258_v62 = vpop.f32.mrf.mxu1 }
 0x54d   : > { %v2260_v20 = vpop.f32.mrf.mxu1 }
 0x54e   : > { %v2355_v41 = vpack.c.bf16 %v2260_v20, %v2258_v62  ;;  %v4138_v20 = vor.u32 %v4359_v32, %v4135_v0 }
 0x550   : > { %2668 = vmatmul.bf16.gmra.mxu2 %v2355_v41  ;;  %2917 = vmatpush.bf16.msra.mxu1 %v4138_v20 }
 0x555   : > { %v2626_v61 = vpop.f32.mrf.mxu0  ;;  %v2645_v44 = vpop.f32.mrf.mxu1 }
 0x556   : > { %v2627_v57 = vadd.f32 %v4490_v43, %v2626_v61  ;;  %v4125_v61 = vld [vmem:[%s5358_s27 + $0x50] sm:$0xf] }
 0x558   : > { %v2646_v7 = vadd.f32 %v2645_v44, %v2627_v57  ;;  %v4357_v57 = vld [vmem:[%s5358_s27 + $0x54] sm:$0xf] }
 0x55d   : > { %v2628_v45 = vpop.f32.mrf.mxu0  ;;  %v2647_v28 = vpop.f32.mrf.mxu1 }
 0x55e   : > { %v2629_v63 = vadd.f32 %v4490_v43, %v2628_v45  ;;  %v4127_v45 = vld [vmem:[%s5358_s27 + $0x58] sm:$0xf0] }
 0x560   : > { %v2648_v30 = vadd.f32 %v2647_v28, %v2629_v63  ;;  %v4356_v63 = vld [vmem:[%s5358_s27 + $0x44] sm:$0xf0]  ;;  %v4119_v28 = vld [vmem:[%s5358_s27 + $0x48] sm:$0xf0] }
 0x569   : > { %v2683_v5 = vpop.f32.mrf.mxu3 }
 0x56b   : > { %v2664_v33 = vpop.f32.mrf.mxu2 }
 0x56c   : > { %v2665_v22 = vadd.f32 %v2664_v33, %v2646_v7 }
 0x56e   : > { %v2684_v8 = vadd.f32 %v2683_v5, %v2665_v22  ;;  %v4130_v5 = vor.u32 %v4357_v57, %v4127_v45  ;;  %v4117_v22 = vld [vmem:[%s5358_s27 + $0x40] sm:$0xf] }
 0x570   : > { %v5957_v38 = vadd.f32 %v4592_v27, %v2684_v8  ;;  %2918 = vmatpush.bf16.msra.mxu1 %v4130_v5  ;;  %v4355_v8 = vld [vmem:[%s5358_s27 + $0x44] sm:$0xf]  ;;  %v4118_v27 = vor.u32 %v4356_v63, %v4117_v22  ;;  %v4492_v22 = vld [vmem:[%s686_s10] ss:$0 sm:$0xff]  ;;  %s6189_s10 = sld [smem:[#allocation40_spill]] (!%p4211_p7) }
 0x571   : > { %v2685_v52 = vpop.f32.mrf.mxu3 }
 0x572   : > { %2699 = vadd.xlane.f32.xlu1 %v5957_v38 }
 0x573   : > { %v2666_v46 = vpop.f32.mrf.mxu2 }
 0x574   : > { %v2667_v50 = vadd.f32 %v2666_v46, %v2648_v30  ;;  %v4122_v46 = vor.u32 %v4355_v8, %v4119_v28 }
 0x575   : > { %v2631_v58 = vpop.f32.mrf.mxu0  ;;  %v2650_v49 = vpop.f32.mrf.mxu1 }
 0x576   : > { %v2686_v55 = vadd.f32 %v2685_v52, %v2667_v50  ;;  %v2632_v59 = vadd.f32 %v4490_v43, %v2631_v58  ;;  %2919 = vmatpush.bf16.msra.mxu1 %v4122_v46  ;;  %v4109_v52 = vld [vmem:[%s5358_s27 + $0x30] sm:$0xf] }
 0x578   : > { %v5960_v47 = vadd.f32 %v4593_v56, %v2686_v55  ;;  %v2651_v60 = vadd.f32 %v2650_v49, %v2632_v59  ;;  %v4354_v55 = vld [vmem:[%s5358_s27 + $0x34] sm:$0xf0]  ;;  %v4353_v56 = vld [vmem:[%s5358_s27 + $0x34] sm:$0xf]  ;;  %v4111_v49 = vld [vmem:[%s5358_s27 + $0x38] sm:$0xf0] }
 0x579   : > { %v4110_v59 = vor.u32 %v4354_v55, %v4109_v52 }
 0x57a   : > { %2701 = vadd.xlane.f32.xlu2 %v5960_v47 }
 0x57d   : > { %v2633_v37 = vpop.f32.mrf.mxu0  ;;  %v2652_v12 = vpop.f32.mrf.mxu1 }
 0x57e   : > { %v2634_v1 = vadd.f32 %v4490_v43, %v2633_v37  ;;  %v4358_v43 = vld [vmem:[%s5358_s27 + $0x54] sm:$0xf0]  ;;  %v4114_v37 = vor.u32 %v4353_v56, %v4111_v49 }
 0x57f   : > { %v4126_v7 = vor.u32 %v4358_v43, %v4125_v61 }
 0x580   : > { %v2653_v51 = vadd.f32 %v2652_v12, %v2634_v1  ;;  %2920 = vmatpush.bf16.msra.mxu1 %v4114_v37  ;;  %v4093_v12 = vld [vmem:[%s5358_s27 + $0x10] sm:$0xf] }
 0x581   : > { %2899 = vmatpush.bf16.msra.mxu0 %v4126_v7  ;;  %v4491_v7 = vld [vmem:[%s813_s12] ss:$0 sm:$0xff] }
 0x585   : > { %2900 = vmatpush.bf16.msra.mxu0 %v4118_v27 }
 0x589   : > { %2901 = vmatpush.bf16.msra.mxu0 %v4110_v59 }
 0x58b   : > { %v2688_v25 = vpop.f32.mrf.mxu3 }
 0x593   : > { %v2690_v10 = vpop.f32.mrf.mxu3 }
 0x5d3   : > { %v2669_v13 = vpop.f32.mrf.mxu2 }
 0x5d4   : > { %v2670_v21 = vadd.f32 %v2669_v13, %v2651_v60  ;;  %v4352_v13 = vld [vmem:[%s5358_s27 + $0x24] sm:$0xf0] }
 0x5d6   : > { %v2689_v23 = vadd.f32 %v2688_v25, %v2670_v21  ;;  %v4101_v25 = vld [vmem:[%s5358_s27 + $0x20] sm:$0xf]  ;;  %v4351_v21 = vld [vmem:[%s5358_s27 + $0x24] sm:$0xf] }
 0x5d7   : > { %v4102_v1 = vor.u32 %v4352_v13, %v4101_v25 }
 0x5d8   : > { %v5963_v3 = vadd.f32 %v4594_v2, %v2689_v23  ;;  %v4103_v23 = vld [vmem:[%s5358_s27 + $0x28] sm:$0xf0] }
 0x5d9   : > { %v4106_v2 = vor.u32 %v4351_v21, %v4103_v23  ;;  %2902 = vmatpush.bf16.msra.mxu0 %v4102_v1 }
 0x5da   : > { %2703 = vadd.xlane.f32.xlu0 %v5963_v3 }
 0x5db   : > { %v2671_v6 = vpop.f32.mrf.mxu2  ;;  %2921 = vmatpush.bf16.msra.mxu1 %v4106_v2 }
 0x5dc   : > { %v2672_v9 = vadd.f32 %v2671_v6, %v2653_v51  ;;  %v4350_v51 = vld [vmem:[%s5358_s27 + $0x14] sm:$0xf0]  ;;  %v4349_v6 = vld [vmem:[%s5358_s27 + $0x14] sm:$0xf] }
 0x5de   : > { %v2691_v11 = vadd.f32 %v2690_v10, %v2672_v9  ;;  %v4094_v9 = vor.u32 %v4350_v51, %v4093_v12  ;;  %v4095_v10 = vld [vmem:[%s5358_s27 + $0x18] sm:$0xf0] }
 0x5e0   : > { %v5966_v35 = vadd.f32 %v4595_v24, %v2691_v11  ;;  %v4098_v24 = vor.u32 %v4349_v6, %v4095_v10  ;;  %2903 = vmatpush.bf16.msra.mxu0 %v4094_v9 }
 0x5e2   : > { %2705 = vadd.xlane.f32.xlu1 %v5966_v35  ;;  %2922 = vmatpush.bf16.msra.mxu1 %v4098_v24 }
 0x5e5   : > { %v2700_v15 = vpop.xlane.xlu1 %2699 }
 0x5e6   : > { %v2707_v53 = vmul.f32 %v2700_v15, %v5388_v14 }
 0x5e8   : > { %v5971_v19 = vsub.f32 %v5957_v38, %v2707_v53  ;;  %v4085_v53 = vld [vmem:[%s5358_s27] sm:$0xf] }
 0x5ea   : > { %v2715_v16 = vmul.f32 %v5971_v19, %v5971_v19 }
 0x5ec   : > { %2719 = vadd.xlane.f32.xlu2 %v2715_v16  ;;  %v4348_v16 = vld [vmem:[%s5358_s27 + $0x4] sm:$0xf0] }
 0x5ed   : > { %v2702_v17 = vpop.xlane.xlu2 %2701 }
 0x5ee   : > { %v2708_v4 = vmul.f32 %v2702_v17, %v5388_v14  ;;  %v4347_v17 = vld [vmem:[%s5358_s27 + $0x4] sm:$0xf] }
 0x5ef   : > { %v4090_v39 = vor.u32 %v4347_v17, %v4087_v31 }
 0x5f0   : > { %v5977_v18 = vsub.f32 %v5960_v47, %v2708_v4 }
 0x5f1   : > { %2923 = vmatpush.bf16.msra.mxu1 %v4090_v39  ;;  %v4376_v39 = vld [vmem:[%s5366_s21 + $0x68] sm:$0xff] }
 0x5f2   : > { %v2716_v48 = vmul.f32 %v5977_v18, %v5977_v18 }
 0x5f4   : > { %2721 = vadd.xlane.f32.xlu0 %v2716_v48  ;;  %v4086_v48 = vor.u32 %v4348_v16, %v4085_v53  ;;  %v4378_v53 = vld [vmem:[%s5366_s21 + $0x78] sm:$0xff] }
 0x5f5   : > { %3162 = vmatpush.bf16.msra.mxu3 %v4378_v53 }
 0x5f6   : > { %2904 = vmatpush.bf16.msra.mxu0 %v4086_v48  ;;  %v4377_v48 = vld [vmem:[%s5366_s21 + $0x70] sm:$0xff] }
 0x5f9   : > { %3163 = vmatpush.bf16.msra.mxu3 %v4377_v48 }
 0x5fd   : > { %3164 = vmatpush.bf16.msra.mxu3 %v4376_v39 }
 0x64d   : > { %v2704_v62 = vpop.xlane.xlu0 %2703 }
 0x64e   : > { %v2709_v41 = vmul.f32 %v2704_v62, %v5388_v14 }
 0x650   : > { %v5994_v44 = vsub.f32 %v5963_v3, %v2709_v41 }
 0x652   : > { %v2717_v33 = vmul.f32 %v5994_v44, %v5994_v44 }
 0x654   : > { %2723 = vadd.xlane.f32.xlu1 %v2717_v33 }
 0x655   : > { %v2706_v30 = vpop.xlane.xlu1 %2705 }
 0x656   : > { %v2710_v50 = vmul.f32 %v2706_v30, %v5388_v14 }
 0x658   : > { %v6008_v58 = vsub.f32 %v5966_v35, %v2710_v50 }
 0x65a   : > { %v2718_v60 = vmul.f32 %v6008_v58, %v6008_v58 }
 0x65c   : > { %2725 = vadd.xlane.f32.xlu2 %v2718_v60 }
 0x65f   : > { %v2720_v11 = vpop.xlane.xlu2 %2719 }
 0x660   : > { %v2727_v15 = vmul.f32 %v2720_v11, %v5388_v14 }
 0x662   : > { %v2731_v4 = vadd.f32 1e-05, %v2727_v15  ;;  %v4370_v15 = vld [vmem:[%s5366_s21 + $0x38] sm:$0xff] }
 0x663   : > { %3143 = vmatpush.bf16.msra.mxu2 %v4370_v15 }
 0x664   : > { %4568 = vrsqrt.f32 %v2731_v4  ;;  %vm2741_vm15 = vweird.f32 %v2731_v4 }
 0x667   : > { %v2722_v36 = vpop.xlane.xlu0 %2721 }
 0x668   : > { %v2728_v29 = vmul.f32 %v2722_v36, %v5388_v14  ;;  %v4367_v36 = vld [vmem:[%s5366_s21 + $0x20] sm:$0xff] }
 0x66a   : > { %v4569_v34 = vpop.eup %4568  ;;  %v2732_v26 = vadd.f32 1e-05, %v2728_v29  ;;  %v4375_v29 = vld [vmem:[%s5366_s21 + $0x60] sm:$0xff] }
 0x66b   : > { %v2736_v42 = vmul.f32 %v4569_v34, %v2731_v4  ;;  %vm2742_vm14 = vweird.f32 %v4569_v34  ;;  %3165 = vmatpush.bf16.msra.mxu3 %v4375_v29 }
 0x66c   : > { %4570 = vrsqrt.f32 %v2732_v26  ;;  %vm2743_vm0 = vmor %vm2741_vm15, %vm2742_vm14  ;;  %vm2751_vm2 = vweird.f32 %v2732_v26 }
 0x66d   : > { %v2737_v40 = vmul.f32 %v4569_v34, %v2736_v42  ;;  %v4365_v42 = vld [vmem:[%s5366_s21 + $0x10] sm:$0xff] }
 0x66f   : > { %v2738_v32 = vmul.f32 0.5, %v2737_v40  ;;  %v4373_v40 = vld [vmem:[%s5366_s21 + $0x50] sm:$0xff] }
 0x671   : > { %v2739_v54 = vsub.f32 1.5, %v2738_v32  ;;  %v2811_v32 = vld [vmem:[%s5360_s17] sm:$0x3] }
 0x672   : > { %v4571_v0 = vpop.eup %4570 }
 0x673   : > { %v2740_v62 = vmul.f32 %v4569_v34, %v2739_v54  ;;  %v2746_v20 = vmul.f32 %v4571_v0, %v2732_v26  ;;  %vm2752_vm1 = vweird.f32 %v4571_v0  ;;  %v4374_v26 = vld [vmem:[%s5366_s21 + $0x58] sm:$0xff]  ;;  %v4364_v54 = vld [vmem:[%s5366_s21 + $0x8] sm:$0xff] }
 0x674   : > { %vm2753_vm3 = vmor %vm2751_vm2, %vm2752_vm1  ;;  %3166 = vmatpush.bf16.msra.mxu3 %v4374_v26 }
 0x675   : > { %v2747_v41 = vmul.f32 %v4571_v0, %v2746_v20  ;;  %v2744_v61 = vsel %vm2743_vm0, %v4569_v34, %v2740_v62  ;;  %v4366_v34 = vld [vmem:[%s5366_s21 + $0x18] sm:$0xff]  ;;  %v6055_v62 = vperm.slane %v2811_v32, 0  ;;  %v6057_v20 = vperm.slane %v2811_v32, 1 }
 0x676   : > { %v2775_v45 = vmul.f32 %v2744_v61, %v5971_v19  ;;  %v4371_v61 = vld [vmem:[%s5366_s21 + $0x40] sm:$0xff] }
 0x677   : > { %v2748_v43 = vmul.f32 0.5, %v2747_v41  ;;  %v4363_v41 = vld [vmem:[%s5366_s21] sm:$0xff] }
 0x678   : > { %v2782_v63 = vmul.f32 %v4491_v7, %v2775_v45  ;;  %3167 = vmatpush.bf16.msra.mxu3 %v4373_v40 }
 0x679   : > { %v2749_v57 = vsub.f32 1.5, %v2748_v43 }
 0x67a   : > { %v2789_v28 = vadd.f32 %v4492_v22, %v2782_v63 }
 0x67b   : > { %v2750_v5 = vmul.f32 %v4571_v0, %v2749_v57 }
 0x67d   : > { %v2754_v33 = vsel %vm2753_vm3, %v4571_v0, %v2750_v5  ;;  %v4372_v0 = vld [vmem:[%s5366_s21 + $0x48] sm:$0xff] }
 0x67e   : > { %v2776_v8 = vmul.f32 %v2754_v33, %v5977_v18  ;;  %3168 = vmatpush.bf16.msra.mxu3 %v4372_v0 }
 0x680   : > { %v2783_v27 = vmul.f32 %v4491_v7, %v2776_v8 }
 0x682   : > { %v2790_v30 = vadd.f32 %v4492_v22, %v2783_v27  ;;  %3169 = vmatpush.bf16.msra.mxu3 %v4371_v61 }
 0x684   : > { %v2793_v46 = vpack.c.bf16 %v2790_v30, %v2789_v28 }
 0x686   : > { %2905 = vmatmul.bf16.vlgmr.msra.gmra.mxu0 %v2793_v46  ;;  %2924 = vmatmul.bf16.vlgmr.msra.gmra.mxu1 %v2793_v46 }
 0x6c7   : > { %v2724_v50 = vpop.xlane.xlu1 %2723 }
 0x6c8   : > { %v2729_v52 = vmul.f32 %v2724_v50, %v5388_v14 }
 0x6ca   : > { %v2733_v55 = vadd.f32 1e-05, %v2729_v52 }
 0x6cc   : > { %4572 = vrsqrt.f32 %v2733_v55  ;;  %vm2761_vm5 = vweird.f32 %v2733_v55 }
 0x6cf   : > { %v2726_v19 = vpop.xlane.xlu2 %2725 }
 0x6d0   : > { %v2730_v56 = vmul.f32 %v2726_v19, %v5388_v14 }
 0x6d2   : > { %v4573_v59 = vpop.eup %4572  ;;  %v2734_v49 = vadd.f32 1e-05, %v2730_v56 }
 0x6d3   : > { %v2756_v37 = vmul.f32 %v4573_v59, %v2733_v55  ;;  %vm2762_vm4 = vweird.f32 %v4573_v59 }
 0x6d4   : > { %4574 = vrsqrt.f32 %v2734_v49  ;;  %vm2763_vm6 = vmor %vm2761_vm5, %vm2762_vm4  ;;  %vm2771_vm8 = vweird.f32 %v2734_v49 }
 0x6d5   : > { %v2757_v60 = vmul.f32 %v4573_v59, %v2756_v37 }
 0x6d7   : > { %v2758_v18 = vmul.f32 0.5, %v2757_v60 }
 0x6d9   : > { %v2759_v25 = vsub.f32 1.5, %v2758_v18 }
 0x6da   : > { %v4575_v13 = vpop.eup %4574 }
 0x6db   : > { %v2760_v21 = vmul.f32 %v4573_v59, %v2759_v25  ;;  %v2766_v1 = vmul.f32 %v4575_v13, %v2734_v49  ;;  %vm2772_vm7 = vweird.f32 %v4575_v13 }
 0x6dc   : > { %vm2773_vm9 = vmor %vm2771_vm8, %vm2772_vm7 }
 0x6dd   : > { %v2767_v23 = vmul.f32 %v4575_v13, %v2766_v1  ;;  %v2764_v2 = vsel %vm2763_vm6, %v4573_v59, %v2760_v21 }
 0x6de   : > { %v2777_v6 = vmul.f32 %v2764_v2, %v5994_v44  ;;  %v4369_v44 = vld [vmem:[%s5366_s21 + $0x30] sm:$0xff] }
 0x6df   : > { %v2768_v12 = vmul.f32 0.5, %v2767_v23  ;;  %3144 = vmatpush.bf16.msra.mxu2 %v4369_v44 }
 0x6e0   : > { %v2784_v24 = vmul.f32 %v4491_v7, %v2777_v6 }
 0x6e1   : > { %v2769_v51 = vsub.f32 1.5, %v2768_v12 }
 0x6e2   : > { %v2791_v17 = vadd.f32 %v4492_v22, %v2784_v24 }
 0x6e3   : > { %v2770_v9 = vmul.f32 %v4575_v13, %v2769_v51 }
 0x6e5   : > { %v2774_v10 = vsel %vm2773_vm9, %v4575_v13, %v2770_v9 }
 0x6e6   : > { %v2778_v11 = vmul.f32 %v2774_v10, %v6008_v58  ;;  %v4368_v58 = vld [vmem:[%s5366_s21 + $0x28] sm:$0xff]  ;;  %s6190_s21 = sld [smem:[#allocation41_spill]] (!%p4211_p7) }
 0x6e7   : > { %3145 = vmatpush.bf16.msra.mxu2 %v4368_v58 }
 0x6e8   : > { %v2785_v16 = vmul.f32 %v4491_v7, %v2778_v11 }
 0x6ea   : > { %v2792_v4 = vadd.f32 %v4492_v22, %v2785_v16 }
 0x6eb   : > { %3146 = vmatpush.bf16.msra.mxu2 %v4367_v36 }
 0x6ec   : > { %v2794_v31 = vpack.c.bf16 %v2792_v4, %v2791_v17 }
 0x6ee   : > { %2910 = vmatmul.bf16.gmra.mxu0 %v2794_v31  ;;  %2929 = vmatmul.bf16.gmra.mxu1 %v2794_v31 }
 0x6ef   : > { %3147 = vmatpush.bf16.msra.mxu2 %v4366_v34 }
 0x6f3   : > { %3148 = vmatpush.bf16.msra.mxu2 %v4365_v42 }
 0x6f7   : > { %3149 = vmatpush.bf16.msra.mxu2 %v4364_v54 }
 0x6fb   : > { %3150 = vmatpush.bf16.msra.mxu2 %v4363_v41 }
 0x703   : > { %v2906_v43 = vpop.f32.mrf.mxu0  ;;  %v2925_v57 = vpop.f32.mrf.mxu1 }
 0x704   : > { %v2907_v7 = vadd.f32 %v2906_v43, %v6055_v62  ;;  %v2926_v45 = vadd.f32 %v2925_v57, %v6057_v20 }
 0x706   : > { %v2943_v5 = vmul.f32 0.044715, %v2907_v7  ;;  %v2944_v33 = vmul.f32 0.044715, %v2926_v45  ;;  %v2935_v11 = vmul.f32 0.5, %v2907_v7  ;;  %v2936_v53 = vmul.f32 0.5, %v2926_v45 }
 0x708   : > { %v2951_v22 = vmul.f32 %v2943_v5, %v2907_v7  ;;  %v2952_v63 = vmul.f32 %v2944_v33, %v2926_v45 }
 0x70a   : > { %v2959_v8 = vmul.f32 %v2951_v22, %v2907_v7  ;;  %v2960_v27 = vmul.f32 %v2952_v63, %v2926_v45 }
 0x70b   : > { %v2908_v28 = vpop.f32.mrf.mxu0  ;;  %v2927_v30 = vpop.f32.mrf.mxu1 }
 0x70c   : > { %v2909_v46 = vadd.f32 %v2908_v28, %v6055_v62  ;;  %v2928_v50 = vadd.f32 %v2927_v30, %v6057_v20  ;;  %v2967_v52 = vadd.f32 %v2959_v8, %v2907_v7  ;;  %v2968_v55 = vadd.f32 %v2960_v27, %v2926_v45 }
 0x70e   : > { %v2945_v19 = vmul.f32 0.044715, %v2909_v46  ;;  %v2946_v56 = vmul.f32 0.044715, %v2928_v50  ;;  %v2975_v59 = vmul.f32 0.7978846, %v2967_v52 }
 0x70f   : > { %v2976_v60 = vmul.f32 0.7978846, %v2968_v55  ;;  %v2937_v24 = vmul.f32 0.5, %v2909_v46  ;;  %v2938_v16 = vmul.f32 0.5, %v2928_v50 }
 0x710   : > { %v2953_v49 = vmul.f32 %v2945_v19, %v2909_v46  ;;  %v2954_v37 = vmul.f32 %v2946_v56, %v2928_v50  ;;  %4576 = vtanh.f32 %v2975_v59 }
 0x711   : > { %4578 = vtanh.f32 %v2976_v60 }
 0x712   : > { %v2961_v18 = vmul.f32 %v2953_v49, %v2909_v46  ;;  %v2962_v25 = vmul.f32 %v2954_v37, %v2928_v50 }
 0x714   : > { %v2969_v13 = vadd.f32 %v2961_v18, %v2909_v46  ;;  %v2970_v21 = vadd.f32 %v2962_v25, %v2928_v50 }
 0x716   : > { %v2977_v1 = vmul.f32 0.7978846, %v2969_v13  ;;  %v2978_v23 = vmul.f32 0.7978846, %v2970_v21  ;;  %v4577_v2 = vpop.eup %4576 }
 0x717   : > { %v4579_v12 = vpop.eup %4578  ;;  %v2991_v51 = vadd.f32 1.0, %v4577_v2 }
 0x718   : > { %4580 = vtanh.f32 %v2977_v1  ;;  %v2992_v9 = vadd.f32 1.0, %v4579_v12 }
 0x719   : > { %4582 = vtanh.f32 %v2978_v23  ;;  %v2999_v4 = vmul.f32 %v2991_v51, %v2935_v11 }
 0x71a   : > { %v3000_v48 = vmul.f32 %v2992_v9, %v2936_v53 }
 0x71e   : > { %v4581_v6 = vpop.eup %4580 }
 0x71f   : > { %v4583_v10 = vpop.eup %4582  ;;  %v2993_v15 = vadd.f32 1.0, %v4581_v6 }
 0x720   : > { %v2994_v17 = vadd.f32 1.0, %v4583_v10  ;;  %v4493_v10 = vld [vmem:[%s725_s1] ss:$0 sm:$0xff] }
 0x721   : > { %v3001_v44 = vmul.f32 %v2993_v15, %v2937_v24 }
 0x722   : > { %v3002_v31 = vmul.f32 %v2994_v17, %v2938_v16 }
 0x723   : > { %v3007_v58 = vpack.c.bf16 %v3001_v44, %v2999_v4 }
 0x724   : > { %v3008_v39 = vpack.c.bf16 %v3002_v31, %v3000_v48 }
 0x725   : > { %3151 = vmatmul.bf16.vlgmr.msra.gmra.mxu2 %v3007_v58 }
 0x726   : > { %3170 = vmatmul.bf16.vlgmr.msra.gmra.mxu3 %v3008_v39 }
 0x76b   : > { %v2911_v36 = vpop.f32.mrf.mxu0  ;;  %v2930_v29 = vpop.f32.mrf.mxu1 }
 0x76c   : > { %v2912_v34 = vadd.f32 %v2911_v36, %v6055_v62  ;;  %v2931_v26 = vadd.f32 %v2930_v29, %v6057_v20 }
 0x76e   : > { %v2947_v42 = vmul.f32 0.044715, %v2912_v34  ;;  %v2948_v40 = vmul.f32 0.044715, %v2931_v26  ;;  %v2939_v60 = vmul.f32 0.5, %v2912_v34  ;;  %v2940_v13 = vmul.f32 0.5, %v2931_v26 }
 0x770   : > { %v2955_v32 = vmul.f32 %v2947_v42, %v2912_v34  ;;  %v2956_v54 = vmul.f32 %v2948_v40, %v2931_v26 }
 0x772   : > { %v2963_v0 = vmul.f32 %v2955_v32, %v2912_v34  ;;  %v2964_v41 = vmul.f32 %v2956_v54, %v2931_v26 }
 0x773   : > { %v2913_v61 = vpop.f32.mrf.mxu0  ;;  %v2932_v43 = vpop.f32.mrf.mxu1 }
 0x774   : > { %v2914_v57 = vadd.f32 %v2913_v61, %v6055_v62  ;;  %v2933_v7 = vadd.f32 %v2932_v43, %v6057_v20  ;;  %v2971_v45 = vadd.f32 %v2963_v0, %v2912_v34  ;;  %v2972_v5 = vadd.f32 %v2964_v41, %v2931_v26 }
 0x776   : > { %v2949_v33 = vmul.f32 0.044715, %v2914_v57  ;;  %v2950_v22 = vmul.f32 0.044715, %v2933_v7  ;;  %v2979_v27 = vmul.f32 0.7978846, %v2971_v45 }
 0x777   : > { %v2980_v28 = vmul.f32 0.7978846, %v2972_v5  ;;  %v2941_v18 = vmul.f32 0.5, %v2914_v57  ;;  %v2942_v21 = vmul.f32 0.5, %v2933_v7 }
 0x778   : > { %v2957_v63 = vmul.f32 %v2949_v33, %v2914_v57  ;;  %v2958_v8 = vmul.f32 %v2950_v22, %v2933_v7  ;;  %4584 = vtanh.f32 %v2979_v27 }
 0x779   : > { %4586 = vtanh.f32 %v2980_v28 }
 0x77a   : > { %v2965_v30 = vmul.f32 %v2957_v63, %v2914_v57  ;;  %v2966_v46 = vmul.f32 %v2958_v8, %v2933_v7 }
 0x77c   : > { %v2973_v50 = vadd.f32 %v2965_v30, %v2914_v57  ;;  %v2974_v52 = vadd.f32 %v2966_v46, %v2933_v7 }
 0x77e   : > { %v2981_v55 = vmul.f32 0.7978846, %v2973_v50  ;;  %v2982_v19 = vmul.f32 0.7978846, %v2974_v52  ;;  %v4585_v62 = vpop.eup %4584 }
 0x77f   : > { %v4587_v20 = vpop.eup %4586  ;;  %v2995_v56 = vadd.f32 1.0, %v4585_v62 }
 0x780   : > { %4588 = vtanh.f32 %v2981_v55  ;;  %v2996_v49 = vadd.f32 1.0, %v4587_v20 }
 0x781   : > { %4590 = vtanh.f32 %v2982_v19  ;;  %v3003_v23 = vmul.f32 %v2995_v56, %v2939_v60 }
 0x782   : > { %v3004_v12 = vmul.f32 %v2996_v49, %v2940_v13 }
 0x786   : > { %v4589_v59 = vpop.eup %4588 }
 0x787   : > { %v4591_v37 = vpop.eup %4590  ;;  %v2997_v25 = vadd.f32 1.0, %v4589_v59 }
 0x788   : > { %v2998_v1 = vadd.f32 1.0, %v4591_v37 }
 0x789   : > { %v3005_v2 = vmul.f32 %v2997_v25, %v2941_v18 }
 0x78a   : > { %v3006_v51 = vmul.f32 %v2998_v1, %v2942_v21 }
 0x78b   : > { %v3009_v6 = vpack.c.bf16 %v3005_v2, %v3003_v23 }
 0x78c   : > { %v3010_v9 = vpack.c.bf16 %v3006_v51, %v3004_v12 }
 0x78d   : > { %3156 = vmatmul.bf16.gmra.mxu2 %v3009_v6 }
 0x78e   : > { %3175 = vmatmul.bf16.gmra.mxu3 %v3010_v9 }
 0x7a8   : > { %v3152_v11 = vpop.f32.mrf.mxu2 }
 0x7a9   : > { %v3153_v24 = vadd.f32 %v4493_v10, %v3152_v11  ;;  %v3171_v15 = vpop.f32.mrf.mxu3 }
 0x7ab   : > { %v3172_v53 = vadd.f32 %v3171_v15, %v3153_v24 }
 0x7ad   : > { %v3181_v16 = vadd.f32 %v3172_v53, %v5957_v38 }
 0x7af   : > { %3185 = vst [vmem:[#allocation2 + $0x10] sm:$0xff] %v3181_v16 }
 0x7b0   : > { %v3154_v17 = vpop.f32.mrf.mxu2 }
 0x7b1   : > { %v3155_v4 = vadd.f32 %v4493_v10, %v3154_v17  ;;  %v3173_v44 = vpop.f32.mrf.mxu3 }
 0x7b3   : > { %v3174_v48 = vadd.f32 %v3173_v44, %v3155_v4 }
 0x7b5   : > { %v3182_v31 = vadd.f32 %v3174_v48, %v5960_v47 }
 0x7b7   : > { %3186 = vst [vmem:[#allocation2] sm:$0xff] %v3182_v31 }
 0x810   : > { %v3157_v58 = vpop.f32.mrf.mxu2 }
 0x811   : > { %v3158_v39 = vadd.f32 %v4493_v10, %v3157_v58  ;;  %v3176_v36 = vpop.f32.mrf.mxu3 }
 0x813   : > { %v3177_v29 = vadd.f32 %v3176_v36, %v3158_v39 }
 0x815   : > { %v3183_v34 = vadd.f32 %v3177_v29, %v5963_v3 }
 0x817   : > { %3187 = vst [vmem:[#allocation2 + $0x18] sm:$0xff] %v3183_v34 }
 0x818   : > { %v3159_v26 = vpop.f32.mrf.mxu2 }
 0x819   : > { %v3160_v42 = vadd.f32 %v4493_v10, %v3159_v26  ;;  %v3178_v40 = vpop.f32.mrf.mxu3 }
 0x81b   : > { %v3179_v32 = vadd.f32 %v3178_v40, %v3160_v42  ;;  %3192 = sbr.rel (%p4211_p7) target bundleno = 2356 (0x934), region = 124 }
 0x81d   : > { %v3184_v38 = vadd.f32 %v3179_v32, %v5966_v35 }
 0x81f   : > { %3188 = vst [vmem:[#allocation2 + $0x8] sm:$0xff] %v3184_v38 }
 0x820   : > { %3199 = vadd.xlane.f32.xlu1 %v3183_v34  ;;  %3195 = vadd.xlane.f32.xlu0 %v3181_v16  ;;  %v4596_v9 = vld [vmem:[%s6189_s10] ss:$0 sm:$0xff] }
 0x828   : > { %3201 = vadd.xlane.f32.xlu1 %v3184_v38  ;;  %3197 = vadd.xlane.f32.xlu0 %v3182_v31 }
 0x893   : > { %v3200_v47 = vpop.xlane.xlu1 %3199  ;;  %v3196_v54 = vpop.xlane.xlu0 %3195 }
 0x894   : > { %v3205_v0 = vmul.f32 %v3200_v47, %v5388_v14  ;;  %v3203_v3 = vmul.f32 %v3196_v54, %v5388_v14 }
 0x896   : > { %v3209_v41 = vsub.f32 %v3183_v34, %v3205_v0  ;;  %v3207_v61 = vsub.f32 %v3181_v16, %v3203_v3  ;;  %v4597_v16 = vld [vmem:[%s6190_s21] ss:$0 sm:$0xff] }
 0x898   : > { %v3213_v43 = vmul.f32 %v3209_v41, %v3209_v41  ;;  %v3211_v57 = vmul.f32 %v3207_v61, %v3207_v61 }
 0x89a   : > { %3219 = vadd.xlane.f32.xlu0 %v3213_v43  ;;  %3215 = vadd.xlane.f32.xlu2 %v3211_v57 }
 0x89b   : > { %v3202_v35 = vpop.xlane.xlu1 %3201  ;;  %v3198_v7 = vpop.xlane.xlu0 %3197 }
 0x89c   : > { %v3206_v45 = vmul.f32 %v3202_v35, %v5388_v14  ;;  %v3204_v5 = vmul.f32 %v3198_v7, %v5388_v14 }
 0x89e   : > { %v6080_v33 = vsub.f32 %v3184_v38, %v3206_v45  ;;  %v6082_v22 = vsub.f32 %v3182_v31, %v3204_v5 }
 0x8a0   : > { %v3214_v63 = vmul.f32 %v6080_v33, %v6080_v33  ;;  %v3212_v8 = vmul.f32 %v6082_v22, %v6082_v22 }
 0x8a2   : > { %3221 = vadd.xlane.f32.xlu1 %v3214_v63  ;;  %3217 = vadd.xlane.f32.xlu2 %v3212_v8 }
 0x90d   : > { %v3216_v27 = vpop.xlane.xlu2 %3215  ;;  %v3220_v28 = vpop.xlane.xlu0 %3219 }
 0x90e   : > { %v3223_v30 = vmul.f32 %v3216_v27, %v5388_v14  ;;  %v3225_v46 = vmul.f32 %v3220_v28, %v5388_v14 }
 0x910   : > { %v3227_v50 = vadd.f32 1e-05, %v3223_v30  ;;  %v3229_v52 = vadd.f32 1e-05, %v3225_v46 }
 0x912   : > { %4598 = vrsqrt.f32 %v3227_v50  ;;  %vm3237_vm12 = vweird.f32 %v3227_v50  ;;  %vm3257_vm14 = vweird.f32 %v3229_v52 }
 0x913   : > { %4600 = vrsqrt.f32 %v3229_v52 }
 0x915   : > { %v3222_v55 = vpop.xlane.xlu1 %3221  ;;  %v3218_v19 = vpop.xlane.xlu2 %3217 }
 0x916   : > { %v3226_v62 = vmul.f32 %v3222_v55, %v5388_v14  ;;  %v3224_v20 = vmul.f32 %v3218_v19, %v5388_v14 }
 0x918   : > { %v4599_v56 = vpop.eup %4598  ;;  %v3230_v59 = vadd.f32 1e-05, %v3226_v62  ;;  %v3228_v49 = vadd.f32 1e-05, %v3224_v20 }
 0x919   : > { %v4601_v37 = vpop.eup %4600  ;;  %v3232_v60 = vmul.f32 %v4599_v56, %v3227_v50  ;;  %vm3238_vm10 = vweird.f32 %v4599_v56 }
 0x91a   : > { %v3252_v18 = vmul.f32 %v4601_v37, %v3229_v52  ;;  %4602 = vrsqrt.f32 %v3230_v59  ;;  %vm3258_vm11 = vweird.f32 %v4601_v37  ;;  %vm3239_vm13 = vmor %vm3237_vm12, %vm3238_vm10  ;;  %vm3267_vm2 = vweird.f32 %v3230_v59 }
 0x91b   : > { %v3233_v25 = vmul.f32 %v4599_v56, %v3232_v60  ;;  %4604 = vrsqrt.f32 %v3228_v49  ;;  %vm3259_vm15 = vmor %vm3257_vm14, %vm3258_vm11  ;;  %vm3247_vm4 = vweird.f32 %v3228_v49 }
 0x91c   : > { %v3253_v13 = vmul.f32 %v4601_v37, %v3252_v18 }
 0x91d   : > { %v3234_v21 = vmul.f32 0.5, %v3233_v25 }
 0x91e   : > { %v3254_v1 = vmul.f32 0.5, %v3253_v13 }
 0x91f   : > { %v3235_v23 = vsub.f32 1.5, %v3234_v21 }
 0x920   : > { %v4603_v2 = vpop.eup %4602  ;;  %v3255_v12 = vsub.f32 1.5, %v3254_v1 }
 0x921   : > { %v4605_v51 = vpop.eup %4604  ;;  %v3236_v6 = vmul.f32 %v4599_v56, %v3235_v23  ;;  %v3262_v14 = vmul.f32 %v4603_v2, %v3230_v59  ;;  %vm3268_vm0 = vweird.f32 %v4603_v2 }
 0x922   : > { %v3256_v10 = vmul.f32 %v4601_v37, %v3255_v12  ;;  %v3242_v11 = vmul.f32 %v4605_v51, %v3228_v49  ;;  %vm3248_vm1 = vweird.f32 %v4605_v51  ;;  %vm3269_vm3 = vmor %vm3267_vm2, %vm3268_vm0 }
 0x923   : > { %v3240_v24 = vsel %vm3239_vm13, %v4599_v56, %v3236_v6  ;;  %v3263_v15 = vmul.f32 %v4603_v2, %v3262_v14  ;;  %vm3249_vm5 = vmor %vm3247_vm4, %vm3248_vm1 }
 0x924   : > { %v3271_v53 = vmul.f32 %v3240_v24, %v3207_v61  ;;  %v3260_v17 = vsel %vm3259_vm15, %v4601_v37, %v3256_v10  ;;  %v3243_v4 = vmul.f32 %v4605_v51, %v3242_v11 }
 0x925   : > { %v3273_v44 = vmul.f32 %v3260_v17, %v3209_v41  ;;  %v3264_v48 = vmul.f32 0.5, %v3263_v15 }
 0x926   : > { %v3278_v31 = vmul.f32 %v4596_v9, %v3271_v53  ;;  %v3244_v58 = vmul.f32 0.5, %v3243_v4 }
 0x927   : > { %v3280_v39 = vmul.f32 %v4596_v9, %v3273_v44  ;;  %v3265_v36 = vsub.f32 1.5, %v3264_v48 }
 0x928   : > { %v3285_v29 = vadd.f32 %v4597_v16, %v3278_v31  ;;  %v3245_v34 = vsub.f32 1.5, %v3244_v58 }
 0x929   : > { %v3287_v26 = vadd.f32 %v4597_v16, %v3280_v39  ;;  %v3266_v42 = vmul.f32 %v4603_v2, %v3265_v36 }
 0x92a   : > { %3289 = vst [vmem:[#allocation21] sm:$0xff] %v3285_v29  ;;  %v3246_v40 = vmul.f32 %v4605_v51, %v3245_v34 }
 0x92b   : > { %3291 = vst [vmem:[#allocation21 + $0x10] sm:$0xff] %v3287_v26  ;;  %v3270_v32 = vsel %vm3269_vm3, %v4603_v2, %v3266_v42 }
 0x92c   : > { %v3274_v38 = vmul.f32 %v3270_v32, %v6080_v33  ;;  %v3250_v47 = vsel %vm3249_vm5, %v4605_v51, %v3246_v40 }
 0x92d   : > { %v3272_v54 = vmul.f32 %v3250_v47, %v6082_v22 }
 0x92e   : > { %v3281_v0 = vmul.f32 %v4596_v9, %v3274_v38 }
 0x92f   : > { %v3279_v3 = vmul.f32 %v4596_v9, %v3272_v54 }
 0x930   : > { %v3288_v41 = vadd.f32 %v4597_v16, %v3281_v0 }
 0x931   : > { %v3286_v61 = vadd.f32 %v4597_v16, %v3279_v3 }
 0x932   : > { %3292 = vst [vmem:[#allocation21 + $0x18] sm:$0xff] %v3288_v41 }
 0x933   : > { %3290 = vst [vmem:[#allocation21 + $0x8] sm:$0xff] %v3286_v61 }
 0x934 PF: > { %p4443_p12 = scmp.eq.s32.totalorder %s5205_s24, 1  ;;  %s5002_s29 = smov [#allocation21]  }
 0x935   : > { %s3298_s1 = sshll.u32 %s5002_s29, 4  ;;  %s6191_s16 = sld [smem:[#allocation42_spill]]  ;;  %s3299_s1 = int_to_ptr.vmem [resolvable:$true] %s3298_s1 }
 0x936   : > { %s5003_s18 = smov 128   ;;  %s5004_s20 = smov 8  }
 0x93b   : > { %s3300_s23 = sshll.u32 %s6191_s16, 4  ;;  %s3301_s23 = int_to_ptr.hbm [resolvable:$true] %s3300_s23 }
 0x93c   : > { %4405 = dma.vmem_to_hbm [thread:$0]  (%p4443_p12), %s3299_s1, 512, %s3301_s23, [#allocation6], %s5003_s18, %s5003_s18, %s5004_s20  }
 0x93d   : > { %4975 = dma.done.wait (%p4443_p12), [#allocation6], 512  }
 0x93e   : > { %4977 = vsyncadd (%p4443_p12), [#allocation6], 4294966784 }
 0x93f PF: > { %s6192_s16 = sld [smem:[#allocation30_spill]]  ;;  %s6195_s29 = smov %s4984_s30 }
 0x940   : > { %s6193_s0 = sld [smem:[#allocation29_spill]] }
 0x941   : > { %s6194_s15 = sld [smem:[#allocation31_spill]] }
 0x945   : > { %p38_p1 = scmp.ge.s32.totalorder %s6192_s16, 4  }
 0x946   : > { %s6196_s30 = smov %s6193_s0 }
 0x947   :  { %40 = sbr.rel (!%p38_p1) target bundleno = 25 (0x19), region = 228 }
 0x94c   :  { %3317 = vsyncpa [#allocation5], 1 }
 0x94d   :  { %3319 = vsyncpa [#allocation5 + $0x1], 1 }
 0x94e   :  { %3320 = vsyncpa [#allocation8], 1 }
 0x94f   :  { %3322 = vsyncpa [#allocation8 + $0x1], 1 }
 0x950   :  { %3323 = vsyncpa [#allocation11], 1 }
 0x951   :  { %3325 = vsyncpa [#allocation11 + $0x1], 1 }
 0x952   :  { %3326 = vsyncpa [#allocation14], 1 }
 0x953   :  { %3328 = vsyncpa [#allocation14 + $0x1], 1 }
 0x954   :  { %3329 = vsyncpa [#allocation17], 1 }
 0x955   :  { %3331 = vsyncpa [#allocation17 + $0x1], 1 }
 0x956   :  { %3332 = vsyncpa [#allocation20], 1 }
 0x957   :  { %3334 = vsyncpa [#allocation20 + $0x1], 1 }
 0x958   :  { %3335 = vsyncpa [#allocation6], 1 }
 0x959   :  { %3337 = vsyncpa [#allocation6 + $0x1], 1 }

</bundles_post_ra>
